<compile_context>
chip_gen: v7x
topology: tpu7x:2x2x1
jax: 0.10.0
libtpu: 0.0.40
codegen_flags: <defaults>
</compile_context>

<pallas_src>
import numpy as np
import jax
import jax.numpy as jnp
from jax.experimental import pallas as pl
from jax.experimental.pallas import tpu as pltpu

LN_EPS = 1e-5
LANE = 128


# ----------------------------- shared math helpers -----------------------------
def _silu(x):
    return x * jax.nn.sigmoid(x)


def _dot(a, b):
    # MXU matmul: bf16 operands, f32 accumulate (weights are already bf16).
    return jnp.dot(a.astype(jnp.bfloat16), b, preferred_element_type=jnp.float32)


def _layernorm(x, g, b):
    # PyTorch nn.LayerNorm semantics: biased variance over the last dim, eps=1e-5.
    mu = jnp.mean(x, axis=-1, keepdims=True)
    var = jnp.mean((x - mu) ** 2, axis=-1, keepdims=True)
    return (x - mu) * jax.lax.rsqrt(var + LN_EPS) * g + b


# ------------------------------- fused Pallas kernel -------------------------------
def _make_fused_kernel(vec_layout, *, input_dim, dim, num_blocks):
    n_sq = num_blocks + 2          # identity-skip blocks: enc blocks + mid1 + mid2
    n_blk = 2 * num_blocks + 3     # total ResNet blocks
    dec_concat = (2 * dim) <= LANE  # decoder concat fits inside a single lane tile

    def kernel(x_ref, temb_ref, sig_ref, vecs_ref, bproj_ref,
               cm_w1_ref, lin_in_w_ref, wproj_ref,
               w1_sq_ref, w2_all_ref, w1_dec_ref, wsk_dec_ref,
               attn_wv_ref, attn_wp_ref, out_w_ref, o_ref):

        def V(name):                                   # packed (1, n) vector parameter
            r, n = vec_layout[name]
            return vecs_ref[pl.ds(r, 1), :][:, :n]

        def ln(x, g, b, n):                            # nn.LayerNorm (biased var, eps=1e-5)
            mu = jnp.sum(x, axis=-1, keepdims=True) / n
            xc = x - mu
            var = jnp.sum(xc * xc, axis=-1, keepdims=True) / n
            return xc * jax.lax.rsqrt(var + LN_EPS) * g + b

        # conditioning MLP head: Linear(dim, 4d) -> SiLU; the second Linear(4d, 4d) and
        # every per-block cond_map + b1 are folded into one lane-dense matmul at pack
        # time, so c_all[:, j*128 : j*128+dim] == cond_map_j(cond_mlp(temb)) + b1_j.
        h = _dot(temb_ref[...], cm_w1_ref[...]) + V('cm_b1')
        c_all = _dot(_silu(h), wproj_ref[...]) + bproj_ref[...]

        x = _dot(x_ref[...], lin_in_w_ref[...]) + V('lin_in_b')

        def cproj(j):                                  # lane-tile-aligned slice
            return c_all[:, j * LANE: j * LANE + dim]

        def res_square(x, j):
            # in_ch == out_ch: nn.Identity skip -> just add x (no skip matmul / weight DMA)
            h = _silu(ln(x, V(f'b{j}_g1'), V(f'b{j}_be1'), dim))
            h = _dot(h, w1_sq_ref[j]) + cproj(j)       # b1 folded into cproj
            h = _silu(ln(h, V(f'b{j}_g2'), V(f'b{j}_be2'), dim))
            # TODO(synk): F.dropout(p=0.1, training=True) is stochastic; eval-mode identity here.
            h = _dot(h, w2_all_ref[j]) + V(f'b{j}_b2')
            return h + x

        def res_dec(x, s, j):
            # Decoder block acts on torch.cat((x, skip), dim=1).
            k = j - n_sq
            if dec_concat:
                # 2*dim <= 128: build the concat once inside one lane tile, then a
                # single LayerNorm / SiLU / w1 dot / skip dot.
                xs = jnp.concatenate([x, s], axis=-1)
                h = _silu(ln(xs, V(f'b{j}_g1'), V(f'b{j}_be1'), 2 * dim))
                h = _dot(h, w1_dec_ref[k]) + cproj(j)
                h = _silu(ln(h, V(f'b{j}_g2'), V(f'b{j}_be2'), dim))
                # TODO(synk): dropout identity (see above).
                h = _dot(h, w2_all_ref[j]) + V(f'b{j}_b2')
                return h + _dot(xs, wsk_dec_ref[k]) + V(f'b{j}_bsk')
            # Fallback for 2*dim > 128: row-split LN / w1 / wsk, no concat materialized.
            g1, be1 = V(f'b{j}_g1'), V(f'b{j}_be1')
            n2 = 2 * dim
            mu = (jnp.sum(x, axis=-1, keepdims=True)
                  + jnp.sum(s, axis=-1, keepdims=True)) / n2
            xc, sc = x - mu, s - mu
            var = (jnp.sum(xc * xc, axis=-1, keepdims=True)
                   + jnp.sum(sc * sc, axis=-1, keepdims=True)) / n2
            rs = jax.lax.rsqrt(var + LN_EPS)
            hx = _silu(xc * rs * g1[:, :dim] + be1[:, :dim])
            hs = _silu(sc * rs * g1[:, dim:] + be1[:, dim:])
            w1 = w1_dec_ref[k]
            h = _dot(hx, w1[:dim]) + _dot(hs, w1[dim:]) + cproj(j)
            h = _silu(ln(h, V(f'b{j}_g2'), V(f'b{j}_be2'), dim))
            h = _dot(h, w2_all_ref[j]) + V(f'b{j}_b2')
            wsk = wsk_dec_ref[k]
            return h + _dot(x, wsk[:dim]) + _dot(s, wsk[dim:]) + V(f'b{j}_bsk')

        skips = [x]
        j = 0
        for _ in range(num_blocks):                    # encoder
            x = res_square(x, j)
            skips.append(x)
            j += 1
        x = res_square(x, j); j += 1                   # mid1
        # AttnBlock with num_heads=1 on a [B, dim] input: after the PyTorch reshape
        # q/k/v each have shape [B, dim, 1], so the softmax is over a singleton axis
        # (== 1.0) and the attention output equals v.  Only the v projection
        # (interleaved columns 2::3 of the qkv weight) is needed.
        xn = ln(x, V('attn_g'), V('attn_be'), dim)
        v = _dot(xn, attn_wv_ref[...]) + V('attn_bv')
        x = _dot(v, attn_wp_ref[...]) + V('attn_bp') + x
        x = res_square(x, j); j += 1                   # mid2
        for _ in range(num_blocks + 1):                # decoder
            x = res_dec(x, skips.pop(), j)
            j += 1
        assert j == n_blk

        h = _silu(ln(x, V('out_g'), V('out_be'), dim))
        o_ref[...] = (_dot(h, out_w_ref[...]) + V('out_b')) / sig_ref[...]

    return kernel


# --------------------------------- parameter packing ---------------------------------
def _pack_vectors(named, width):
    layout, rows = {}, []
    for i, (name, v) in enumerate(named):
        v = jnp.asarray(v, jnp.float32).reshape(-1)
        layout[name] = (i, int(v.shape[0]))
        rows.append(jnp.pad(v, (0, width - v.shape[0])))
    rows += [jnp.zeros((width,), jnp.float32)] * ((-len(rows)) % 8)  # sublane-align rows
    return jnp.stack(rows), layout


def _pack_params(params, *, input_dim, dim, num_blocks):
    blocks = list(params['enc']) + [params['mid1'], params['mid2']] + list(params['dec'])
    n_sq = num_blocks + 2
    n_blk = len(blocks)
    a = params['attn']

    named = [('cm_b1', params['cm_b1']), ('lin_in_b', params['lin_in_b'])]
    for j, blk in enumerate(blocks):
        named += [(f'b{j}_g1', blk['g1']), (f'b{j}_be1', blk['be1']),
                  (f'b{j}_g2', blk['g2']), (f'b{j}_be2', blk['be2']),
                  (f'b{j}_b2', blk['b2'])]
        if 'bsk' in blk:
            named.append((f'b{j}_bsk', blk['bsk']))
    named += [('attn_g', a['g']), ('attn_be', a['be']),
              ('attn_bv', a['bv']), ('attn_bp', a['bp']),
              ('out_g', params['out_g']), ('out_be', params['out_be']),
              ('out_b', params['out_b'])]
    width = int(-(-max(4 * dim, 2 * dim, input_dim, LANE) // LANE) * LANE)
    vecs, layout = _pack_vectors(named, width)

    # Fused + folded conditioning projection.  For each block j:
    #   cond_contrib_j = cond_map_j(silu(h) @ cm_w2 + cm_b2) + b1_j
    #                  = silu(h) @ (cm_w2 @ wc_j) + (cm_b2 @ wc_j + b1_j)
    # Blocks are packed lane-tile-aligned: block j occupies columns [j*128, j*128+dim).
    wc_pad = jnp.zeros((4 * dim, n_blk * LANE), jnp.float32)
    b_pad = jnp.zeros((1, n_blk * LANE), jnp.float32)
    for j, blk in enumerate(blocks):
        wc_pad = wc_pad.at[:, j * LANE: j * LANE + dim].set(jnp.asarray(blk['wc'], jnp.float32))
        b_pad = b_pad.at[:, j * LANE: j * LANE + dim].set(
            jnp.asarray(blk['b1'], jnp.float32)[None, :])
    w_proj = jnp.asarray(params['cm_w2'], jnp.float32) @ wc_pad          # exact cm_w2 fold
    b_proj = jnp.asarray(params['cm_b2'], jnp.float32)[None, :] @ wc_pad + b_pad

    bf = lambda w: jnp.asarray(w, jnp.float32).astype(jnp.bfloat16)
    w1_sq = jnp.stack([blocks[j]['w1'] for j in range(n_sq)])                 # (n_sq, d, d)
    w2_all = jnp.stack([blk['w2'] for blk in blocks])                         # (n_blk, d, d)
    w1_dec = jnp.stack([blocks[j]['w1'] for j in range(n_sq, n_blk)])         # (nb+1, 2d, d)
    wsk_dec = jnp.stack([blocks[j]['wsk'] for j in range(n_sq, n_blk)])       # (nb+1, 2d, d)
    mats = [bf(params['cm_w1']), bf(params['lin_in_w']), bf(w_proj),
            bf(w1_sq), bf(w2_all), bf(w1_dec), bf(wsk_dec),
            bf(a['wv']), bf(a['wp']), bf(params['out_w'])]
    return vecs, layout, jnp.asarray(b_proj, jnp.float32), mats


# ------------------------------------ wrapper ------------------------------------
def _timestep_setup(cond, dim, sigma_min, sigma_max, precond):
    if precond:
        cond = sigma_min ** (1.0 - cond) * sigma_max ** cond
    # NOTE: the PyTorch get_timestep_embedding does `timesteps *= 1000.0` IN-PLACE;
    # sigma_inp / t / cond alias the same tensor, so the final `out / sigma_inp`
    # divides by the *scaled* (x1000) value.  Reproduced faithfully here.
    t = cond * 1000.0
    sigma_inp = t
    half = dim // 2
    # TODO(synk): (half - 1) divides by zero if dim == 2; dim is even and >= 4 here.
    freqs = jnp.exp(jnp.arange(half, dtype=jnp.float32) * (-np.log(10000.0) / (half - 1)))
    emb = t[:, None] * freqs[None, :]
    temb = jnp.concatenate([jnp.sin(emb), jnp.cos(emb)], axis=-1)  # dim assumed even
    return temb, sigma_inp


def build_ldm_forward(params, *, input_dim, dim, num_blocks, sigma_min, sigma_max, precond):
    vecs, layout, b_proj, mats = _pack_params(params, input_dim=input_dim, dim=dim,
                                              num_blocks=num_blocks)
    kernel = _make_fused_kernel(layout, input_dim=input_dim, dim=dim, num_blocks=num_blocks)
    n_in = 5 + len(mats)

    @jax.jit
    def forward(x, cond):
        B = x.shape[0]
        temb, sigma_inp = _timestep_setup(cond, dim, sigma_min, sigma_max, precond)
        return pl.pallas_call(
            kernel,
            out_shape=jax.ShapeDtypeStruct((B, input_dim), jnp.float32),
            in_specs=[pl.BlockSpec(memory_space=pltpu.MemorySpace.VMEM)] * n_in,
            out_specs=pl.BlockSpec(memory_space=pltpu.MemorySpace.VMEM),
            compiler_params=pltpu.CompilerParams(vmem_limit_bytes=32 * 1024 * 1024),
        )(x, temb, sigma_inp[:, None], vecs, b_proj, *mats)

    return forward


# ------------------------------ parameter construction -----------------------------
def init_params(key, input_dim, dim, num_blocks):
    keys = iter(jax.random.split(key, 256))

    def lin(in_f, out_f, bias=True):
        # kaiming_normal init; the module's init_bias=0 makes every bias zero.
        # Layers PyTorch zero-initializes (init_weight=0: in-block cond_map, attn
        # proj_out, final out Linear) get random weights here so the synthetic test
        # exercises real data paths — forward semantics do not depend on init values.
        w = (np.sqrt(1.0 / in_f) * jax.random.normal(next(keys), (in_f, out_f))).astype(jnp.float32)
        b = jnp.zeros((out_f,), jnp.float32)
        return (w, b) if bias else w

    def ln(d):
        return jnp.ones((d,), jnp.float32), jnp.zeros((d,), jnp.float32)

    def resnet(in_ch, out_ch, cond_dim):
        g1, be1 = ln(in_ch)
        w1, b1 = lin(in_ch, out_ch)
        wc = lin(cond_dim, out_ch, bias=False)
        g2, be2 = ln(out_ch)
        w2, b2 = lin(out_ch, out_ch)
        blk = dict(g1=g1, be1=be1, w1=w1, b1=b1, wc=wc, g2=g2, be2=be2, w2=w2, b2=b2)
        if in_ch != out_ch:                     # decoder blocks: real Linear skip
            blk['wsk'], blk['bsk'] = lin(in_ch, out_ch)
        return blk                              # else: nn.Identity skip (no params)

    p = {}
    p['cm_w1'], p['cm_b1'] = lin(dim, 4 * dim)
    p['cm_w2'], p['cm_b2'] = lin(4 * dim, 4 * dim)
    p['lin_in_w'], p['lin_in_b'] = lin(input_dim, dim)
    p['enc'] = [resnet(dim, dim, 4 * dim) for _ in range(num_blocks)]
    p['mid1'] = resnet(dim, dim, 4 * dim)

    ag, abe = ln(dim)
    wqkv, bqkv = lin(dim, 3 * dim)
    wp, bp = lin(dim, dim)
    # The PyTorch qkv reshape interleaves (q, k, v) per channel -> v = columns 2::3.
    p['attn'] = dict(g=ag, be=abe, wv=wqkv[:, 2::3], bv=bqkv[2::3], wp=wp, bp=bp)

    p['mid2'] = resnet(dim, dim, 4 * dim)
    p['dec'] = [resnet(2 * dim, dim, 4 * dim) for _ in range(num_blocks + 1)]
    p['out_g'], p['out_be'] = ln(dim)
    p['out_w'], p['out_b'] = lin(dim, input_dim)
    return p


# ---------------------------- pure-JAX reference (check) ---------------------------
def _resnet_ref(x, cond, blk):
    h = _silu(_layernorm(x, blk['g1'], blk['be1']))
    h = h @ blk['w1'] + blk['b1']
    h = h + cond @ blk['wc']
    h = _silu(_layernorm(h, blk['g2'], blk['be2']))
    h = h @ blk['w2'] + blk['b2']
    skip = (x @ blk['wsk'] + blk['bsk']) if 'wsk' in blk else x
    return h + skip


def ldm_forward_ref(params, x, cond, *, dim, sigma_min, sigma_max, precond):
    temb, sigma_inp = _timestep_setup(cond, dim, sigma_min, sigma_max, precond)
    c = _silu(temb @ params['cm_w1'] + params['cm_b1']) @ params['cm_w2'] + params['cm_b2']
    x = x @ params['lin_in_w'] + params['lin_in_b']
    outputs = [x]
    for blk in params['enc']:
        x = _resnet_ref(x, c, blk)
        outputs.append(x)
    x = _resnet_ref(x, c, params['mid1'])
    a = params['attn']
    v = _layernorm(x, a['g'], a['be']) @ a['wv'] + a['bv']
    x = v @ a['wp'] + a['bp'] + x
    x = _resnet_ref(x, c, params['mid2'])
    for blk in params['dec']:
        x = _resnet_ref(jnp.concatenate([x, outputs.pop()], axis=1), c, blk)
    assert not outputs, 'Something went wrong with the blocks'
    h = _silu(_layernorm(x, params['out_g'], params['out_be']))
    return (h @ params['out_w'] + params['out_b']) / sigma_inp[:, None]


# -------------------------------------- main ---------------------------------------
if __name__ == "__main__":
    B, INPUT_DIM, DIM, NUM_BLOCKS = 4, 16, 32, 2
    SIGMA_MIN, SIGMA_MAX, PRECOND = 0.002, 80.0, True

    root = jax.random.PRNGKey(0)
    kx, kc, kp = jax.random.split(root, 3)
    x = jax.random.normal(kx, (B, INPUT_DIM), dtype=jnp.float32)
    cond = jax.random.uniform(kc, (B,), dtype=jnp.float32, minval=0.05, maxval=0.95)
    params = init_params(kp, INPUT_DIM, DIM, NUM_BLOCKS)

    forward = build_ldm_forward(params, input_dim=INPUT_DIM, dim=DIM, num_blocks=NUM_BLOCKS,
                                sigma_min=SIGMA_MIN, sigma_max=SIGMA_MAX, precond=PRECOND)
    out = jax.block_until_ready(forward(x, cond))

    ref = ldm_forward_ref(params, x, cond, dim=DIM, sigma_min=SIGMA_MIN,
                          sigma_max=SIGMA_MAX, precond=PRECOND)
    err = float(jnp.max(jnp.abs(out - ref)))
    scale = float(jnp.max(jnp.abs(ref))) + 1e-6
    assert np.isfinite(err) and err <= 5e-2 * max(1.0, scale), f"mismatch: {err} vs scale {scale}"
    print("KERNEL_OK")
</pallas_src>

<mosaic_0001>
module attributes {stable_mosaic.version = 11 : i64} {
  func.func @kernel(%arg0: memref<4x16xf32, #tpu.memory_space<vmem>>, %arg1: memref<4x32xf32, #tpu.memory_space<vmem>>, %arg2: memref<4x1xf32, #tpu.memory_space<vmem>>, %arg3: memref<48x128xf32, #tpu.memory_space<vmem>>, %arg4: memref<1x896xf32, #tpu.memory_space<vmem>>, %arg5: memref<32x128xbf16, #tpu.memory_space<vmem>>, %arg6: memref<16x32xbf16, #tpu.memory_space<vmem>>, %arg7: memref<128x896xbf16, #tpu.memory_space<vmem>>, %arg8: memref<4x32x32xbf16, #tpu.memory_space<vmem>>, %arg9: memref<7x32x32xbf16, #tpu.memory_space<vmem>>, %arg10: memref<3x64x32xbf16, #tpu.memory_space<vmem>>, %arg11: memref<3x64x32xbf16, #tpu.memory_space<vmem>>, %arg12: memref<32x32xbf16, #tpu.memory_space<vmem>>, %arg13: memref<32x32xbf16, #tpu.memory_space<vmem>>, %arg14: memref<32x16xbf16, #tpu.memory_space<vmem>>, %arg15: memref<4x16xf32, #tpu.memory_space<vmem>>) attributes {dimension_semantics = [], scalar_prefetch = 0 : i64, scratch_operands = 0 : i64, tpu.core_type = #tpu.core_type<tc>} {
    %c0 = arith.constant 0 : index
    %c0_0 = arith.constant 0 : index
    %0 = vector.load %arg1[%c0, %c0_0] : memref<4x32xf32, #tpu.memory_space<vmem>>, vector<4x32xf32>
    %c0_1 = arith.constant 0 : index
    %c0_2 = arith.constant 0 : index
    %1 = vector.load %arg5[%c0_1, %c0_2] : memref<32x128xbf16, #tpu.memory_space<vmem>>, vector<32x128xbf16>
    %2 = arith.truncf %0 : vector<4x32xf32> to vector<4x32xbf16>
    %cst = arith.constant dense<0.000000e+00> : vector<4x128xf32>
    %3 = tpu.matmul %2, %1, %cst {dimension_numbers = #tpu.dot_dimension_numbers<[1], [0], [0], [1], [0, 0, 1, 1], [], []>} : vector<4x32xbf16>, vector<32x128xbf16>, vector<4x128xf32> -> vector<4x128xf32>
    %c0_3 = arith.constant 0 : index
    %c0_4 = arith.constant 0 : index
    %4 = vector.load %arg3[%c0_3, %c0_4] : memref<48x128xf32, #tpu.memory_space<vmem>>, vector<1x128xf32>
    %5 = vector.broadcast %4 : vector<1x128xf32> to vector<4x128xf32>
    %6 = arith.addf %3, %5 : vector<4x128xf32>
    %7 = arith.negf %6 : vector<4x128xf32>
    %8 = math.exp %7 : vector<4x128xf32>
    %cst_5 = arith.constant 1.000000e+00 : f32
    %9 = vector.broadcast %cst_5 : f32 to vector<4x128xf32>
    %10 = arith.addf %9, %8 : vector<4x128xf32>
    %11 = arith.divf %9, %10 : vector<4x128xf32>
    %12 = arith.mulf %6, %11 : vector<4x128xf32>
    %c0_6 = arith.constant 0 : index
    %c0_7 = arith.constant 0 : index
    %13 = vector.load %arg7[%c0_6, %c0_7] : memref<128x896xbf16, #tpu.memory_space<vmem>>, vector<128x896xbf16>
    %14 = arith.truncf %12 : vector<4x128xf32> to vector<4x128xbf16>
    %cst_8 = arith.constant dense<0.000000e+00> : vector<4x896xf32>
    %15 = tpu.matmul %14, %13, %cst_8 {dimension_numbers = #tpu.dot_dimension_numbers<[1], [0], [0], [1], [0, 0, 1, 1], [], []>} : vector<4x128xbf16>, vector<128x896xbf16>, vector<4x896xf32> -> vector<4x896xf32>
    %c0_9 = arith.constant 0 : index
    %c0_10 = arith.constant 0 : index
    %16 = vector.load %arg4[%c0_9, %c0_10] : memref<1x896xf32, #tpu.memory_space<vmem>>, vector<1x896xf32>
    %17 = vector.broadcast %16 : vector<1x896xf32> to vector<4x896xf32>
    %18 = arith.addf %15, %17 : vector<4x896xf32>
    %c0_11 = arith.constant 0 : index
    %c0_12 = arith.constant 0 : index
    %19 = vector.load %arg0[%c0_11, %c0_12] : memref<4x16xf32, #tpu.memory_space<vmem>>, vector<4x16xf32>
    %c0_13 = arith.constant 0 : index
    %c0_14 = arith.constant 0 : index
    %20 = vector.load %arg6[%c0_13, %c0_14] : memref<16x32xbf16, #tpu.memory_space<vmem>>, vector<16x32xbf16>
    %21 = arith.truncf %19 : vector<4x16xf32> to vector<4x16xbf16>
    %cst_15 = arith.constant dense<0.000000e+00> : vector<4x32xf32>
    %22 = tpu.matmul %21, %20, %cst_15 {dimension_numbers = #tpu.dot_dimension_numbers<[1], [0], [0], [1], [0, 0, 1, 1], [], []>} : vector<4x16xbf16>, vector<16x32xbf16>, vector<4x32xf32> -> vector<4x32xf32>
    %c1 = arith.constant 1 : index
    %c0_16 = arith.constant 0 : index
    %23 = vector.load %arg3[%c1, %c0_16] : memref<48x128xf32, #tpu.memory_space<vmem>>, vector<1x128xf32>
    %24 = vector.extract_strided_slice %23 {offsets = [0, 0], sizes = [1, 32], strides = [1, 1]} : vector<1x128xf32> to vector<1x32xf32>
    %25 = vector.broadcast %24 : vector<1x32xf32> to vector<4x32xf32>
    %26 = arith.addf %22, %25 : vector<4x32xf32>
    %c2 = arith.constant 2 : index
    %c0_17 = arith.constant 0 : index
    %27 = vector.load %arg3[%c2, %c0_17] : memref<48x128xf32, #tpu.memory_space<vmem>>, vector<1x128xf32>
    %28 = vector.extract_strided_slice %27 {offsets = [0, 0], sizes = [1, 32], strides = [1, 1]} : vector<1x128xf32> to vector<1x32xf32>
    %c3 = arith.constant 3 : index
    %c0_18 = arith.constant 0 : index
    %29 = vector.load %arg3[%c3, %c0_18] : memref<48x128xf32, #tpu.memory_space<vmem>>, vector<1x128xf32>
    %30 = vector.extract_strided_slice %29 {offsets = [0, 0], sizes = [1, 32], strides = [1, 1]} : vector<1x128xf32> to vector<1x32xf32>
    %cst_19 = arith.constant dense<0.000000e+00> : vector<4xf32>
    %31 = vector.multi_reduction <add>, %26, %cst_19 [1] : vector<4x32xf32> to vector<4xf32>
    %32 = vector.shape_cast %31 : vector<4xf32> to vector<4x1xf32>
    %cst_20 = arith.constant 3.200000e+01 : f32
    %33 = vector.broadcast %cst_20 : f32 to vector<4x1xf32>
    %34 = arith.divf %32, %33 : vector<4x1xf32>
    %35 = vector.broadcast %34 : vector<4x1xf32> to vector<4x32xf32>
    %36 = arith.subf %26, %35 : vector<4x32xf32>
    %37 = arith.mulf %36, %36 : vector<4x32xf32>
    %cst_21 = arith.constant dense<0.000000e+00> : vector<4xf32>
    %38 = vector.multi_reduction <add>, %37, %cst_21 [1] : vector<4x32xf32> to vector<4xf32>
    %39 = vector.shape_cast %38 : vector<4xf32> to vector<4x1xf32>
    %cst_22 = arith.constant 3.200000e+01 : f32
    %40 = vector.broadcast %cst_22 : f32 to vector<4x1xf32>
    %41 = arith.divf %39, %40 : vector<4x1xf32>
    %cst_23 = arith.constant 9.99999974E-6 : f32
    %42 = vector.broadcast %cst_23 : f32 to vector<4x1xf32>
    %43 = arith.addf %41, %42 : vector<4x1xf32>
    %44 = math.rsqrt %43 : vector<4x1xf32>
    %45 = vector.broadcast %44 : vector<4x1xf32> to vector<4x32xf32>
    %46 = arith.mulf %36, %45 : vector<4x32xf32>
    %47 = vector.broadcast %28 : vector<1x32xf32> to vector<4x32xf32>
    %48 = arith.mulf %46, %47 : vector<4x32xf32>
    %49 = vector.broadcast %30 : vector<1x32xf32> to vector<4x32xf32>
    %50 = arith.addf %48, %49 : vector<4x32xf32>
    %51 = arith.negf %50 : vector<4x32xf32>
    %52 = math.exp %51 : vector<4x32xf32>
    %cst_24 = arith.constant 1.000000e+00 : f32
    %53 = vector.broadcast %cst_24 : f32 to vector<4x32xf32>
    %54 = arith.addf %53, %52 : vector<4x32xf32>
    %55 = arith.divf %53, %54 : vector<4x32xf32>
    %56 = arith.mulf %50, %55 : vector<4x32xf32>
    %c0_25 = arith.constant 0 : index
    %c0_26 = arith.constant 0 : index
    %c0_27 = arith.constant 0 : index
    %57 = vector.load %arg8[%c0_25, %c0_26, %c0_27] : memref<4x32x32xbf16, #tpu.memory_space<vmem>>, vector<1x32x32xbf16>
    %58 = vector.shape_cast %57 : vector<1x32x32xbf16> to vector<32x32xbf16>
    %59 = arith.truncf %56 : vector<4x32xf32> to vector<4x32xbf16>
    %cst_28 = arith.constant dense<0.000000e+00> : vector<4x32xf32>
    %60 = tpu.matmul %59, %58, %cst_28 {dimension_numbers = #tpu.dot_dimension_numbers<[1], [0], [0], [1], [0, 0, 1, 1], [], []>} : vector<4x32xbf16>, vector<32x32xbf16>, vector<4x32xf32> -> vector<4x32xf32>
    %61 = vector.extract_strided_slice %18 {offsets = [0, 0], sizes = [4, 32], strides = [1, 1]} : vector<4x896xf32> to vector<4x32xf32>
    %62 = arith.addf %60, %61 : vector<4x32xf32>
    %c4 = arith.constant 4 : index
    %c0_29 = arith.constant 0 : index
    %63 = vector.load %arg3[%c4, %c0_29] : memref<48x128xf32, #tpu.memory_space<vmem>>, vector<1x128xf32>
    %64 = vector.extract_strided_slice %63 {offsets = [0, 0], sizes = [1, 32], strides = [1, 1]} : vector<1x128xf32> to vector<1x32xf32>
    %c5 = arith.constant 5 : index
    %c0_30 = arith.constant 0 : index
    %65 = vector.load %arg3[%c5, %c0_30] : memref<48x128xf32, #tpu.memory_space<vmem>>, vector<1x128xf32>
    %66 = vector.extract_strided_slice %65 {offsets = [0, 0], sizes = [1, 32], strides = [1, 1]} : vector<1x128xf32> to vector<1x32xf32>
    %cst_31 = arith.constant dense<0.000000e+00> : vector<4xf32>
    %67 = vector.multi_reduction <add>, %62, %cst_31 [1] : vector<4x32xf32> to vector<4xf32>
    %68 = vector.shape_cast %67 : vector<4xf32> to vector<4x1xf32>
    %cst_32 = arith.constant 3.200000e+01 : f32
    %69 = vector.broadcast %cst_32 : f32 to vector<4x1xf32>
    %70 = arith.divf %68, %69 : vector<4x1xf32>
    %71 = vector.broadcast %70 : vector<4x1xf32> to vector<4x32xf32>
    %72 = arith.subf %62, %71 : vector<4x32xf32>
    %73 = arith.mulf %72, %72 : vector<4x32xf32>
    %cst_33 = arith.constant dense<0.000000e+00> : vector<4xf32>
    %74 = vector.multi_reduction <add>, %73, %cst_33 [1] : vector<4x32xf32> to vector<4xf32>
    %75 = vector.shape_cast %74 : vector<4xf32> to vector<4x1xf32>
    %cst_34 = arith.constant 3.200000e+01 : f32
    %76 = vector.broadcast %cst_34 : f32 to vector<4x1xf32>
    %77 = arith.divf %75, %76 : vector<4x1xf32>
    %cst_35 = arith.constant 9.99999974E-6 : f32
    %78 = vector.broadcast %cst_35 : f32 to vector<4x1xf32>
    %79 = arith.addf %77, %78 : vector<4x1xf32>
    %80 = math.rsqrt %79 : vector<4x1xf32>
    %81 = vector.broadcast %80 : vector<4x1xf32> to vector<4x32xf32>
    %82 = arith.mulf %72, %81 : vector<4x32xf32>
    %83 = vector.broadcast %64 : vector<1x32xf32> to vector<4x32xf32>
    %84 = arith.mulf %82, %83 : vector<4x32xf32>
    %85 = vector.broadcast %66 : vector<1x32xf32> to vector<4x32xf32>
    %86 = arith.addf %84, %85 : vector<4x32xf32>
    %87 = arith.negf %86 : vector<4x32xf32>
    %88 = math.exp %87 : vector<4x32xf32>
    %cst_36 = arith.constant 1.000000e+00 : f32
    %89 = vector.broadcast %cst_36 : f32 to vector<4x32xf32>
    %90 = arith.addf %89, %88 : vector<4x32xf32>
    %91 = arith.divf %89, %90 : vector<4x32xf32>
    %92 = arith.mulf %86, %91 : vector<4x32xf32>
    %c0_37 = arith.constant 0 : index
    %c0_38 = arith.constant 0 : index
    %c0_39 = arith.constant 0 : index
    %93 = vector.load %arg9[%c0_37, %c0_38, %c0_39] : memref<7x32x32xbf16, #tpu.memory_space<vmem>>, vector<1x32x32xbf16>
    %94 = vector.shape_cast %93 : vector<1x32x32xbf16> to vector<32x32xbf16>
    %95 = arith.truncf %92 : vector<4x32xf32> to vector<4x32xbf16>
    %cst_40 = arith.constant dense<0.000000e+00> : vector<4x32xf32>
    %96 = tpu.matmul %95, %94, %cst_40 {dimension_numbers = #tpu.dot_dimension_numbers<[1], [0], [0], [1], [0, 0, 1, 1], [], []>} : vector<4x32xbf16>, vector<32x32xbf16>, vector<4x32xf32> -> vector<4x32xf32>
    %c6 = arith.constant 6 : index
    %c0_41 = arith.constant 0 : index
    %97 = vector.load %arg3[%c6, %c0_41] : memref<48x128xf32, #tpu.memory_space<vmem>>, vector<1x128xf32>
    %98 = vector.extract_strided_slice %97 {offsets = [0, 0], sizes = [1, 32], strides = [1, 1]} : vector<1x128xf32> to vector<1x32xf32>
    %99 = vector.broadcast %98 : vector<1x32xf32> to vector<4x32xf32>
    %100 = arith.addf %96, %99 : vector<4x32xf32>
    %101 = arith.addf %100, %26 : vector<4x32xf32>
    %c7 = arith.constant 7 : index
    %c0_42 = arith.constant 0 : index
    %102 = vector.load %arg3[%c7, %c0_42] : memref<48x128xf32, #tpu.memory_space<vmem>>, vector<1x128xf32>
    %103 = vector.extract_strided_slice %102 {offsets = [0, 0], sizes = [1, 32], strides = [1, 1]} : vector<1x128xf32> to vector<1x32xf32>
    %c8 = arith.constant 8 : index
    %c0_43 = arith.constant 0 : index
    %104 = vector.load %arg3[%c8, %c0_43] : memref<48x128xf32, #tpu.memory_space<vmem>>, vector<1x128xf32>
    %105 = vector.extract_strided_slice %104 {offsets = [0, 0], sizes = [1, 32], strides = [1, 1]} : vector<1x128xf32> to vector<1x32xf32>
    %cst_44 = arith.constant dense<0.000000e+00> : vector<4xf32>
    %106 = vector.multi_reduction <add>, %101, %cst_44 [1] : vector<4x32xf32> to vector<4xf32>
    %107 = vector.shape_cast %106 : vector<4xf32> to vector<4x1xf32>
    %cst_45 = arith.constant 3.200000e+01 : f32
    %108 = vector.broadcast %cst_45 : f32 to vector<4x1xf32>
    %109 = arith.divf %107, %108 : vector<4x1xf32>
    %110 = vector.broadcast %109 : vector<4x1xf32> to vector<4x32xf32>
    %111 = arith.subf %101, %110 : vector<4x32xf32>
    %112 = arith.mulf %111, %111 : vector<4x32xf32>
    %cst_46 = arith.constant dense<0.000000e+00> : vector<4xf32>
    %113 = vector.multi_reduction <add>, %112, %cst_46 [1] : vector<4x32xf32> to vector<4xf32>
    %114 = vector.shape_cast %113 : vector<4xf32> to vector<4x1xf32>
    %cst_47 = arith.constant 3.200000e+01 : f32
    %115 = vector.broadcast %cst_47 : f32 to vector<4x1xf32>
    %116 = arith.divf %114, %115 : vector<4x1xf32>
    %cst_48 = arith.constant 9.99999974E-6 : f32
    %117 = vector.broadcast %cst_48 : f32 to vector<4x1xf32>
    %118 = arith.addf %116, %117 : vector<4x1xf32>
    %119 = math.rsqrt %118 : vector<4x1xf32>
    %120 = vector.broadcast %119 : vector<4x1xf32> to vector<4x32xf32>
    %121 = arith.mulf %111, %120 : vector<4x32xf32>
    %122 = vector.broadcast %103 : vector<1x32xf32> to vector<4x32xf32>
    %123 = arith.mulf %121, %122 : vector<4x32xf32>
    %124 = vector.broadcast %105 : vector<1x32xf32> to vector<4x32xf32>
    %125 = arith.addf %123, %124 : vector<4x32xf32>
    %126 = arith.negf %125 : vector<4x32xf32>
    %127 = math.exp %126 : vector<4x32xf32>
    %cst_49 = arith.constant 1.000000e+00 : f32
    %128 = vector.broadcast %cst_49 : f32 to vector<4x32xf32>
    %129 = arith.addf %128, %127 : vector<4x32xf32>
    %130 = arith.divf %128, %129 : vector<4x32xf32>
    %131 = arith.mulf %125, %130 : vector<4x32xf32>
    %c1_50 = arith.constant 1 : index
    %c0_51 = arith.constant 0 : index
    %c0_52 = arith.constant 0 : index
    %132 = vector.load %arg8[%c1_50, %c0_51, %c0_52] : memref<4x32x32xbf16, #tpu.memory_space<vmem>>, vector<1x32x32xbf16>
    %133 = vector.shape_cast %132 : vector<1x32x32xbf16> to vector<32x32xbf16>
    %134 = arith.truncf %131 : vector<4x32xf32> to vector<4x32xbf16>
    %cst_53 = arith.constant dense<0.000000e+00> : vector<4x32xf32>
    %135 = tpu.matmul %134, %133, %cst_53 {dimension_numbers = #tpu.dot_dimension_numbers<[1], [0], [0], [1], [0, 0, 1, 1], [], []>} : vector<4x32xbf16>, vector<32x32xbf16>, vector<4x32xf32> -> vector<4x32xf32>
    %136 = vector.extract_strided_slice %18 {offsets = [0, 128], sizes = [4, 32], strides = [1, 1]} : vector<4x896xf32> to vector<4x32xf32>
    %137 = arith.addf %135, %136 : vector<4x32xf32>
    %c9 = arith.constant 9 : index
    %c0_54 = arith.constant 0 : index
    %138 = vector.load %arg3[%c9, %c0_54] : memref<48x128xf32, #tpu.memory_space<vmem>>, vector<1x128xf32>
    %139 = vector.extract_strided_slice %138 {offsets = [0, 0], sizes = [1, 32], strides = [1, 1]} : vector<1x128xf32> to vector<1x32xf32>
    %c10 = arith.constant 10 : index
    %c0_55 = arith.constant 0 : index
    %140 = vector.load %arg3[%c10, %c0_55] : memref<48x128xf32, #tpu.memory_space<vmem>>, vector<1x128xf32>
    %141 = vector.extract_strided_slice %140 {offsets = [0, 0], sizes = [1, 32], strides = [1, 1]} : vector<1x128xf32> to vector<1x32xf32>
    %cst_56 = arith.constant dense<0.000000e+00> : vector<4xf32>
    %142 = vector.multi_reduction <add>, %137, %cst_56 [1] : vector<4x32xf32> to vector<4xf32>
    %143 = vector.shape_cast %142 : vector<4xf32> to vector<4x1xf32>
    %cst_57 = arith.constant 3.200000e+01 : f32
    %144 = vector.broadcast %cst_57 : f32 to vector<4x1xf32>
    %145 = arith.divf %143, %144 : vector<4x1xf32>
    %146 = vector.broadcast %145 : vector<4x1xf32> to vector<4x32xf32>
    %147 = arith.subf %137, %146 : vector<4x32xf32>
    %148 = arith.mulf %147, %147 : vector<4x32xf32>
    %cst_58 = arith.constant dense<0.000000e+00> : vector<4xf32>
    %149 = vector.multi_reduction <add>, %148, %cst_58 [1] : vector<4x32xf32> to vector<4xf32>
    %150 = vector.shape_cast %149 : vector<4xf32> to vector<4x1xf32>
    %cst_59 = arith.constant 3.200000e+01 : f32
    %151 = vector.broadcast %cst_59 : f32 to vector<4x1xf32>
    %152 = arith.divf %150, %151 : vector<4x1xf32>
    %cst_60 = arith.constant 9.99999974E-6 : f32
    %153 = vector.broadcast %cst_60 : f32 to vector<4x1xf32>
    %154 = arith.addf %152, %153 : vector<4x1xf32>
    %155 = math.rsqrt %154 : vector<4x1xf32>
    %156 = vector.broadcast %155 : vector<4x1xf32> to vector<4x32xf32>
    %157 = arith.mulf %147, %156 : vector<4x32xf32>
    %158 = vector.broadcast %139 : vector<1x32xf32> to vector<4x32xf32>
    %159 = arith.mulf %157, %158 : vector<4x32xf32>
    %160 = vector.broadcast %141 : vector<1x32xf32> to vector<4x32xf32>
    %161 = arith.addf %159, %160 : vector<4x32xf32>
    %162 = arith.negf %161 : vector<4x32xf32>
    %163 = math.exp %162 : vector<4x32xf32>
    %cst_61 = arith.constant 1.000000e+00 : f32
    %164 = vector.broadcast %cst_61 : f32 to vector<4x32xf32>
    %165 = arith.addf %164, %163 : vector<4x32xf32>
    %166 = arith.divf %164, %165 : vector<4x32xf32>
    %167 = arith.mulf %161, %166 : vector<4x32xf32>
    %c1_62 = arith.constant 1 : index
    %c0_63 = arith.constant 0 : index
    %c0_64 = arith.constant 0 : index
    %168 = vector.load %arg9[%c1_62, %c0_63, %c0_64] : memref<7x32x32xbf16, #tpu.memory_space<vmem>>, vector<1x32x32xbf16>
    %169 = vector.shape_cast %168 : vector<1x32x32xbf16> to vector<32x32xbf16>
    %170 = arith.truncf %167 : vector<4x32xf32> to vector<4x32xbf16>
    %cst_65 = arith.constant dense<0.000000e+00> : vector<4x32xf32>
    %171 = tpu.matmul %170, %169, %cst_65 {dimension_numbers = #tpu.dot_dimension_numbers<[1], [0], [0], [1], [0, 0, 1, 1], [], []>} : vector<4x32xbf16>, vector<32x32xbf16>, vector<4x32xf32> -> vector<4x32xf32>
    %c11 = arith.constant 11 : index
    %c0_66 = arith.constant 0 : index
    %172 = vector.load %arg3[%c11, %c0_66] : memref<48x128xf32, #tpu.memory_space<vmem>>, vector<1x128xf32>
    %173 = vector.extract_strided_slice %172 {offsets = [0, 0], sizes = [1, 32], strides = [1, 1]} : vector<1x128xf32> to vector<1x32xf32>
    %174 = vector.broadcast %173 : vector<1x32xf32> to vector<4x32xf32>
    %175 = arith.addf %171, %174 : vector<4x32xf32>
    %176 = arith.addf %175, %101 : vector<4x32xf32>
    %c12 = arith.constant 12 : index
    %c0_67 = arith.constant 0 : index
    %177 = vector.load %arg3[%c12, %c0_67] : memref<48x128xf32, #tpu.memory_space<vmem>>, vector<1x128xf32>
    %178 = vector.extract_strided_slice %177 {offsets = [0, 0], sizes = [1, 32], strides = [1, 1]} : vector<1x128xf32> to vector<1x32xf32>
    %c13 = arith.constant 13 : index
    %c0_68 = arith.constant 0 : index
    %179 = vector.load %arg3[%c13, %c0_68] : memref<48x128xf32, #tpu.memory_space<vmem>>, vector<1x128xf32>
    %180 = vector.extract_strided_slice %179 {offsets = [0, 0], sizes = [1, 32], strides = [1, 1]} : vector<1x128xf32> to vector<1x32xf32>
    %cst_69 = arith.constant dense<0.000000e+00> : vector<4xf32>
    %181 = vector.multi_reduction <add>, %176, %cst_69 [1] : vector<4x32xf32> to vector<4xf32>
    %182 = vector.shape_cast %181 : vector<4xf32> to vector<4x1xf32>
    %cst_70 = arith.constant 3.200000e+01 : f32
    %183 = vector.broadcast %cst_70 : f32 to vector<4x1xf32>
    %184 = arith.divf %182, %183 : vector<4x1xf32>
    %185 = vector.broadcast %184 : vector<4x1xf32> to vector<4x32xf32>
    %186 = arith.subf %176, %185 : vector<4x32xf32>
    %187 = arith.mulf %186, %186 : vector<4x32xf32>
    %cst_71 = arith.constant dense<0.000000e+00> : vector<4xf32>
    %188 = vector.multi_reduction <add>, %187, %cst_71 [1] : vector<4x32xf32> to vector<4xf32>
    %189 = vector.shape_cast %188 : vector<4xf32> to vector<4x1xf32>
    %cst_72 = arith.constant 3.200000e+01 : f32
    %190 = vector.broadcast %cst_72 : f32 to vector<4x1xf32>
    %191 = arith.divf %189, %190 : vector<4x1xf32>
    %cst_73 = arith.constant 9.99999974E-6 : f32
    %192 = vector.broadcast %cst_73 : f32 to vector<4x1xf32>
    %193 = arith.addf %191, %192 : vector<4x1xf32>
    %194 = math.rsqrt %193 : vector<4x1xf32>
    %195 = vector.broadcast %194 : vector<4x1xf32> to vector<4x32xf32>
    %196 = arith.mulf %186, %195 : vector<4x32xf32>
    %197 = vector.broadcast %178 : vector<1x32xf32> to vector<4x32xf32>
    %198 = arith.mulf %196, %197 : vector<4x32xf32>
    %199 = vector.broadcast %180 : vector<1x32xf32> to vector<4x32xf32>
    %200 = arith.addf %198, %199 : vector<4x32xf32>
    %201 = arith.negf %200 : vector<4x32xf32>
    %202 = math.exp %201 : vector<4x32xf32>
    %cst_74 = arith.constant 1.000000e+00 : f32
    %203 = vector.broadcast %cst_74 : f32 to vector<4x32xf32>
    %204 = arith.addf %203, %202 : vector<4x32xf32>
    %205 = arith.divf %203, %204 : vector<4x32xf32>
    %206 = arith.mulf %200, %205 : vector<4x32xf32>
    %c2_75 = arith.constant 2 : index
    %c0_76 = arith.constant 0 : index
    %c0_77 = arith.constant 0 : index
    %207 = vector.load %arg8[%c2_75, %c0_76, %c0_77] : memref<4x32x32xbf16, #tpu.memory_space<vmem>>, vector<1x32x32xbf16>
    %208 = vector.shape_cast %207 : vector<1x32x32xbf16> to vector<32x32xbf16>
    %209 = arith.truncf %206 : vector<4x32xf32> to vector<4x32xbf16>
    %cst_78 = arith.constant dense<0.000000e+00> : vector<4x32xf32>
    %210 = tpu.matmul %209, %208, %cst_78 {dimension_numbers = #tpu.dot_dimension_numbers<[1], [0], [0], [1], [0, 0, 1, 1], [], []>} : vector<4x32xbf16>, vector<32x32xbf16>, vector<4x32xf32> -> vector<4x32xf32>
    %211 = vector.extract_strided_slice %18 {offsets = [0, 256], sizes = [4, 32], strides = [1, 1]} : vector<4x896xf32> to vector<4x32xf32>
    %212 = arith.addf %210, %211 : vector<4x32xf32>
    %c14 = arith.constant 14 : index
    %c0_79 = arith.constant 0 : index
    %213 = vector.load %arg3[%c14, %c0_79] : memref<48x128xf32, #tpu.memory_space<vmem>>, vector<1x128xf32>
    %214 = vector.extract_strided_slice %213 {offsets = [0, 0], sizes = [1, 32], strides = [1, 1]} : vector<1x128xf32> to vector<1x32xf32>
    %c15 = arith.constant 15 : index
    %c0_80 = arith.constant 0 : index
    %215 = vector.load %arg3[%c15, %c0_80] : memref<48x128xf32, #tpu.memory_space<vmem>>, vector<1x128xf32>
    %216 = vector.extract_strided_slice %215 {offsets = [0, 0], sizes = [1, 32], strides = [1, 1]} : vector<1x128xf32> to vector<1x32xf32>
    %cst_81 = arith.constant dense<0.000000e+00> : vector<4xf32>
    %217 = vector.multi_reduction <add>, %212, %cst_81 [1] : vector<4x32xf32> to vector<4xf32>
    %218 = vector.shape_cast %217 : vector<4xf32> to vector<4x1xf32>
    %cst_82 = arith.constant 3.200000e+01 : f32
    %219 = vector.broadcast %cst_82 : f32 to vector<4x1xf32>
    %220 = arith.divf %218, %219 : vector<4x1xf32>
    %221 = vector.broadcast %220 : vector<4x1xf32> to vector<4x32xf32>
    %222 = arith.subf %212, %221 : vector<4x32xf32>
    %223 = arith.mulf %222, %222 : vector<4x32xf32>
    %cst_83 = arith.constant dense<0.000000e+00> : vector<4xf32>
    %224 = vector.multi_reduction <add>, %223, %cst_83 [1] : vector<4x32xf32> to vector<4xf32>
    %225 = vector.shape_cast %224 : vector<4xf32> to vector<4x1xf32>
    %cst_84 = arith.constant 3.200000e+01 : f32
    %226 = vector.broadcast %cst_84 : f32 to vector<4x1xf32>
    %227 = arith.divf %225, %226 : vector<4x1xf32>
    %cst_85 = arith.constant 9.99999974E-6 : f32
    %228 = vector.broadcast %cst_85 : f32 to vector<4x1xf32>
    %229 = arith.addf %227, %228 : vector<4x1xf32>
    %230 = math.rsqrt %229 : vector<4x1xf32>
    %231 = vector.broadcast %230 : vector<4x1xf32> to vector<4x32xf32>
    %232 = arith.mulf %222, %231 : vector<4x32xf32>
    %233 = vector.broadcast %214 : vector<1x32xf32> to vector<4x32xf32>
    %234 = arith.mulf %232, %233 : vector<4x32xf32>
    %235 = vector.broadcast %216 : vector<1x32xf32> to vector<4x32xf32>
    %236 = arith.addf %234, %235 : vector<4x32xf32>
    %237 = arith.negf %236 : vector<4x32xf32>
    %238 = math.exp %237 : vector<4x32xf32>
    %cst_86 = arith.constant 1.000000e+00 : f32
    %239 = vector.broadcast %cst_86 : f32 to vector<4x32xf32>
    %240 = arith.addf %239, %238 : vector<4x32xf32>
    %241 = arith.divf %239, %240 : vector<4x32xf32>
    %242 = arith.mulf %236, %241 : vector<4x32xf32>
    %c2_87 = arith.constant 2 : index
    %c0_88 = arith.constant 0 : index
    %c0_89 = arith.constant 0 : index
    %243 = vector.load %arg9[%c2_87, %c0_88, %c0_89] : memref<7x32x32xbf16, #tpu.memory_space<vmem>>, vector<1x32x32xbf16>
    %244 = vector.shape_cast %243 : vector<1x32x32xbf16> to vector<32x32xbf16>
    %245 = arith.truncf %242 : vector<4x32xf32> to vector<4x32xbf16>
    %cst_90 = arith.constant dense<0.000000e+00> : vector<4x32xf32>
    %246 = tpu.matmul %245, %244, %cst_90 {dimension_numbers = #tpu.dot_dimension_numbers<[1], [0], [0], [1], [0, 0, 1, 1], [], []>} : vector<4x32xbf16>, vector<32x32xbf16>, vector<4x32xf32> -> vector<4x32xf32>
    %c16 = arith.constant 16 : index
    %c0_91 = arith.constant 0 : index
    %247 = vector.load %arg3[%c16, %c0_91] : memref<48x128xf32, #tpu.memory_space<vmem>>, vector<1x128xf32>
    %248 = vector.extract_strided_slice %247 {offsets = [0, 0], sizes = [1, 32], strides = [1, 1]} : vector<1x128xf32> to vector<1x32xf32>
    %249 = vector.broadcast %248 : vector<1x32xf32> to vector<4x32xf32>
    %250 = arith.addf %246, %249 : vector<4x32xf32>
    %251 = arith.addf %250, %176 : vector<4x32xf32>
    %c40 = arith.constant 40 : index
    %c0_92 = arith.constant 0 : index
    %252 = vector.load %arg3[%c40, %c0_92] : memref<48x128xf32, #tpu.memory_space<vmem>>, vector<1x128xf32>
    %253 = vector.extract_strided_slice %252 {offsets = [0, 0], sizes = [1, 32], strides = [1, 1]} : vector<1x128xf32> to vector<1x32xf32>
    %c41 = arith.constant 41 : index
    %c0_93 = arith.constant 0 : index
    %254 = vector.load %arg3[%c41, %c0_93] : memref<48x128xf32, #tpu.memory_space<vmem>>, vector<1x128xf32>
    %255 = vector.extract_strided_slice %254 {offsets = [0, 0], sizes = [1, 32], strides = [1, 1]} : vector<1x128xf32> to vector<1x32xf32>
    %cst_94 = arith.constant dense<0.000000e+00> : vector<4xf32>
    %256 = vector.multi_reduction <add>, %251, %cst_94 [1] : vector<4x32xf32> to vector<4xf32>
    %257 = vector.shape_cast %256 : vector<4xf32> to vector<4x1xf32>
    %cst_95 = arith.constant 3.200000e+01 : f32
    %258 = vector.broadcast %cst_95 : f32 to vector<4x1xf32>
    %259 = arith.divf %257, %258 : vector<4x1xf32>
    %260 = vector.broadcast %259 : vector<4x1xf32> to vector<4x32xf32>
    %261 = arith.subf %251, %260 : vector<4x32xf32>
    %262 = arith.mulf %261, %261 : vector<4x32xf32>
    %cst_96 = arith.constant dense<0.000000e+00> : vector<4xf32>
    %263 = vector.multi_reduction <add>, %262, %cst_96 [1] : vector<4x32xf32> to vector<4xf32>
    %264 = vector.shape_cast %263 : vector<4xf32> to vector<4x1xf32>
    %cst_97 = arith.constant 3.200000e+01 : f32
    %265 = vector.broadcast %cst_97 : f32 to vector<4x1xf32>
    %266 = arith.divf %264, %265 : vector<4x1xf32>
    %cst_98 = arith.constant 9.99999974E-6 : f32
    %267 = vector.broadcast %cst_98 : f32 to vector<4x1xf32>
    %268 = arith.addf %266, %267 : vector<4x1xf32>
    %269 = math.rsqrt %268 : vector<4x1xf32>
    %270 = vector.broadcast %269 : vector<4x1xf32> to vector<4x32xf32>
    %271 = arith.mulf %261, %270 : vector<4x32xf32>
    %272 = vector.broadcast %253 : vector<1x32xf32> to vector<4x32xf32>
    %273 = arith.mulf %271, %272 : vector<4x32xf32>
    %274 = vector.broadcast %255 : vector<1x32xf32> to vector<4x32xf32>
    %275 = arith.addf %273, %274 : vector<4x32xf32>
    %c0_99 = arith.constant 0 : index
    %c0_100 = arith.constant 0 : index
    %276 = vector.load %arg12[%c0_99, %c0_100] : memref<32x32xbf16, #tpu.memory_space<vmem>>, vector<32x32xbf16>
    %277 = arith.truncf %275 : vector<4x32xf32> to vector<4x32xbf16>
    %cst_101 = arith.constant dense<0.000000e+00> : vector<4x32xf32>
    %278 = tpu.matmul %277, %276, %cst_101 {dimension_numbers = #tpu.dot_dimension_numbers<[1], [0], [0], [1], [0, 0, 1, 1], [], []>} : vector<4x32xbf16>, vector<32x32xbf16>, vector<4x32xf32> -> vector<4x32xf32>
    %c42 = arith.constant 42 : index
    %c0_102 = arith.constant 0 : index
    %279 = vector.load %arg3[%c42, %c0_102] : memref<48x128xf32, #tpu.memory_space<vmem>>, vector<1x128xf32>
    %280 = vector.extract_strided_slice %279 {offsets = [0, 0], sizes = [1, 32], strides = [1, 1]} : vector<1x128xf32> to vector<1x32xf32>
    %281 = vector.broadcast %280 : vector<1x32xf32> to vector<4x32xf32>
    %282 = arith.addf %278, %281 : vector<4x32xf32>
    %c0_103 = arith.constant 0 : index
    %c0_104 = arith.constant 0 : index
    %283 = vector.load %arg13[%c0_103, %c0_104] : memref<32x32xbf16, #tpu.memory_space<vmem>>, vector<32x32xbf16>
    %284 = arith.truncf %282 : vector<4x32xf32> to vector<4x32xbf16>
    %cst_105 = arith.constant dense<0.000000e+00> : vector<4x32xf32>
    %285 = tpu.matmul %284, %283, %cst_105 {dimension_numbers = #tpu.dot_dimension_numbers<[1], [0], [0], [1], [0, 0, 1, 1], [], []>} : vector<4x32xbf16>, vector<32x32xbf16>, vector<4x32xf32> -> vector<4x32xf32>
    %c43 = arith.constant 43 : index
    %c0_106 = arith.constant 0 : index
    %286 = vector.load %arg3[%c43, %c0_106] : memref<48x128xf32, #tpu.memory_space<vmem>>, vector<1x128xf32>
    %287 = vector.extract_strided_slice %286 {offsets = [0, 0], sizes = [1, 32], strides = [1, 1]} : vector<1x128xf32> to vector<1x32xf32>
    %288 = vector.broadcast %287 : vector<1x32xf32> to vector<4x32xf32>
    %289 = arith.addf %285, %288 : vector<4x32xf32>
    %290 = arith.addf %289, %251 : vector<4x32xf32>
    %c17 = arith.constant 17 : index
    %c0_107 = arith.constant 0 : index
    %291 = vector.load %arg3[%c17, %c0_107] : memref<48x128xf32, #tpu.memory_space<vmem>>, vector<1x128xf32>
    %292 = vector.extract_strided_slice %291 {offsets = [0, 0], sizes = [1, 32], strides = [1, 1]} : vector<1x128xf32> to vector<1x32xf32>
    %c18 = arith.constant 18 : index
    %c0_108 = arith.constant 0 : index
    %293 = vector.load %arg3[%c18, %c0_108] : memref<48x128xf32, #tpu.memory_space<vmem>>, vector<1x128xf32>
    %294 = vector.extract_strided_slice %293 {offsets = [0, 0], sizes = [1, 32], strides = [1, 1]} : vector<1x128xf32> to vector<1x32xf32>
    %cst_109 = arith.constant dense<0.000000e+00> : vector<4xf32>
    %295 = vector.multi_reduction <add>, %290, %cst_109 [1] : vector<4x32xf32> to vector<4xf32>
    %296 = vector.shape_cast %295 : vector<4xf32> to vector<4x1xf32>
    %cst_110 = arith.constant 3.200000e+01 : f32
    %297 = vector.broadcast %cst_110 : f32 to vector<4x1xf32>
    %298 = arith.divf %296, %297 : vector<4x1xf32>
    %299 = vector.broadcast %298 : vector<4x1xf32> to vector<4x32xf32>
    %300 = arith.subf %290, %299 : vector<4x32xf32>
    %301 = arith.mulf %300, %300 : vector<4x32xf32>
    %cst_111 = arith.constant dense<0.000000e+00> : vector<4xf32>
    %302 = vector.multi_reduction <add>, %301, %cst_111 [1] : vector<4x32xf32> to vector<4xf32>
    %303 = vector.shape_cast %302 : vector<4xf32> to vector<4x1xf32>
    %cst_112 = arith.constant 3.200000e+01 : f32
    %304 = vector.broadcast %cst_112 : f32 to vector<4x1xf32>
    %305 = arith.divf %303, %304 : vector<4x1xf32>
    %cst_113 = arith.constant 9.99999974E-6 : f32
    %306 = vector.broadcast %cst_113 : f32 to vector<4x1xf32>
    %307 = arith.addf %305, %306 : vector<4x1xf32>
    %308 = math.rsqrt %307 : vector<4x1xf32>
    %309 = vector.broadcast %308 : vector<4x1xf32> to vector<4x32xf32>
    %310 = arith.mulf %300, %309 : vector<4x32xf32>
    %311 = vector.broadcast %292 : vector<1x32xf32> to vector<4x32xf32>
    %312 = arith.mulf %310, %311 : vector<4x32xf32>
    %313 = vector.broadcast %294 : vector<1x32xf32> to vector<4x32xf32>
    %314 = arith.addf %312, %313 : vector<4x32xf32>
    %315 = arith.negf %314 : vector<4x32xf32>
    %316 = math.exp %315 : vector<4x32xf32>
    %cst_114 = arith.constant 1.000000e+00 : f32
    %317 = vector.broadcast %cst_114 : f32 to vector<4x32xf32>
    %318 = arith.addf %317, %316 : vector<4x32xf32>
    %319 = arith.divf %317, %318 : vector<4x32xf32>
    %320 = arith.mulf %314, %319 : vector<4x32xf32>
    %c3_115 = arith.constant 3 : index
    %c0_116 = arith.constant 0 : index
    %c0_117 = arith.constant 0 : index
    %321 = vector.load %arg8[%c3_115, %c0_116, %c0_117] : memref<4x32x32xbf16, #tpu.memory_space<vmem>>, vector<1x32x32xbf16>
    %322 = vector.shape_cast %321 : vector<1x32x32xbf16> to vector<32x32xbf16>
    %323 = arith.truncf %320 : vector<4x32xf32> to vector<4x32xbf16>
    %cst_118 = arith.constant dense<0.000000e+00> : vector<4x32xf32>
    %324 = tpu.matmul %323, %322, %cst_118 {dimension_numbers = #tpu.dot_dimension_numbers<[1], [0], [0], [1], [0, 0, 1, 1], [], []>} : vector<4x32xbf16>, vector<32x32xbf16>, vector<4x32xf32> -> vector<4x32xf32>
    %325 = vector.extract_strided_slice %18 {offsets = [0, 384], sizes = [4, 32], strides = [1, 1]} : vector<4x896xf32> to vector<4x32xf32>
    %326 = arith.addf %324, %325 : vector<4x32xf32>
    %c19 = arith.constant 19 : index
    %c0_119 = arith.constant 0 : index
    %327 = vector.load %arg3[%c19, %c0_119] : memref<48x128xf32, #tpu.memory_space<vmem>>, vector<1x128xf32>
    %328 = vector.extract_strided_slice %327 {offsets = [0, 0], sizes = [1, 32], strides = [1, 1]} : vector<1x128xf32> to vector<1x32xf32>
    %c20 = arith.constant 20 : index
    %c0_120 = arith.constant 0 : index
    %329 = vector.load %arg3[%c20, %c0_120] : memref<48x128xf32, #tpu.memory_space<vmem>>, vector<1x128xf32>
    %330 = vector.extract_strided_slice %329 {offsets = [0, 0], sizes = [1, 32], strides = [1, 1]} : vector<1x128xf32> to vector<1x32xf32>
    %cst_121 = arith.constant dense<0.000000e+00> : vector<4xf32>
    %331 = vector.multi_reduction <add>, %326, %cst_121 [1] : vector<4x32xf32> to vector<4xf32>
    %332 = vector.shape_cast %331 : vector<4xf32> to vector<4x1xf32>
    %cst_122 = arith.constant 3.200000e+01 : f32
    %333 = vector.broadcast %cst_122 : f32 to vector<4x1xf32>
    %334 = arith.divf %332, %333 : vector<4x1xf32>
    %335 = vector.broadcast %334 : vector<4x1xf32> to vector<4x32xf32>
    %336 = arith.subf %326, %335 : vector<4x32xf32>
    %337 = arith.mulf %336, %336 : vector<4x32xf32>
    %cst_123 = arith.constant dense<0.000000e+00> : vector<4xf32>
    %338 = vector.multi_reduction <add>, %337, %cst_123 [1] : vector<4x32xf32> to vector<4xf32>
    %339 = vector.shape_cast %338 : vector<4xf32> to vector<4x1xf32>
    %cst_124 = arith.constant 3.200000e+01 : f32
    %340 = vector.broadcast %cst_124 : f32 to vector<4x1xf32>
    %341 = arith.divf %339, %340 : vector<4x1xf32>
    %cst_125 = arith.constant 9.99999974E-6 : f32
    %342 = vector.broadcast %cst_125 : f32 to vector<4x1xf32>
    %343 = arith.addf %341, %342 : vector<4x1xf32>
    %344 = math.rsqrt %343 : vector<4x1xf32>
    %345 = vector.broadcast %344 : vector<4x1xf32> to vector<4x32xf32>
    %346 = arith.mulf %336, %345 : vector<4x32xf32>
    %347 = vector.broadcast %328 : vector<1x32xf32> to vector<4x32xf32>
    %348 = arith.mulf %346, %347 : vector<4x32xf32>
    %349 = vector.broadcast %330 : vector<1x32xf32> to vector<4x32xf32>
    %350 = arith.addf %348, %349 : vector<4x32xf32>
    %351 = arith.negf %350 : vector<4x32xf32>
    %352 = math.exp %351 : vector<4x32xf32>
    %cst_126 = arith.constant 1.000000e+00 : f32
    %353 = vector.broadcast %cst_126 : f32 to vector<4x32xf32>
    %354 = arith.addf %353, %352 : vector<4x32xf32>
    %355 = arith.divf %353, %354 : vector<4x32xf32>
    %356 = arith.mulf %350, %355 : vector<4x32xf32>
    %c3_127 = arith.constant 3 : index
    %c0_128 = arith.constant 0 : index
    %c0_129 = arith.constant 0 : index
    %357 = vector.load %arg9[%c3_127, %c0_128, %c0_129] : memref<7x32x32xbf16, #tpu.memory_space<vmem>>, vector<1x32x32xbf16>
    %358 = vector.shape_cast %357 : vector<1x32x32xbf16> to vector<32x32xbf16>
    %359 = arith.truncf %356 : vector<4x32xf32> to vector<4x32xbf16>
    %cst_130 = arith.constant dense<0.000000e+00> : vector<4x32xf32>
    %360 = tpu.matmul %359, %358, %cst_130 {dimension_numbers = #tpu.dot_dimension_numbers<[1], [0], [0], [1], [0, 0, 1, 1], [], []>} : vector<4x32xbf16>, vector<32x32xbf16>, vector<4x32xf32> -> vector<4x32xf32>
    %c21 = arith.constant 21 : index
    %c0_131 = arith.constant 0 : index
    %361 = vector.load %arg3[%c21, %c0_131] : memref<48x128xf32, #tpu.memory_space<vmem>>, vector<1x128xf32>
    %362 = vector.extract_strided_slice %361 {offsets = [0, 0], sizes = [1, 32], strides = [1, 1]} : vector<1x128xf32> to vector<1x32xf32>
    %363 = vector.broadcast %362 : vector<1x32xf32> to vector<4x32xf32>
    %364 = arith.addf %360, %363 : vector<4x32xf32>
    %365 = arith.addf %364, %290 : vector<4x32xf32>
    %366 = tpu.concatenate %365, %176 in 1 : vector<4x32xf32>, vector<4x32xf32> -> vector<4x64xf32>
    %c22 = arith.constant 22 : index
    %c0_132 = arith.constant 0 : index
    %367 = vector.load %arg3[%c22, %c0_132] : memref<48x128xf32, #tpu.memory_space<vmem>>, vector<1x128xf32>
    %368 = vector.extract_strided_slice %367 {offsets = [0, 0], sizes = [1, 64], strides = [1, 1]} : vector<1x128xf32> to vector<1x64xf32>
    %c23 = arith.constant 23 : index
    %c0_133 = arith.constant 0 : index
    %369 = vector.load %arg3[%c23, %c0_133] : memref<48x128xf32, #tpu.memory_space<vmem>>, vector<1x128xf32>
    %370 = vector.extract_strided_slice %369 {offsets = [0, 0], sizes = [1, 64], strides = [1, 1]} : vector<1x128xf32> to vector<1x64xf32>
    %cst_134 = arith.constant dense<0.000000e+00> : vector<4xf32>
    %371 = vector.multi_reduction <add>, %366, %cst_134 [1] : vector<4x64xf32> to vector<4xf32>
    %372 = vector.shape_cast %371 : vector<4xf32> to vector<4x1xf32>
    %cst_135 = arith.constant 6.400000e+01 : f32
    %373 = vector.broadcast %cst_135 : f32 to vector<4x1xf32>
    %374 = arith.divf %372, %373 : vector<4x1xf32>
    %375 = vector.broadcast %374 : vector<4x1xf32> to vector<4x64xf32>
    %376 = arith.subf %366, %375 : vector<4x64xf32>
    %377 = arith.mulf %376, %376 : vector<4x64xf32>
    %cst_136 = arith.constant dense<0.000000e+00> : vector<4xf32>
    %378 = vector.multi_reduction <add>, %377, %cst_136 [1] : vector<4x64xf32> to vector<4xf32>
    %379 = vector.shape_cast %378 : vector<4xf32> to vector<4x1xf32>
    %cst_137 = arith.constant 6.400000e+01 : f32
    %380 = vector.broadcast %cst_137 : f32 to vector<4x1xf32>
    %381 = arith.divf %379, %380 : vector<4x1xf32>
    %cst_138 = arith.constant 9.99999974E-6 : f32
    %382 = vector.broadcast %cst_138 : f32 to vector<4x1xf32>
    %383 = arith.addf %381, %382 : vector<4x1xf32>
    %384 = math.rsqrt %383 : vector<4x1xf32>
    %385 = vector.broadcast %384 : vector<4x1xf32> to vector<4x64xf32>
    %386 = arith.mulf %376, %385 : vector<4x64xf32>
    %387 = vector.broadcast %368 : vector<1x64xf32> to vector<4x64xf32>
    %388 = arith.mulf %386, %387 : vector<4x64xf32>
    %389 = vector.broadcast %370 : vector<1x64xf32> to vector<4x64xf32>
    %390 = arith.addf %388, %389 : vector<4x64xf32>
    %391 = arith.negf %390 : vector<4x64xf32>
    %392 = math.exp %391 : vector<4x64xf32>
    %cst_139 = arith.constant 1.000000e+00 : f32
    %393 = vector.broadcast %cst_139 : f32 to vector<4x64xf32>
    %394 = arith.addf %393, %392 : vector<4x64xf32>
    %395 = arith.divf %393, %394 : vector<4x64xf32>
    %396 = arith.mulf %390, %395 : vector<4x64xf32>
    %c0_140 = arith.constant 0 : index
    %c0_141 = arith.constant 0 : index
    %c0_142 = arith.constant 0 : index
    %397 = vector.load %arg10[%c0_140, %c0_141, %c0_142] : memref<3x64x32xbf16, #tpu.memory_space<vmem>>, vector<1x64x32xbf16>
    %398 = vector.shape_cast %397 : vector<1x64x32xbf16> to vector<64x32xbf16>
    %399 = arith.truncf %396 : vector<4x64xf32> to vector<4x64xbf16>
    %cst_143 = arith.constant dense<0.000000e+00> : vector<4x32xf32>
    %400 = tpu.matmul %399, %398, %cst_143 {dimension_numbers = #tpu.dot_dimension_numbers<[1], [0], [0], [1], [0, 0, 1, 1], [], []>} : vector<4x64xbf16>, vector<64x32xbf16>, vector<4x32xf32> -> vector<4x32xf32>
    %401 = vector.extract_strided_slice %18 {offsets = [0, 512], sizes = [4, 32], strides = [1, 1]} : vector<4x896xf32> to vector<4x32xf32>
    %402 = arith.addf %400, %401 : vector<4x32xf32>
    %c24 = arith.constant 24 : index
    %c0_144 = arith.constant 0 : index
    %403 = vector.load %arg3[%c24, %c0_144] : memref<48x128xf32, #tpu.memory_space<vmem>>, vector<1x128xf32>
    %404 = vector.extract_strided_slice %403 {offsets = [0, 0], sizes = [1, 32], strides = [1, 1]} : vector<1x128xf32> to vector<1x32xf32>
    %c25 = arith.constant 25 : index
    %c0_145 = arith.constant 0 : index
    %405 = vector.load %arg3[%c25, %c0_145] : memref<48x128xf32, #tpu.memory_space<vmem>>, vector<1x128xf32>
    %406 = vector.extract_strided_slice %405 {offsets = [0, 0], sizes = [1, 32], strides = [1, 1]} : vector<1x128xf32> to vector<1x32xf32>
    %cst_146 = arith.constant dense<0.000000e+00> : vector<4xf32>
    %407 = vector.multi_reduction <add>, %402, %cst_146 [1] : vector<4x32xf32> to vector<4xf32>
    %408 = vector.shape_cast %407 : vector<4xf32> to vector<4x1xf32>
    %cst_147 = arith.constant 3.200000e+01 : f32
    %409 = vector.broadcast %cst_147 : f32 to vector<4x1xf32>
    %410 = arith.divf %408, %409 : vector<4x1xf32>
    %411 = vector.broadcast %410 : vector<4x1xf32> to vector<4x32xf32>
    %412 = arith.subf %402, %411 : vector<4x32xf32>
    %413 = arith.mulf %412, %412 : vector<4x32xf32>
    %cst_148 = arith.constant dense<0.000000e+00> : vector<4xf32>
    %414 = vector.multi_reduction <add>, %413, %cst_148 [1] : vector<4x32xf32> to vector<4xf32>
    %415 = vector.shape_cast %414 : vector<4xf32> to vector<4x1xf32>
    %cst_149 = arith.constant 3.200000e+01 : f32
    %416 = vector.broadcast %cst_149 : f32 to vector<4x1xf32>
    %417 = arith.divf %415, %416 : vector<4x1xf32>
    %cst_150 = arith.constant 9.99999974E-6 : f32
    %418 = vector.broadcast %cst_150 : f32 to vector<4x1xf32>
    %419 = arith.addf %417, %418 : vector<4x1xf32>
    %420 = math.rsqrt %419 : vector<4x1xf32>
    %421 = vector.broadcast %420 : vector<4x1xf32> to vector<4x32xf32>
    %422 = arith.mulf %412, %421 : vector<4x32xf32>
    %423 = vector.broadcast %404 : vector<1x32xf32> to vector<4x32xf32>
    %424 = arith.mulf %422, %423 : vector<4x32xf32>
    %425 = vector.broadcast %406 : vector<1x32xf32> to vector<4x32xf32>
    %426 = arith.addf %424, %425 : vector<4x32xf32>
    %427 = arith.negf %426 : vector<4x32xf32>
    %428 = math.exp %427 : vector<4x32xf32>
    %cst_151 = arith.constant 1.000000e+00 : f32
    %429 = vector.broadcast %cst_151 : f32 to vector<4x32xf32>
    %430 = arith.addf %429, %428 : vector<4x32xf32>
    %431 = arith.divf %429, %430 : vector<4x32xf32>
    %432 = arith.mulf %426, %431 : vector<4x32xf32>
    %c4_152 = arith.constant 4 : index
    %c0_153 = arith.constant 0 : index
    %c0_154 = arith.constant 0 : index
    %433 = vector.load %arg9[%c4_152, %c0_153, %c0_154] : memref<7x32x32xbf16, #tpu.memory_space<vmem>>, vector<1x32x32xbf16>
    %434 = vector.shape_cast %433 : vector<1x32x32xbf16> to vector<32x32xbf16>
    %435 = arith.truncf %432 : vector<4x32xf32> to vector<4x32xbf16>
    %cst_155 = arith.constant dense<0.000000e+00> : vector<4x32xf32>
    %436 = tpu.matmul %435, %434, %cst_155 {dimension_numbers = #tpu.dot_dimension_numbers<[1], [0], [0], [1], [0, 0, 1, 1], [], []>} : vector<4x32xbf16>, vector<32x32xbf16>, vector<4x32xf32> -> vector<4x32xf32>
    %c26 = arith.constant 26 : index
    %c0_156 = arith.constant 0 : index
    %437 = vector.load %arg3[%c26, %c0_156] : memref<48x128xf32, #tpu.memory_space<vmem>>, vector<1x128xf32>
    %438 = vector.extract_strided_slice %437 {offsets = [0, 0], sizes = [1, 32], strides = [1, 1]} : vector<1x128xf32> to vector<1x32xf32>
    %439 = vector.broadcast %438 : vector<1x32xf32> to vector<4x32xf32>
    %440 = arith.addf %436, %439 : vector<4x32xf32>
    %c0_157 = arith.constant 0 : index
    %c0_158 = arith.constant 0 : index
    %c0_159 = arith.constant 0 : index
    %441 = vector.load %arg11[%c0_157, %c0_158, %c0_159] : memref<3x64x32xbf16, #tpu.memory_space<vmem>>, vector<1x64x32xbf16>
    %442 = vector.shape_cast %441 : vector<1x64x32xbf16> to vector<64x32xbf16>
    %443 = arith.truncf %366 : vector<4x64xf32> to vector<4x64xbf16>
    %cst_160 = arith.constant dense<0.000000e+00> : vector<4x32xf32>
    %444 = tpu.matmul %443, %442, %cst_160 {dimension_numbers = #tpu.dot_dimension_numbers<[1], [0], [0], [1], [0, 0, 1, 1], [], []>} : vector<4x64xbf16>, vector<64x32xbf16>, vector<4x32xf32> -> vector<4x32xf32>
    %445 = arith.addf %440, %444 : vector<4x32xf32>
    %c27 = arith.constant 27 : index
    %c0_161 = arith.constant 0 : index
    %446 = vector.load %arg3[%c27, %c0_161] : memref<48x128xf32, #tpu.memory_space<vmem>>, vector<1x128xf32>
    %447 = vector.extract_strided_slice %446 {offsets = [0, 0], sizes = [1, 32], strides = [1, 1]} : vector<1x128xf32> to vector<1x32xf32>
    %448 = vector.broadcast %447 : vector<1x32xf32> to vector<4x32xf32>
    %449 = arith.addf %445, %448 : vector<4x32xf32>
    %450 = tpu.concatenate %449, %101 in 1 : vector<4x32xf32>, vector<4x32xf32> -> vector<4x64xf32>
    %c28 = arith.constant 28 : index
    %c0_162 = arith.constant 0 : index
    %451 = vector.load %arg3[%c28, %c0_162] : memref<48x128xf32, #tpu.memory_space<vmem>>, vector<1x128xf32>
    %452 = vector.extract_strided_slice %451 {offsets = [0, 0], sizes = [1, 64], strides = [1, 1]} : vector<1x128xf32> to vector<1x64xf32>
    %c29 = arith.constant 29 : index
    %c0_163 = arith.constant 0 : index
    %453 = vector.load %arg3[%c29, %c0_163] : memref<48x128xf32, #tpu.memory_space<vmem>>, vector<1x128xf32>
    %454 = vector.extract_strided_slice %453 {offsets = [0, 0], sizes = [1, 64], strides = [1, 1]} : vector<1x128xf32> to vector<1x64xf32>
    %cst_164 = arith.constant dense<0.000000e+00> : vector<4xf32>
    %455 = vector.multi_reduction <add>, %450, %cst_164 [1] : vector<4x64xf32> to vector<4xf32>
    %456 = vector.shape_cast %455 : vector<4xf32> to vector<4x1xf32>
    %cst_165 = arith.constant 6.400000e+01 : f32
    %457 = vector.broadcast %cst_165 : f32 to vector<4x1xf32>
    %458 = arith.divf %456, %457 : vector<4x1xf32>
    %459 = vector.broadcast %458 : vector<4x1xf32> to vector<4x64xf32>
    %460 = arith.subf %450, %459 : vector<4x64xf32>
    %461 = arith.mulf %460, %460 : vector<4x64xf32>
    %cst_166 = arith.constant dense<0.000000e+00> : vector<4xf32>
    %462 = vector.multi_reduction <add>, %461, %cst_166 [1] : vector<4x64xf32> to vector<4xf32>
    %463 = vector.shape_cast %462 : vector<4xf32> to vector<4x1xf32>
    %cst_167 = arith.constant 6.400000e+01 : f32
    %464 = vector.broadcast %cst_167 : f32 to vector<4x1xf32>
    %465 = arith.divf %463, %464 : vector<4x1xf32>
    %cst_168 = arith.constant 9.99999974E-6 : f32
    %466 = vector.broadcast %cst_168 : f32 to vector<4x1xf32>
    %467 = arith.addf %465, %466 : vector<4x1xf32>
    %468 = math.rsqrt %467 : vector<4x1xf32>
    %469 = vector.broadcast %468 : vector<4x1xf32> to vector<4x64xf32>
    %470 = arith.mulf %460, %469 : vector<4x64xf32>
    %471 = vector.broadcast %452 : vector<1x64xf32> to vector<4x64xf32>
    %472 = arith.mulf %470, %471 : vector<4x64xf32>
    %473 = vector.broadcast %454 : vector<1x64xf32> to vector<4x64xf32>
    %474 = arith.addf %472, %473 : vector<4x64xf32>
    %475 = arith.negf %474 : vector<4x64xf32>
    %476 = math.exp %475 : vector<4x64xf32>
    %cst_169 = arith.constant 1.000000e+00 : f32
    %477 = vector.broadcast %cst_169 : f32 to vector<4x64xf32>
    %478 = arith.addf %477, %476 : vector<4x64xf32>
    %479 = arith.divf %477, %478 : vector<4x64xf32>
    %480 = arith.mulf %474, %479 : vector<4x64xf32>
    %c1_170 = arith.constant 1 : index
    %c0_171 = arith.constant 0 : index
    %c0_172 = arith.constant 0 : index
    %481 = vector.load %arg10[%c1_170, %c0_171, %c0_172] : memref<3x64x32xbf16, #tpu.memory_space<vmem>>, vector<1x64x32xbf16>
    %482 = vector.shape_cast %481 : vector<1x64x32xbf16> to vector<64x32xbf16>
    %483 = arith.truncf %480 : vector<4x64xf32> to vector<4x64xbf16>
    %cst_173 = arith.constant dense<0.000000e+00> : vector<4x32xf32>
    %484 = tpu.matmul %483, %482, %cst_173 {dimension_numbers = #tpu.dot_dimension_numbers<[1], [0], [0], [1], [0, 0, 1, 1], [], []>} : vector<4x64xbf16>, vector<64x32xbf16>, vector<4x32xf32> -> vector<4x32xf32>
    %485 = vector.extract_strided_slice %18 {offsets = [0, 640], sizes = [4, 32], strides = [1, 1]} : vector<4x896xf32> to vector<4x32xf32>
    %486 = arith.addf %484, %485 : vector<4x32xf32>
    %c30 = arith.constant 30 : index
    %c0_174 = arith.constant 0 : index
    %487 = vector.load %arg3[%c30, %c0_174] : memref<48x128xf32, #tpu.memory_space<vmem>>, vector<1x128xf32>
    %488 = vector.extract_strided_slice %487 {offsets = [0, 0], sizes = [1, 32], strides = [1, 1]} : vector<1x128xf32> to vector<1x32xf32>
    %c31 = arith.constant 31 : index
    %c0_175 = arith.constant 0 : index
    %489 = vector.load %arg3[%c31, %c0_175] : memref<48x128xf32, #tpu.memory_space<vmem>>, vector<1x128xf32>
    %490 = vector.extract_strided_slice %489 {offsets = [0, 0], sizes = [1, 32], strides = [1, 1]} : vector<1x128xf32> to vector<1x32xf32>
    %cst_176 = arith.constant dense<0.000000e+00> : vector<4xf32>
    %491 = vector.multi_reduction <add>, %486, %cst_176 [1] : vector<4x32xf32> to vector<4xf32>
    %492 = vector.shape_cast %491 : vector<4xf32> to vector<4x1xf32>
    %cst_177 = arith.constant 3.200000e+01 : f32
    %493 = vector.broadcast %cst_177 : f32 to vector<4x1xf32>
    %494 = arith.divf %492, %493 : vector<4x1xf32>
    %495 = vector.broadcast %494 : vector<4x1xf32> to vector<4x32xf32>
    %496 = arith.subf %486, %495 : vector<4x32xf32>
    %497 = arith.mulf %496, %496 : vector<4x32xf32>
    %cst_178 = arith.constant dense<0.000000e+00> : vector<4xf32>
    %498 = vector.multi_reduction <add>, %497, %cst_178 [1] : vector<4x32xf32> to vector<4xf32>
    %499 = vector.shape_cast %498 : vector<4xf32> to vector<4x1xf32>
    %cst_179 = arith.constant 3.200000e+01 : f32
    %500 = vector.broadcast %cst_179 : f32 to vector<4x1xf32>
    %501 = arith.divf %499, %500 : vector<4x1xf32>
    %cst_180 = arith.constant 9.99999974E-6 : f32
    %502 = vector.broadcast %cst_180 : f32 to vector<4x1xf32>
    %503 = arith.addf %501, %502 : vector<4x1xf32>
    %504 = math.rsqrt %503 : vector<4x1xf32>
    %505 = vector.broadcast %504 : vector<4x1xf32> to vector<4x32xf32>
    %506 = arith.mulf %496, %505 : vector<4x32xf32>
    %507 = vector.broadcast %488 : vector<1x32xf32> to vector<4x32xf32>
    %508 = arith.mulf %506, %507 : vector<4x32xf32>
    %509 = vector.broadcast %490 : vector<1x32xf32> to vector<4x32xf32>
    %510 = arith.addf %508, %509 : vector<4x32xf32>
    %511 = arith.negf %510 : vector<4x32xf32>
    %512 = math.exp %511 : vector<4x32xf32>
    %cst_181 = arith.constant 1.000000e+00 : f32
    %513 = vector.broadcast %cst_181 : f32 to vector<4x32xf32>
    %514 = arith.addf %513, %512 : vector<4x32xf32>
    %515 = arith.divf %513, %514 : vector<4x32xf32>
    %516 = arith.mulf %510, %515 : vector<4x32xf32>
    %c5_182 = arith.constant 5 : index
    %c0_183 = arith.constant 0 : index
    %c0_184 = arith.constant 0 : index
    %517 = vector.load %arg9[%c5_182, %c0_183, %c0_184] : memref<7x32x32xbf16, #tpu.memory_space<vmem>>, vector<1x32x32xbf16>
    %518 = vector.shape_cast %517 : vector<1x32x32xbf16> to vector<32x32xbf16>
    %519 = arith.truncf %516 : vector<4x32xf32> to vector<4x32xbf16>
    %cst_185 = arith.constant dense<0.000000e+00> : vector<4x32xf32>
    %520 = tpu.matmul %519, %518, %cst_185 {dimension_numbers = #tpu.dot_dimension_numbers<[1], [0], [0], [1], [0, 0, 1, 1], [], []>} : vector<4x32xbf16>, vector<32x32xbf16>, vector<4x32xf32> -> vector<4x32xf32>
    %c32 = arith.constant 32 : index
    %c0_186 = arith.constant 0 : index
    %521 = vector.load %arg3[%c32, %c0_186] : memref<48x128xf32, #tpu.memory_space<vmem>>, vector<1x128xf32>
    %522 = vector.extract_strided_slice %521 {offsets = [0, 0], sizes = [1, 32], strides = [1, 1]} : vector<1x128xf32> to vector<1x32xf32>
    %523 = vector.broadcast %522 : vector<1x32xf32> to vector<4x32xf32>
    %524 = arith.addf %520, %523 : vector<4x32xf32>
    %c1_187 = arith.constant 1 : index
    %c0_188 = arith.constant 0 : index
    %c0_189 = arith.constant 0 : index
    %525 = vector.load %arg11[%c1_187, %c0_188, %c0_189] : memref<3x64x32xbf16, #tpu.memory_space<vmem>>, vector<1x64x32xbf16>
    %526 = vector.shape_cast %525 : vector<1x64x32xbf16> to vector<64x32xbf16>
    %527 = arith.truncf %450 : vector<4x64xf32> to vector<4x64xbf16>
    %cst_190 = arith.constant dense<0.000000e+00> : vector<4x32xf32>
    %528 = tpu.matmul %527, %526, %cst_190 {dimension_numbers = #tpu.dot_dimension_numbers<[1], [0], [0], [1], [0, 0, 1, 1], [], []>} : vector<4x64xbf16>, vector<64x32xbf16>, vector<4x32xf32> -> vector<4x32xf32>
    %529 = arith.addf %524, %528 : vector<4x32xf32>
    %c33 = arith.constant 33 : index
    %c0_191 = arith.constant 0 : index
    %530 = vector.load %arg3[%c33, %c0_191] : memref<48x128xf32, #tpu.memory_space<vmem>>, vector<1x128xf32>
    %531 = vector.extract_strided_slice %530 {offsets = [0, 0], sizes = [1, 32], strides = [1, 1]} : vector<1x128xf32> to vector<1x32xf32>
    %532 = vector.broadcast %531 : vector<1x32xf32> to vector<4x32xf32>
    %533 = arith.addf %529, %532 : vector<4x32xf32>
    %534 = tpu.concatenate %533, %26 in 1 : vector<4x32xf32>, vector<4x32xf32> -> vector<4x64xf32>
    %c34 = arith.constant 34 : index
    %c0_192 = arith.constant 0 : index
    %535 = vector.load %arg3[%c34, %c0_192] : memref<48x128xf32, #tpu.memory_space<vmem>>, vector<1x128xf32>
    %536 = vector.extract_strided_slice %535 {offsets = [0, 0], sizes = [1, 64], strides = [1, 1]} : vector<1x128xf32> to vector<1x64xf32>
    %c35 = arith.constant 35 : index
    %c0_193 = arith.constant 0 : index
    %537 = vector.load %arg3[%c35, %c0_193] : memref<48x128xf32, #tpu.memory_space<vmem>>, vector<1x128xf32>
    %538 = vector.extract_strided_slice %537 {offsets = [0, 0], sizes = [1, 64], strides = [1, 1]} : vector<1x128xf32> to vector<1x64xf32>
    %cst_194 = arith.constant dense<0.000000e+00> : vector<4xf32>
    %539 = vector.multi_reduction <add>, %534, %cst_194 [1] : vector<4x64xf32> to vector<4xf32>
    %540 = vector.shape_cast %539 : vector<4xf32> to vector<4x1xf32>
    %cst_195 = arith.constant 6.400000e+01 : f32
    %541 = vector.broadcast %cst_195 : f32 to vector<4x1xf32>
    %542 = arith.divf %540, %541 : vector<4x1xf32>
    %543 = vector.broadcast %542 : vector<4x1xf32> to vector<4x64xf32>
    %544 = arith.subf %534, %543 : vector<4x64xf32>
    %545 = arith.mulf %544, %544 : vector<4x64xf32>
    %cst_196 = arith.constant dense<0.000000e+00> : vector<4xf32>
    %546 = vector.multi_reduction <add>, %545, %cst_196 [1] : vector<4x64xf32> to vector<4xf32>
    %547 = vector.shape_cast %546 : vector<4xf32> to vector<4x1xf32>
    %cst_197 = arith.constant 6.400000e+01 : f32
    %548 = vector.broadcast %cst_197 : f32 to vector<4x1xf32>
    %549 = arith.divf %547, %548 : vector<4x1xf32>
    %cst_198 = arith.constant 9.99999974E-6 : f32
    %550 = vector.broadcast %cst_198 : f32 to vector<4x1xf32>
    %551 = arith.addf %549, %550 : vector<4x1xf32>
    %552 = math.rsqrt %551 : vector<4x1xf32>
    %553 = vector.broadcast %552 : vector<4x1xf32> to vector<4x64xf32>
    %554 = arith.mulf %544, %553 : vector<4x64xf32>
    %555 = vector.broadcast %536 : vector<1x64xf32> to vector<4x64xf32>
    %556 = arith.mulf %554, %555 : vector<4x64xf32>
    %557 = vector.broadcast %538 : vector<1x64xf32> to vector<4x64xf32>
    %558 = arith.addf %556, %557 : vector<4x64xf32>
    %559 = arith.negf %558 : vector<4x64xf32>
    %560 = math.exp %559 : vector<4x64xf32>
    %cst_199 = arith.constant 1.000000e+00 : f32
    %561 = vector.broadcast %cst_199 : f32 to vector<4x64xf32>
    %562 = arith.addf %561, %560 : vector<4x64xf32>
    %563 = arith.divf %561, %562 : vector<4x64xf32>
    %564 = arith.mulf %558, %563 : vector<4x64xf32>
    %c2_200 = arith.constant 2 : index
    %c0_201 = arith.constant 0 : index
    %c0_202 = arith.constant 0 : index
    %565 = vector.load %arg10[%c2_200, %c0_201, %c0_202] : memref<3x64x32xbf16, #tpu.memory_space<vmem>>, vector<1x64x32xbf16>
    %566 = vector.shape_cast %565 : vector<1x64x32xbf16> to vector<64x32xbf16>
    %567 = arith.truncf %564 : vector<4x64xf32> to vector<4x64xbf16>
    %cst_203 = arith.constant dense<0.000000e+00> : vector<4x32xf32>
    %568 = tpu.matmul %567, %566, %cst_203 {dimension_numbers = #tpu.dot_dimension_numbers<[1], [0], [0], [1], [0, 0, 1, 1], [], []>} : vector<4x64xbf16>, vector<64x32xbf16>, vector<4x32xf32> -> vector<4x32xf32>
    %569 = vector.extract_strided_slice %18 {offsets = [0, 768], sizes = [4, 32], strides = [1, 1]} : vector<4x896xf32> to vector<4x32xf32>
    %570 = arith.addf %568, %569 : vector<4x32xf32>
    %c36 = arith.constant 36 : index
    %c0_204 = arith.constant 0 : index
    %571 = vector.load %arg3[%c36, %c0_204] : memref<48x128xf32, #tpu.memory_space<vmem>>, vector<1x128xf32>
    %572 = vector.extract_strided_slice %571 {offsets = [0, 0], sizes = [1, 32], strides = [1, 1]} : vector<1x128xf32> to vector<1x32xf32>
    %c37 = arith.constant 37 : index
    %c0_205 = arith.constant 0 : index
    %573 = vector.load %arg3[%c37, %c0_205] : memref<48x128xf32, #tpu.memory_space<vmem>>, vector<1x128xf32>
    %574 = vector.extract_strided_slice %573 {offsets = [0, 0], sizes = [1, 32], strides = [1, 1]} : vector<1x128xf32> to vector<1x32xf32>
    %cst_206 = arith.constant dense<0.000000e+00> : vector<4xf32>
    %575 = vector.multi_reduction <add>, %570, %cst_206 [1] : vector<4x32xf32> to vector<4xf32>
    %576 = vector.shape_cast %575 : vector<4xf32> to vector<4x1xf32>
    %cst_207 = arith.constant 3.200000e+01 : f32
    %577 = vector.broadcast %cst_207 : f32 to vector<4x1xf32>
    %578 = arith.divf %576, %577 : vector<4x1xf32>
    %579 = vector.broadcast %578 : vector<4x1xf32> to vector<4x32xf32>
    %580 = arith.subf %570, %579 : vector<4x32xf32>
    %581 = arith.mulf %580, %580 : vector<4x32xf32>
    %cst_208 = arith.constant dense<0.000000e+00> : vector<4xf32>
    %582 = vector.multi_reduction <add>, %581, %cst_208 [1] : vector<4x32xf32> to vector<4xf32>
    %583 = vector.shape_cast %582 : vector<4xf32> to vector<4x1xf32>
    %cst_209 = arith.constant 3.200000e+01 : f32
    %584 = vector.broadcast %cst_209 : f32 to vector<4x1xf32>
    %585 = arith.divf %583, %584 : vector<4x1xf32>
    %cst_210 = arith.constant 9.99999974E-6 : f32
    %586 = vector.broadcast %cst_210 : f32 to vector<4x1xf32>
    %587 = arith.addf %585, %586 : vector<4x1xf32>
    %588 = math.rsqrt %587 : vector<4x1xf32>
    %589 = vector.broadcast %588 : vector<4x1xf32> to vector<4x32xf32>
    %590 = arith.mulf %580, %589 : vector<4x32xf32>
    %591 = vector.broadcast %572 : vector<1x32xf32> to vector<4x32xf32>
    %592 = arith.mulf %590, %591 : vector<4x32xf32>
    %593 = vector.broadcast %574 : vector<1x32xf32> to vector<4x32xf32>
    %594 = arith.addf %592, %593 : vector<4x32xf32>
    %595 = arith.negf %594 : vector<4x32xf32>
    %596 = math.exp %595 : vector<4x32xf32>
    %cst_211 = arith.constant 1.000000e+00 : f32
    %597 = vector.broadcast %cst_211 : f32 to vector<4x32xf32>
    %598 = arith.addf %597, %596 : vector<4x32xf32>
    %599 = arith.divf %597, %598 : vector<4x32xf32>
    %600 = arith.mulf %594, %599 : vector<4x32xf32>
    %c6_212 = arith.constant 6 : index
    %c0_213 = arith.constant 0 : index
    %c0_214 = arith.constant 0 : index
    %601 = vector.load %arg9[%c6_212, %c0_213, %c0_214] : memref<7x32x32xbf16, #tpu.memory_space<vmem>>, vector<1x32x32xbf16>
    %602 = vector.shape_cast %601 : vector<1x32x32xbf16> to vector<32x32xbf16>
    %603 = arith.truncf %600 : vector<4x32xf32> to vector<4x32xbf16>
    %cst_215 = arith.constant dense<0.000000e+00> : vector<4x32xf32>
    %604 = tpu.matmul %603, %602, %cst_215 {dimension_numbers = #tpu.dot_dimension_numbers<[1], [0], [0], [1], [0, 0, 1, 1], [], []>} : vector<4x32xbf16>, vector<32x32xbf16>, vector<4x32xf32> -> vector<4x32xf32>
    %c38 = arith.constant 38 : index
    %c0_216 = arith.constant 0 : index
    %605 = vector.load %arg3[%c38, %c0_216] : memref<48x128xf32, #tpu.memory_space<vmem>>, vector<1x128xf32>
    %606 = vector.extract_strided_slice %605 {offsets = [0, 0], sizes = [1, 32], strides = [1, 1]} : vector<1x128xf32> to vector<1x32xf32>
    %607 = vector.broadcast %606 : vector<1x32xf32> to vector<4x32xf32>
    %608 = arith.addf %604, %607 : vector<4x32xf32>
    %c2_217 = arith.constant 2 : index
    %c0_218 = arith.constant 0 : index
    %c0_219 = arith.constant 0 : index
    %609 = vector.load %arg11[%c2_217, %c0_218, %c0_219] : memref<3x64x32xbf16, #tpu.memory_space<vmem>>, vector<1x64x32xbf16>
    %610 = vector.shape_cast %609 : vector<1x64x32xbf16> to vector<64x32xbf16>
    %611 = arith.truncf %534 : vector<4x64xf32> to vector<4x64xbf16>
    %cst_220 = arith.constant dense<0.000000e+00> : vector<4x32xf32>
    %612 = tpu.matmul %611, %610, %cst_220 {dimension_numbers = #tpu.dot_dimension_numbers<[1], [0], [0], [1], [0, 0, 1, 1], [], []>} : vector<4x64xbf16>, vector<64x32xbf16>, vector<4x32xf32> -> vector<4x32xf32>
    %613 = arith.addf %608, %612 : vector<4x32xf32>
    %c39 = arith.constant 39 : index
    %c0_221 = arith.constant 0 : index
    %614 = vector.load %arg3[%c39, %c0_221] : memref<48x128xf32, #tpu.memory_space<vmem>>, vector<1x128xf32>
    %615 = vector.extract_strided_slice %614 {offsets = [0, 0], sizes = [1, 32], strides = [1, 1]} : vector<1x128xf32> to vector<1x32xf32>
    %616 = vector.broadcast %615 : vector<1x32xf32> to vector<4x32xf32>
    %617 = arith.addf %613, %616 : vector<4x32xf32>
    %c44 = arith.constant 44 : index
    %c0_222 = arith.constant 0 : index
    %618 = vector.load %arg3[%c44, %c0_222] : memref<48x128xf32, #tpu.memory_space<vmem>>, vector<1x128xf32>
    %619 = vector.extract_strided_slice %618 {offsets = [0, 0], sizes = [1, 32], strides = [1, 1]} : vector<1x128xf32> to vector<1x32xf32>
    %c45 = arith.constant 45 : index
    %c0_223 = arith.constant 0 : index
    %620 = vector.load %arg3[%c45, %c0_223] : memref<48x128xf32, #tpu.memory_space<vmem>>, vector<1x128xf32>
    %621 = vector.extract_strided_slice %620 {offsets = [0, 0], sizes = [1, 32], strides = [1, 1]} : vector<1x128xf32> to vector<1x32xf32>
    %cst_224 = arith.constant dense<0.000000e+00> : vector<4xf32>
    %622 = vector.multi_reduction <add>, %617, %cst_224 [1] : vector<4x32xf32> to vector<4xf32>
    %623 = vector.shape_cast %622 : vector<4xf32> to vector<4x1xf32>
    %cst_225 = arith.constant 3.200000e+01 : f32
    %624 = vector.broadcast %cst_225 : f32 to vector<4x1xf32>
    %625 = arith.divf %623, %624 : vector<4x1xf32>
    %626 = vector.broadcast %625 : vector<4x1xf32> to vector<4x32xf32>
    %627 = arith.subf %617, %626 : vector<4x32xf32>
    %628 = arith.mulf %627, %627 : vector<4x32xf32>
    %cst_226 = arith.constant dense<0.000000e+00> : vector<4xf32>
    %629 = vector.multi_reduction <add>, %628, %cst_226 [1] : vector<4x32xf32> to vector<4xf32>
    %630 = vector.shape_cast %629 : vector<4xf32> to vector<4x1xf32>
    %cst_227 = arith.constant 3.200000e+01 : f32
    %631 = vector.broadcast %cst_227 : f32 to vector<4x1xf32>
    %632 = arith.divf %630, %631 : vector<4x1xf32>
    %cst_228 = arith.constant 9.99999974E-6 : f32
    %633 = vector.broadcast %cst_228 : f32 to vector<4x1xf32>
    %634 = arith.addf %632, %633 : vector<4x1xf32>
    %635 = math.rsqrt %634 : vector<4x1xf32>
    %636 = vector.broadcast %635 : vector<4x1xf32> to vector<4x32xf32>
    %637 = arith.mulf %627, %636 : vector<4x32xf32>
    %638 = vector.broadcast %619 : vector<1x32xf32> to vector<4x32xf32>
    %639 = arith.mulf %637, %638 : vector<4x32xf32>
    %640 = vector.broadcast %621 : vector<1x32xf32> to vector<4x32xf32>
    %641 = arith.addf %639, %640 : vector<4x32xf32>
    %642 = arith.negf %641 : vector<4x32xf32>
    %643 = math.exp %642 : vector<4x32xf32>
    %cst_229 = arith.constant 1.000000e+00 : f32
    %644 = vector.broadcast %cst_229 : f32 to vector<4x32xf32>
    %645 = arith.addf %644, %643 : vector<4x32xf32>
    %646 = arith.divf %644, %645 : vector<4x32xf32>
    %647 = arith.mulf %641, %646 : vector<4x32xf32>
    %c0_230 = arith.constant 0 : index
    %c0_231 = arith.constant 0 : index
    %648 = vector.load %arg14[%c0_230, %c0_231] : memref<32x16xbf16, #tpu.memory_space<vmem>>, vector<32x16xbf16>
    %649 = arith.truncf %647 : vector<4x32xf32> to vector<4x32xbf16>
    %cst_232 = arith.constant dense<0.000000e+00> : vector<4x16xf32>
    %650 = tpu.matmul %649, %648, %cst_232 {dimension_numbers = #tpu.dot_dimension_numbers<[1], [0], [0], [1], [0, 0, 1, 1], [], []>} : vector<4x32xbf16>, vector<32x16xbf16>, vector<4x16xf32> -> vector<4x16xf32>
    %c46 = arith.constant 46 : index
    %c0_233 = arith.constant 0 : index
    %651 = vector.load %arg3[%c46, %c0_233] : memref<48x128xf32, #tpu.memory_space<vmem>>, vector<1x128xf32>
    %652 = vector.extract_strided_slice %651 {offsets = [0, 0], sizes = [1, 16], strides = [1, 1]} : vector<1x128xf32> to vector<1x16xf32>
    %653 = vector.broadcast %652 : vector<1x16xf32> to vector<4x16xf32>
    %654 = arith.addf %650, %653 : vector<4x16xf32>
    %c0_234 = arith.constant 0 : index
    %c0_235 = arith.constant 0 : index
    %655 = vector.load %arg2[%c0_234, %c0_235] : memref<4x1xf32, #tpu.memory_space<vmem>>, vector<4x1xf32>
    %656 = vector.broadcast %655 : vector<4x1xf32> to vector<4x16xf32>
    %657 = arith.divf %654, %656 : vector<4x16xf32>
    %c0_236 = arith.constant 0 : index
    %c0_237 = arith.constant 0 : index
    %658 = vector.load %arg15[%c0_236, %c0_237] : memref<4x16xf32, #tpu.memory_space<vmem>>, vector<4x16xf32>
    tpu.vector_store %arg15[%c0_236, %c0_237], %657 {strides = array<i32>} : memref<4x16xf32, #tpu.memory_space<vmem>>, vector<4x16xf32>,
    return
  }
}

</mosaic_0001>

<bundles_post_ra>
// kernel: forward.1
= control target key start
LH: loop header
LB: loop body
LE: loop exit
PB: predicated region body
PF: predicated region fallthrough
CT: control target
= control target key end

     0   :  { %v3510_v1 = vmov 0.0   ;;  %vm3511_vm0 = vmmov 0   ;;  %vm75_vm1 = vcmask 261120   ;;  %s4334_s0 = inlined_call_operand.vmem [shape: f32[4,16], index: 0, kind: input, shape index: {}]   ;;  %s4335_s1 = inlined_call_operand.vmem [shape: f32[4,32], index: 1, kind: input, shape index: {}]   ;;  %s4336_s2 = inlined_call_operand.vmem [shape: f32[4,1], index: 2, kind: input, shape index: {}]   ;;  %s4337_s3 = inlined_call_operand.vmem [shape: f32[48,128], index: 3, kind: input, shape index: {}]   ;;  %s4338_s4 = inlined_call_operand.vmem [shape: f32[1,896], index: 4, kind: input, shape index: {}]   ;;  %s4339_s5 = inlined_call_operand.vmem [shape: bf16[32,128], index: 5, kind: input, shape index: {}]   ;;  %s4340_s6 = inlined_call_operand.vmem [shape: bf16[16,32], index: 6, kind: input, shape index: {}]   ;;  %s4341_s7 = inlined_call_operand.vmem [shape: bf16[128,896], index: 7, kind: input, shape index: {}]   ;;  %s4342_s8 = inlined_call_operand.vmem [shape: bf16[4,32,32], index: 8, kind: input, shape index: {}]   ;;  %s4343_s9 = inlined_call_operand.vmem [shape: bf16[7,32,32], index: 9, kind: input, shape index: {}]   ;;  %s4344_s10 = inlined_call_operand.vmem [shape: bf16[3,64,32], index: 10, kind: input, shape index: {}]   ;;  %s4345_s11 = inlined_call_operand.vmem [shape: bf16[3,64,32], index: 11, kind: input, shape index: {}]   ;;  %s4346_s12 = inlined_call_operand.vmem [shape: bf16[32,32], index: 12, kind: input, shape index: {}]   ;;  %s4347_s13 = inlined_call_operand.vmem [shape: bf16[32,32], index: 13, kind: input, shape index: {}]   ;;  %s4348_s14 = inlined_call_operand.vmem [shape: bf16[32,16], index: 14, kind: input, shape index: {}]   ;;  %s4349_s15 = inlined_call_operand.hbm [shape: f32[4,16], index: 15, kind: output, shape index: {}]  }
   0x1   :  { %v3252_v0 = vld [vmem:[%s4339_s5] sm:$0xff]   ;;  %3022 = vmatprep.subr.bf16.mxu0 %v3510_v1  ;;  %v3253_v2 = vld [vmem:[%s4339_s5 + $0x8] sm:$0xff]   ;;  %3026 = vmatprep.mubr.msk.bf16.mxu0 %vm3511_vm0, %v3510_v1 }
   0x2   :  { %3023 = vmatpush3.bf16.msra.mxu0 %v3252_v0  ;;  %v52_v3 = vld [vmem:[%s4335_s1] sm:$0xf] }
   0x3   :  { %3024 = vmatprep.subr.bf16.mxu0 %v3510_v1  ;;  %v57_v4 = vpack.c.bf16 %v52_v3, %v52_v3 }
   0x6   :  { %3025 = vmatpush3.bf16.msra.mxu0 %v3253_v2 }
   0x9   :  { %3027 = vmatmul.mubr.msk.bf16.vlgmr.msra.gmra.mrb[0].mxu0 %vm75_vm1, %v57_v4 }
   0xa   :  { %20 = vsyncpa [#allocation3], 0  ;;  %v3254_v5 = vld [vmem:[%s4341_s7 + $0x4] ss:$28 sps:$4 sm:$0xff]   ;;  %v3258_v6 = vld [vmem:[%s4341_s7 + $0xc] ss:$28 sps:$4 sm:$0xff]  }
   0xb   :  { %v3256_v7 = vld [vmem:[%s4341_s7 + $0x8] ss:$28 sps:$4 sm:$0xff]   ;;  %v3259_v8 = vld [vmem:[%s4341_s7] ss:$28 sps:$4 sm:$0xff]   ;;  %516 = vmatprep.subr.bf16.mxu1 %v3254_v5  ;;  %557 = vmatprep.subr.bf16.mxu0 %v3258_v6  ;;  %v3265_v12 = vld [vmem:[%s4341_s7 + $0x38] ss:$28 sps:$4 sm:$0xff]  }
   0xc   :  { %517 = vmatpush1.bf16.msra.mxu1 %v3259_v8  ;;  %558 = vmatpush1.bf16.msra.mxu0 %v3256_v7  ;;  %v3260_v9 = vld [vmem:[%s4341_s7 + $0x3c] ss:$28 sps:$4 sm:$0xff]   ;;  %v3264_v10 = vld [vmem:[%s4341_s7 + $0x44] ss:$28 sps:$4 sm:$0xff]   ;;  %v3266_v13 = vld [vmem:[%s4341_s7 + $0x74] ss:$28 sps:$4 sm:$0xff]  }
   0xd   :  { %v3262_v11 = vld [vmem:[%s4341_s7 + $0x40] ss:$28 sps:$4 sm:$0xff]   ;;  %518 = vmatprep.subr.bf16.mxu1 %v3260_v9  ;;  %559 = vmatprep.subr.bf16.mxu0 %v3264_v10  ;;  %v3268_v15 = vld [vmem:[%s4341_s7 + $0x78] ss:$28 sps:$4 sm:$0xff]   ;;  %v3271_v16 = vld [vmem:[%s4341_s7 + $0x70] ss:$28 sps:$4 sm:$0xff]  }
   0xe   :  { %v3270_v14 = vld [vmem:[%s4341_s7 + $0x7c] ss:$28 sps:$4 sm:$0xff]   ;;  %v3272_v17 = vld [vmem:[%s4341_s7 + $0xac] ss:$28 sps:$4 sm:$0xff]   ;;  %v3276_v18 = vld [vmem:[%s4341_s7 + $0xb4] ss:$28 sps:$4 sm:$0xff]  }
   0xf   :  { %v3274_v19 = vld [vmem:[%s4341_s7 + $0xb0] ss:$28 sps:$4 sm:$0xff]   ;;  %v3277_v20 = vld [vmem:[%s4341_s7 + $0xa8] ss:$28 sps:$4 sm:$0xff]   ;;  %v3283_v24 = vld [vmem:[%s4341_s7 + $0xe0] ss:$28 sps:$4 sm:$0xff]  }
  0x10   :  { %519 = vmatpush1.bf16.msra.mxu1 %v3265_v12  ;;  %560 = vmatpush1.bf16.msra.mxu0 %v3262_v11  ;;  %v3278_v21 = vld [vmem:[%s4341_s7 + $0xe4] ss:$28 sps:$4 sm:$0xff]   ;;  %v3282_v22 = vld [vmem:[%s4341_s7 + $0xec] ss:$28 sps:$4 sm:$0xff]   ;;  %v3284_v25 = vld [vmem:[%s4341_s7 + $0x11c] ss:$28 sps:$4 sm:$0xff]  }
  0x11   :  { %520 = vmatprep.subr.bf16.mxu1 %v3266_v13  ;;  %561 = vmatprep.subr.bf16.mxu0 %v3270_v14  ;;  %v3280_v23 = vld [vmem:[%s4341_s7 + $0xe8] ss:$28 sps:$4 sm:$0xff]   ;;  %v3286_v27 = vld [vmem:[%s4341_s7 + $0x120] ss:$28 sps:$4 sm:$0xff]   ;;  %v3289_v28 = vld [vmem:[%s4341_s7 + $0x118] ss:$28 sps:$4 sm:$0xff]  }
  0x12   :  { %v3288_v26 = vld [vmem:[%s4341_s7 + $0x124] ss:$28 sps:$4 sm:$0xff]   ;;  %v3290_v29 = vld [vmem:[%s4341_s7 + $0x154] ss:$28 sps:$4 sm:$0xff]   ;;  %v3294_v30 = vld [vmem:[%s4341_s7 + $0x15c] ss:$28 sps:$4 sm:$0xff]  }
  0x13   :  { %v3292_v31 = vld [vmem:[%s4341_s7 + $0x158] ss:$28 sps:$4 sm:$0xff]   ;;  %v3295_v32 = vld [vmem:[%s4341_s7 + $0x150] ss:$28 sps:$4 sm:$0xff]   ;;  %v3301_v36 = vld [vmem:[%s4341_s7 + $0x188] ss:$28 sps:$4 sm:$0xff]  }
  0x14   :  { %521 = vmatpush1.bf16.msra.mxu1 %v3271_v16  ;;  %562 = vmatpush1.bf16.msra.mxu0 %v3268_v15  ;;  %v3296_v33 = vld [vmem:[%s4341_s7 + $0x18c] ss:$28 sps:$4 sm:$0xff]   ;;  %v3300_v34 = vld [vmem:[%s4341_s7 + $0x194] ss:$28 sps:$4 sm:$0xff]   ;;  %v3512_v38 = vmov 0   ;;  %v3334_v11 = vld [vmem:[%s4340_s6] sm:$0xff]  }
  0x15   :  { %522 = vmatprep.subr.bf16.mxu1 %v3272_v17  ;;  %563 = vmatprep.subr.bf16.mxu0 %v3276_v18  ;;  %v3298_v35 = vld [vmem:[%s4341_s7 + $0x190] ss:$28 sps:$4 sm:$0xff]   ;;  %v2672_v39 = vld [vmem:[%s4337_s3] ss:$0 sm:$0xff]  ;;  %v3305_v51 = vld [vmem:[%s4341_s7 + $0x18] ss:$28 sps:$4 sm:$0xff]  }
  0x16   :  { %v3304_v37 = vld [vmem:[%s4341_s7 + $0x14] ss:$28 sps:$4 sm:$0xff]   ;;  %548 = vmatprep.mubr.bf16.mxu1 %v3512_v38  ;;  %589 = vmatprep.mubr.bf16.mxu0 %v3512_v38  ;;  %v3308_v53 = vld [vmem:[%s4341_s7 + $0x4c] ss:$28 sps:$4 sm:$0xff]   ;;  %v3312_v56 = vld [vmem:[%s4341_s7 + $0x84] ss:$28 sps:$4 sm:$0xff]  }
  0x17   :  { %3250 = vset.pattern.permute.xlu1 %v3512_v38  ;;  %3251 = vset.pattern.permute.xlu0 %v3512_v38  ;;  %v3302_v50 = vld [vmem:[%s4341_s7 + $0x10] ss:$28 sps:$4 sm:$0xff]   ;;  %v3306_v54 = vld [vmem:[%s4341_s7 + $0x48] ss:$28 sps:$4 sm:$0xff]   ;;  %v3310_v57 = vld [vmem:[%s4341_s7 + $0x80] ss:$28 sps:$4 sm:$0xff]  }
  0x18   :  { %523 = vmatpush1.bf16.msra.mxu1 %v3277_v20  ;;  %564 = vmatpush1.bf16.msra.mxu0 %v3274_v19  ;;  %v3309_v55 = vld [vmem:[%s4341_s7 + $0x50] ss:$28 sps:$4 sm:$0xff]   ;;  %v3313_v58 = vld [vmem:[%s4341_s7 + $0x88] ss:$28 sps:$4 sm:$0xff]   ;;  %v3316_v59 = vld [vmem:[%s4341_s7 + $0xbc] ss:$28 sps:$4 sm:$0xff]  }
  0x19   :  { %524 = vmatprep.subr.bf16.mxu1 %v3278_v21  ;;  %565 = vmatprep.subr.bf16.mxu0 %v3282_v22  ;;  %v3314_v60 = vld [vmem:[%s4341_s7 + $0xb8] ss:$28 sps:$4 sm:$0xff]   ;;  %v3317_v61 = vld [vmem:[%s4341_s7 + $0xc0] ss:$28 sps:$4 sm:$0xff]   ;;  %v3318_v63 = vld [vmem:[%s4341_s7 + $0xf0] ss:$28 sps:$4 sm:$0xff]  }
  0x1a   :  { %v3320_v62 = vld [vmem:[%s4341_s7 + $0xf4] ss:$28 sps:$4 sm:$0xff]   ;;  %v3324_v2 = vld [vmem:[%s4341_s7 + $0x12c] ss:$28 sps:$4 sm:$0xff]   ;;  %v3328_v5 = vld [vmem:[%s4341_s7 + $0x164] ss:$28 sps:$4 sm:$0xff]  }
  0x1b   :  { %v3321_v0 = vld [vmem:[%s4341_s7 + $0xf8] ss:$28 sps:$4 sm:$0xff]   ;;  %v3322_v3 = vld [vmem:[%s4341_s7 + $0x128] ss:$28 sps:$4 sm:$0xff]   ;;  %v3325_v4 = vld [vmem:[%s4341_s7 + $0x130] ss:$28 sps:$4 sm:$0xff]  }
  0x1c   :  { %525 = vmatpush1.bf16.msra.mxu1 %v3283_v24  ;;  %566 = vmatpush1.bf16.msra.mxu0 %v3280_v23  ;;  %v3326_v6 = vld [vmem:[%s4341_s7 + $0x160] ss:$28 sps:$4 sm:$0xff]   ;;  %v3329_v7 = vld [vmem:[%s4341_s7 + $0x168] ss:$28 sps:$4 sm:$0xff]   ;;  %v3330_v9 = vld [vmem:[%s4341_s7 + $0x198] ss:$28 sps:$4 sm:$0xff]  }
  0x1d   :  { %526 = vmatprep.subr.bf16.mxu1 %v3284_v25  ;;  %567 = vmatprep.subr.bf16.mxu0 %v3288_v26  ;;  %v3332_v8 = vld [vmem:[%s4341_s7 + $0x19c] ss:$28 sps:$4 sm:$0xff]   ;;  %v679_v12 = vld [vmem:[%s4334_s0] sm:$0xf]  ;;  %vm694_vm2 = vcmask 130048   ;;  %vm740_vm3 = vcmask 257024  }
  0x1e   :  { %v3333_v10 = vld [vmem:[%s4341_s7 + $0x1a0] ss:$28 sps:$4 sm:$0xff]   ;;  %v682_v13 = vpack.c.bf16 %v679_v12, %v679_v12  ;;  %vm1669_vm4 = vcmask 519168   ;;  %vm1734_vm5 = vcmask 523264   ;;  %s3514_s21 = smov [#allocation2]   ;;  %vm2656_vm6 = vcmask 125952  }
  0x1f   :  { %v2733_v26 = vld [vmem:[%s4337_s3 + $0x1] ss:$0 sm:$0xff]  ;;  %s2664_s0 = sshll.u32 %s3514_s21, 4  ;;  %s2665_s0 = int_to_ptr.vmem [resolvable:$true] %s2664_s0 }
  0x20   :  { %527 = vmatpush1.bf16.msra.mxu1 %v3289_v28  ;;  %568 = vmatpush1.bf16.msra.mxu0 %v3286_v27  ;;  %p3491_p1 = scmp.lt.s32.totalorder %s2665_s0, %s2665_s0 }
  0x21   :  { %528 = vmatprep.subr.bf16.mxu1 %v3290_v29  ;;  %569 = vmatprep.subr.bf16.mxu0 %v3294_v30 }
  0x24   :  { %529 = vmatpush1.bf16.msra.mxu1 %v3295_v32  ;;  %570 = vmatpush1.bf16.msra.mxu0 %v3292_v31 }
  0x25   :  { %530 = vmatprep.subr.bf16.mxu1 %v3296_v33  ;;  %571 = vmatprep.subr.bf16.mxu0 %v3300_v34 }
  0x28   :  { %531 = vmatpush1.bf16.msra.mxu1 %v3301_v36  ;;  %572 = vmatpush1.bf16.msra.mxu0 %v3298_v35 }
  0x29   :  { %3030 = vmatprep.subr.bf16.mxu0 %v3510_v1  ;;  %598 = vmatprep.subr.bf16.mxu1 %v3304_v37 }
  0xdc   :  { %v113_v40 = vpop.f32.mrb[0].mxu0 }
  0xdd   :  { %v114_v41 = vadd.f32 %v2672_v39, %v113_v40  ;;  %v3028_v42 = vpop.f32.mrb[1].mxu0  ;;  %v3336_v39 = vld [vmem:[%s4342_s8 + $0x8] sm:$0xff]  }
  0xde   :  { %v116_v43 = vpop.f32.mrb[2].mxu0 }
  0xdf   :  { %v2676_v44 = vmul.f32 -1.442695, %v114_v41  ;;  %v3029_v45 = vpop.f32.mrb[3].mxu0 }
  0xe1   :  { %3387 = vpow2.f32 %v2676_v44  ;;  %v2736_v44 = vld [vmem:[%s4337_s3 + $0x2] ss:$0 sm:$0xff] }
  0xeb   :  { %v3388_v46 = vpop.eup %3387 }
  0xec   :  { %v122_v47 = vadd.f32 1.0, %v3388_v46  ;;  %v2737_v46 = vld [vmem:[%s4337_s3 + $0x3] ss:$0 sm:$0xff] }
  0xee   :  { %3389 = vrcp.f32 %v122_v47 }
  0xf8   :  { %v3390_v48 = vpop.eup %3389 }
  0xf9   :  { %v125_v49 = vmul.f32 %v3390_v48, %v114_v41 }
  0xfb   :  { %v190_v52 = vpack.c.bf16 %v125_v49, %v125_v49 }
  0xfd   :  { %549 = vmatmul.mubr.bf16.vlgmr.msra.gmra.mrb[0].mxu1 %v190_v52  ;;  %590 = vmatmul.mubr.bf16.vlgmr.msra.gmra.mrb[4].mxu0 %v190_v52 }
  0xfe   :  { %599 = vmatpush1.bf16.msra.mxu1 %v3302_v50  ;;  %3031 = vmatpush3.bf16.msra.mxu0 %v3305_v51 }
  0xff   :  { %600 = vmatprep.subr.bf16.mxu1 %v3308_v53  ;;  %3032 = vmatprep.subr.bf16.mxu0 %v3510_v1 }
 0x100   :  { %630 = vmatprep.mubr.bf16.mxu1 %v3512_v38  ;;  %3046 = vmatprep.mubr.msk.bf16.mxu0 %vm3511_vm0, %v3510_v1  ;;  %v3335_v38 = vld [vmem:[%s4342_s8] sm:$0xff]  }
 0x102   :  { %601 = vmatpush1.bf16.msra.mxu1 %v3306_v54  ;;  %3033 = vmatpush3.bf16.msra.mxu0 %v3309_v55  ;;  %v193_v55 = vlaneseq }
 0x103   :  { %602 = vmatprep.subr.bf16.mxu1 %v3312_v56  ;;  %3034 = vmatprep.subr.bf16.mxu0 %v3510_v1 }
 0x104   :  { %v3841_v56 = vshrl.u32 %v193_v55, 7 }
 0x106   :  { %603 = vmatpush1.bf16.msra.mxu1 %v3310_v57  ;;  %3035 = vmatpush3.bf16.msra.mxu0 %v3313_v58  ;;  %v195_v57 = vsub.s32 0, %v3841_v56  ;;  %v3847_v58 = vld [vmem:[%s4338_s4] sm:$0xff] }
 0x107   :  { %604 = vmatprep.subr.bf16.mxu1 %v3316_v59  ;;  %3036 = vmatprep.subr.bf16.mxu0 %v3510_v1 }
 0x108   :  { %v196_v59 = vrot.slane %v3847_v58, %v195_v57 }
 0x10a   :  { %605 = vmatpush1.bf16.msra.mxu1 %v3314_v60  ;;  %3037 = vmatpush3.bf16.msra.mxu0 %v3317_v61 }
 0x10b   :  { %606 = vmatprep.subr.bf16.mxu1 %v3320_v62  ;;  %3038 = vmatprep.subr.bf16.mxu0 %v3510_v1 }
 0x10e   :  { %607 = vmatpush1.bf16.msra.mxu1 %v3318_v63  ;;  %3039 = vmatpush3.bf16.msra.mxu0 %v3321_v0 }
 0x10f   :  { %608 = vmatprep.subr.bf16.mxu1 %v3324_v2  ;;  %3040 = vmatprep.subr.bf16.mxu0 %v3510_v1 }
 0x112   :  { %609 = vmatpush1.bf16.msra.mxu1 %v3322_v3  ;;  %3041 = vmatpush3.bf16.msra.mxu0 %v3325_v4 }
 0x113   :  { %610 = vmatprep.subr.bf16.mxu1 %v3328_v5  ;;  %3042 = vmatprep.subr.bf16.mxu0 %v3510_v1 }
 0x116   :  { %611 = vmatpush1.bf16.msra.mxu1 %v3326_v6  ;;  %3043 = vmatpush3.bf16.msra.mxu0 %v3329_v7 }
 0x117   :  { %612 = vmatprep.subr.bf16.mxu1 %v3332_v8  ;;  %3044 = vmatprep.subr.bf16.mxu0 %v3510_v1 }
 0x11a   :  { %613 = vmatpush1.bf16.msra.mxu1 %v3330_v9  ;;  %3045 = vmatpush3.bf16.msra.mxu0 %v3333_v10  ;;  %v3337_v9 = vld [vmem:[%s4343_s9] sm:$0xff]   ;;  %v3338_v10 = vld [vmem:[%s4343_s9 + $0x8] sm:$0xff]  }
 0x11b   :  { %3050 = vmatprep.subr.bf16.mxu1 %v3510_v1  ;;  %3056 = vmatprep.subr.bf16.mxu0 %v3510_v1 }
 0x11d   :  { %631 = vmatmul.mubr.bf16.vlgmr.msra.gmra.mrb[4].mxu1 %v190_v52  ;;  %3047 = vmatmul.mubr.bf16.vlgmr.msra.gmra.mrb[8].mxu0 %v190_v52 }
 0x11e   :  { %3051 = vmatpush3.bf16.msra.mxu1 %v3334_v11  ;;  %3052 = vmatprep.mubr.msk.bf16.mxu1 %vm3511_vm0, %v3510_v1 }
 0x11f   :  { %3060 = vmatprep.mubr.msk.bf16.mxu0 %vm3511_vm0, %v3510_v1  ;;  %3064 = vmatprep.subr.bf16.mxu1 %v3510_v1 }
 0x120   :  { %3057 = vmatpush3.bf16.msra.mxu0 %v3335_v38 }
 0x121   :  { %3058 = vmatprep.subr.bf16.mxu0 %v3510_v1 }
 0x124   :  { %3059 = vmatpush3.bf16.msra.mxu0 %v3336_v39 }
 0x125   :  { %3053 = vmatmul.mubr.msk.bf16.vlgmr.msra.gmra.mrb[8].mxu1 %vm694_vm2, %v682_v13  ;;  %3072 = vmatprep.subr.bf16.mxu0 %v3510_v1 }
 0x126   :  { %3068 = vmatprep.mubr.msk.bf16.mxu1 %vm3511_vm0, %v3510_v1  ;;  %3065 = vmatpush3.bf16.msra.mxu1 %v3337_v9 }
 0x127   :  { %3066 = vmatprep.subr.bf16.mxu1 %v3510_v1 }
 0x12a   :  { %3067 = vmatpush3.bf16.msra.mxu1 %v3338_v10 }
 0x12b   :  { %3080 = vmatprep.subr.bf16.mxu1 %v3510_v1 }
 0x1d0   :  { %v550_v14 = vpop.f32.mrb[0].mxu1  ;;  %v3805_v15 = vpop.f32.mrb[4].mxu0 }
 0x1d1   :  { %v3807_v16 = vpop.f32.mrb[1].mxu1  ;;  %v3809_v17 = vpop.f32.mrb[5].mxu0  ;;  %v551_v60 = vadd.f32 %v550_v14, %v196_v59 }
 0x1d2   :  { %v554_v18 = vpop.f32.mrb[2].mxu1  ;;  %v595_v19 = vpop.f32.mrb[6].mxu0 }
 0x1d3   :  { %v555_v20 = vpop.f32.mrb[3].mxu1  ;;  %v596_v21 = vpop.f32.mrb[7].mxu0  ;;  %v2742_v18 = vld [vmem:[%s4337_s3 + $0x4] ss:$0 sm:$0xff] }
 0x1d4   :  { %v2743_v20 = vld [vmem:[%s4337_s3 + $0x5] ss:$0 sm:$0xff] }
 0x1f0   :  { %v3811_v22 = vpop.f32.mrb[4].mxu1 }
 0x1f1   :  { %v3813_v23 = vpop.f32.mrb[5].mxu1 }
 0x1f2   :  { %v636_v24 = vpop.f32.mrb[6].mxu1 }
 0x1f3   :  { %v637_v25 = vpop.f32.mrb[7].mxu1 }
 0x1f8   :  { %v732_v27 = vpop.f32.mrb[8].mxu1 }
 0x1f9   :  { %v3818_v28 = vadd.f32 %v2733_v26, %v732_v27  ;;  %v3054_v29 = vpop.f32.mrb[9].mxu1 }
 0x1fa   :  { %v735_v30 = vpop.f32.mrb[10].mxu1 }
 0x1fb   :  { %v3055_v31 = vpop.f32.mrb[11].mxu1  ;;  %v741_v32 = vsel %vm740_vm3, %v3818_v28, 0.0 }
 0x1fc   :  { %742 = vadd.xlane.f32.xlu0 %v741_v32  ;;  %v2745_v32 = vld [vmem:[%s4337_s3 + $0x6] ss:$0 sm:$0xff] }
 0x289   :  { %v743_v33 = vpop.xlane.xlu0 %742 }
 0x28a   :  { %v745_v34 = vmul.f32 0.03125, %v743_v33 }
 0x28c   :  { %v746_v35 = vsub.f32 %v3818_v28, %v745_v34 }
 0x28e   :  { %v747_v36 = vmul.f32 %v746_v35, %v746_v35 }
 0x290   :  { %v748_v37 = vsel %vm740_vm3, %v747_v36, 0.0 }
 0x291   :  { %749 = vadd.xlane.f32.xlu0 %v748_v37 }
 0x31e   :  { %v750_v40 = vpop.xlane.xlu0 %749 }
 0x31f   :  { %v751_v41 = vmul.f32 0.03125, %v750_v40 }
 0x321   :  { %v752_v42 = vadd.f32 1e-05, %v751_v41 }
 0x323   :  { %3391 = vrsqrt.f32 %v752_v42 }
 0x32d   :  { %v3392_v43 = vpop.eup %3391 }
 0x32e   :  { %v754_v45 = vmul.f32 %v3392_v43, %v746_v35 }
 0x330   :  { %v759_v47 = vmul.f32 %v2736_v44, %v754_v45  ;;  %v3339_v45 = vld [vmem:[%s4342_s8 + $0x10] sm:$0xff]  }
 0x332   :  { %v764_v48 = vadd.f32 %v2737_v46, %v759_v47  ;;  %v3340_v46 = vld [vmem:[%s4342_s8 + $0x18] sm:$0xff]  }
 0x334   :  { %v2738_v49 = vmul.f32 -1.442695, %v764_v48 }
 0x336   :  { %3393 = vpow2.f32 %v2738_v49 }
 0x340   :  { %v3394_v50 = vpop.eup %3393 }
 0x341   :  { %v768_v51 = vadd.f32 1.0, %v3394_v50 }
 0x343   :  { %3395 = vrcp.f32 %v768_v51  ;;  %v2749_v51 = vld [vmem:[%s4337_s3 + $0x7] ss:$0 sm:$0xff] }
 0x34d   :  { %v3396_v52 = vpop.eup %3395 }
 0x34e   :  { %v771_v53 = vmul.f32 %v3396_v52, %v764_v48 }
 0x350   :  { %v776_v54 = vpack.c.bf16 %v771_v53, %v771_v53  ;;  %v2750_v53 = vld [vmem:[%s4337_s3 + $0x8] ss:$0 sm:$0xff] }
 0x352   :  { %3061 = vmatmul.mubr.msk.bf16.vlgmr.msra.gmra.mrb[12].mxu0 %vm75_vm1, %v776_v54 }
 0x353   :  { %3076 = vmatprep.mubr.msk.bf16.mxu0 %vm3511_vm0, %v3510_v1  ;;  %3073 = vmatpush3.bf16.msra.mxu0 %v3339_v45 }
 0x354   :  { %3074 = vmatprep.subr.bf16.mxu0 %v3510_v1 }
 0x357   :  { %3075 = vmatpush3.bf16.msra.mxu0 %v3340_v46 }
 0x358   :  { %3088 = vmatprep.subr.bf16.mxu0 %v3510_v1 }
 0x425   :  { %v826_v61 = vpop.f32.mrb[12].mxu0 }
 0x426   :  { %v827_v62 = vadd.f32 %v826_v61, %v551_v60  ;;  %v3062_v63 = vpop.f32.mrb[13].mxu0 }
 0x427   :  { %v829_v0 = vpop.f32.mrb[14].mxu0 }
 0x428   :  { %v3063_v2 = vpop.f32.mrb[15].mxu0  ;;  %v834_v3 = vsel %vm740_vm3, %v827_v62, 0.0  ;;  %v199_v0 = vsub.s32 1, %v3841_v56 }
 0x429   :  { %835 = vadd.xlane.f32.xlu1 %v834_v3 }
 0x42a   :  { %v200_v2 = vrot.slane %v3847_v58, %v199_v0 }
 0x42c   :  { %v553_v3 = vadd.f32 %v3807_v16, %v200_v2  ;;  %v3342_v16 = vld [vmem:[%s4343_s9 + $0x18] sm:$0xff]  }
 0x4b6   :  { %v836_v4 = vpop.xlane.xlu1 %835 }
 0x4b7   :  { %v837_v5 = vmul.f32 0.03125, %v836_v4 }
 0x4b9   :  { %v838_v6 = vsub.f32 %v827_v62, %v837_v5 }
 0x4bb   :  { %v839_v7 = vmul.f32 %v838_v6, %v838_v6 }
 0x4bd   :  { %v840_v8 = vsel %vm740_vm3, %v839_v7, 0.0 }
 0x4be   :  { %841 = vadd.xlane.f32.xlu1 %v840_v8 }
 0x54b   :  { %v842_v11 = vpop.xlane.xlu1 %841 }
 0x54c   :  { %v843_v12 = vmul.f32 0.03125, %v842_v11 }
 0x54e   :  { %v844_v13 = vadd.f32 1e-05, %v843_v12 }
 0x550   :  { %3397 = vrsqrt.f32 %v844_v13 }
 0x55a   :  { %v3398_v14 = vpop.eup %3397 }
 0x55b   :  { %v846_v19 = vmul.f32 %v3398_v14, %v838_v6 }
 0x55d   :  { %v851_v21 = vmul.f32 %v2742_v18, %v846_v19  ;;  %v3341_v18 = vld [vmem:[%s4343_s9 + $0x10] sm:$0xff]  }
 0x55f   :  { %v856_v24 = vadd.f32 %v2743_v20, %v851_v21 }
 0x561   :  { %v2744_v25 = vmul.f32 -1.442695, %v856_v24 }
 0x563   :  { %3399 = vpow2.f32 %v2744_v25  ;;  %v2759_v25 = vld [vmem:[%s4337_s3 + $0x9] ss:$0 sm:$0xff] }
 0x56d   :  { %v3400_v26 = vpop.eup %3399 }
 0x56e   :  { %v860_v27 = vadd.f32 1.0, %v3400_v26 }
 0x570   :  { %3401 = vrcp.f32 %v860_v27  ;;  %v2760_v27 = vld [vmem:[%s4337_s3 + $0xa] ss:$0 sm:$0xff] }
 0x57a   :  { %v3402_v29 = vpop.eup %3401 }
 0x57b   :  { %v863_v30 = vmul.f32 %v3402_v29, %v856_v24 }
 0x57d   :  { %v868_v31 = vpack.c.bf16 %v863_v30, %v863_v30 }
 0x57f   :  { %3069 = vmatmul.mubr.msk.bf16.vlgmr.msra.gmra.mrb[12].mxu1 %vm75_vm1, %v868_v31 }
 0x580   :  { %3084 = vmatprep.mubr.msk.bf16.mxu1 %vm3511_vm0, %v3510_v1  ;;  %3081 = vmatpush3.bf16.msra.mxu1 %v3341_v18 }
 0x581   :  { %3082 = vmatprep.subr.bf16.mxu1 %v3510_v1 }
 0x584   :  { %3083 = vmatpush3.bf16.msra.mxu1 %v3342_v16 }
 0x585   :  { %3096 = vmatprep.subr.bf16.mxu1 %v3510_v1 }
 0x652   :  { %v923_v33 = vpop.f32.mrb[12].mxu1 }
 0x653   :  { %v924_v34 = vadd.f32 %v2745_v32, %v923_v33  ;;  %v3070_v35 = vpop.f32.mrb[13].mxu1 }
 0x654   :  { %v926_v36 = vpop.f32.mrb[14].mxu1 }
 0x655   :  { %v3873_v37 = vadd.f32 %v924_v34, %v3818_v28  ;;  %v3071_v38 = vpop.f32.mrb[15].mxu1 }
 0x656   :  { %v2766_v38 = vld [vmem:[%s4337_s3 + $0xb] ss:$0 sm:$0xff] }
 0x657   :  { %v932_v39 = vsel %vm740_vm3, %v3873_v37, 0.0 }
 0x658   :  { %933 = vadd.xlane.f32.xlu0 %v932_v39 }
 0x6e5   :  { %v934_v40 = vpop.xlane.xlu0 %933 }
 0x6e6   :  { %v935_v41 = vmul.f32 0.03125, %v934_v40 }
 0x6e8   :  { %v936_v42 = vsub.f32 %v3873_v37, %v935_v41 }
 0x6ea   :  { %v937_v43 = vmul.f32 %v936_v42, %v936_v42 }
 0x6ec   :  { %v938_v44 = vsel %vm740_vm3, %v937_v43, 0.0 }
 0x6ed   :  { %939 = vadd.xlane.f32.xlu1 %v938_v44 }
 0x77a   :  { %v940_v47 = vpop.xlane.xlu1 %939 }
 0x77b   :  { %v941_v48 = vmul.f32 0.03125, %v940_v47 }
 0x77d   :  { %v942_v49 = vadd.f32 1e-05, %v941_v48 }
 0x77f   :  { %3403 = vrsqrt.f32 %v942_v49 }
 0x789   :  { %v3404_v50 = vpop.eup %3403 }
 0x78a   :  { %v944_v52 = vmul.f32 %v3404_v50, %v936_v42 }
 0x78c   :  { %v949_v54 = vmul.f32 %v2749_v51, %v944_v52  ;;  %v3343_v51 = vld [vmem:[%s4342_s8 + $0x20] sm:$0xff]   ;;  %v3344_v52 = vld [vmem:[%s4342_s8 + $0x28] sm:$0xff]  }
 0x78e   :  { %v954_v55 = vadd.f32 %v2750_v53, %v949_v54 }
 0x790   :  { %v2751_v57 = vmul.f32 -1.442695, %v954_v55 }
 0x792   :  { %3405 = vpow2.f32 %v2751_v57 }
 0x79c   :  { %v3406_v59 = vpop.eup %3405 }
 0x79d   :  { %v958_v60 = vadd.f32 1.0, %v3406_v59  ;;  %v2770_v59 = vld [vmem:[%s4337_s3 + $0xc] ss:$0 sm:$0xff] }
 0x79f   :  { %3407 = vrcp.f32 %v958_v60 }
 0x7a9   :  { %v3408_v61 = vpop.eup %3407 }
 0x7aa   :  { %v961_v62 = vmul.f32 %v3408_v61, %v954_v55  ;;  %v2771_v61 = vld [vmem:[%s4337_s3 + $0xd] ss:$0 sm:$0xff] }
 0x7ac   :  { %v967_v63 = vpack.c.bf16 %v961_v62, %v961_v62 }
 0x7ae   :  { %3077 = vmatmul.mubr.msk.bf16.vlgmr.msra.gmra.mrb[16].mxu0 %vm75_vm1, %v967_v63 }
 0x7af   :  { %3092 = vmatprep.mubr.msk.bf16.mxu0 %vm3511_vm0, %v3510_v1  ;;  %3089 = vmatpush3.bf16.msra.mxu0 %v3343_v51 }
 0x7b0   :  { %3090 = vmatprep.subr.bf16.mxu0 %v3510_v1 }
 0x7b3   :  { %3091 = vmatpush3.bf16.msra.mxu0 %v3344_v52 }
 0x7b4   :  { %3104 = vmatprep.subr.bf16.mxu0 %v3510_v1 }
 0x881   :  { %v1017_v4 = vpop.f32.mrb[16].mxu0 }
 0x882   :  { %v1018_v5 = vadd.f32 %v1017_v4, %v553_v3  ;;  %v3078_v6 = vpop.f32.mrb[17].mxu0 }
 0x883   :  { %v1020_v7 = vpop.f32.mrb[18].mxu0 }
 0x884   :  { %v3079_v8 = vpop.f32.mrb[19].mxu0  ;;  %v1025_v9 = vsel %vm740_vm3, %v1018_v5, 0.0  ;;  %v203_v7 = vsub.s32 2, %v3841_v56 }
 0x885   :  { %1026 = vadd.xlane.f32.xlu0 %v1025_v9 }
 0x886   :  { %v204_v8 = vrot.slane %v3847_v58, %v203_v7 }
 0x888   :  { %v592_v9 = vadd.f32 %v3805_v15, %v204_v8  ;;  %v3346_v15 = vld [vmem:[%s4343_s9 + $0x28] sm:$0xff]  }
 0x912   :  { %v1027_v10 = vpop.xlane.xlu0 %1026 }
 0x913   :  { %v1028_v11 = vmul.f32 0.03125, %v1027_v10 }
 0x915   :  { %v1029_v12 = vsub.f32 %v1018_v5, %v1028_v11 }
 0x917   :  { %v1030_v13 = vmul.f32 %v1029_v12, %v1029_v12 }
 0x919   :  { %v1031_v14 = vsel %vm740_vm3, %v1030_v13, 0.0 }
 0x91a   :  { %1032 = vadd.xlane.f32.xlu1 %v1031_v14 }
 0x9a7   :  { %v1033_v19 = vpop.xlane.xlu1 %1032 }
 0x9a8   :  { %v1034_v20 = vmul.f32 0.03125, %v1033_v19 }
 0x9aa   :  { %v1035_v21 = vadd.f32 1e-05, %v1034_v20 }
 0x9ac   :  { %3409 = vrsqrt.f32 %v1035_v21 }
 0x9b6   :  { %v3410_v24 = vpop.eup %3409 }
 0x9b7   :  { %v1037_v26 = vmul.f32 %v3410_v24, %v1029_v12 }
 0x9b9   :  { %v1042_v29 = vmul.f32 %v2759_v25, %v1037_v26  ;;  %v3345_v25 = vld [vmem:[%s4343_s9 + $0x20] sm:$0xff]  }
 0x9bb   :  { %v1047_v30 = vadd.f32 %v2760_v27, %v1042_v29 }
 0x9bd   :  { %v2761_v31 = vmul.f32 -1.442695, %v1047_v30 }
 0x9bf   :  { %3411 = vpow2.f32 %v2761_v31  ;;  %v2780_v31 = vld [vmem:[%s4337_s3 + $0xe] ss:$0 sm:$0xff] }
 0x9c9   :  { %v3412_v32 = vpop.eup %3411 }
 0x9ca   :  { %v1051_v33 = vadd.f32 1.0, %v3412_v32 }
 0x9cc   :  { %3413 = vrcp.f32 %v1051_v33  ;;  %v2781_v33 = vld [vmem:[%s4337_s3 + $0xf] ss:$0 sm:$0xff] }
 0x9d6   :  { %v3414_v34 = vpop.eup %3413 }
 0x9d7   :  { %v1054_v35 = vmul.f32 %v3414_v34, %v1047_v30 }
 0x9d9   :  { %v1060_v36 = vpack.c.bf16 %v1054_v35, %v1054_v35 }
 0x9db   :  { %3085 = vmatmul.mubr.msk.bf16.vlgmr.msra.gmra.mrb[16].mxu1 %vm75_vm1, %v1060_v36 }
 0x9dc   :  { %3100 = vmatprep.mubr.msk.bf16.mxu1 %vm3511_vm0, %v3510_v1  ;;  %3097 = vmatpush3.bf16.msra.mxu1 %v3345_v25 }
 0x9dd   :  { %3098 = vmatprep.subr.bf16.mxu1 %v3510_v1 }
 0x9e0   :  { %3099 = vmatpush3.bf16.msra.mxu1 %v3346_v15 }
 0x9e1   :  { %3112 = vmatprep.subr.bf16.mxu1 %v3510_v1 }
 0xaae   :  { %v1115_v39 = vpop.f32.mrb[16].mxu1 }
 0xaaf   :  { %v1116_v40 = vadd.f32 %v2766_v38, %v1115_v39  ;;  %v3086_v41 = vpop.f32.mrb[17].mxu1 }
 0xab0   :  { %v1118_v42 = vpop.f32.mrb[18].mxu1 }
 0xab1   :  { %v3922_v43 = vadd.f32 %v1116_v40, %v3873_v37  ;;  %v3087_v44 = vpop.f32.mrb[19].mxu1 }
 0xab2   :  { %v2787_v44 = vld [vmem:[%s4337_s3 + $0x10] ss:$0 sm:$0xff] }
 0xab3   :  { %v1124_v45 = vsel %vm740_vm3, %v3922_v43, 0.0 }
 0xab4   :  { %1125 = vadd.xlane.f32.xlu0 %v1124_v45 }
 0xb41   :  { %v1126_v46 = vpop.xlane.xlu0 %1125 }
 0xb42   :  { %v1127_v47 = vmul.f32 0.03125, %v1126_v46 }
 0xb44   :  { %v1128_v48 = vsub.f32 %v3922_v43, %v1127_v47 }
 0xb46   :  { %v1129_v49 = vmul.f32 %v1128_v48, %v1128_v48 }
 0xb48   :  { %v1130_v50 = vsel %vm740_vm3, %v1129_v49, 0.0 }
 0xb49   :  { %1131 = vadd.xlane.f32.xlu1 %v1130_v50 }
 0xbd6   :  { %v1132_v53 = vpop.xlane.xlu1 %1131 }
 0xbd7   :  { %v1133_v54 = vmul.f32 0.03125, %v1132_v53 }
 0xbd9   :  { %v1134_v55 = vadd.f32 1e-05, %v1133_v54 }
 0xbdb   :  { %3415 = vrsqrt.f32 %v1134_v55 }
 0xbe5   :  { %v3416_v57 = vpop.eup %3415 }
 0xbe6   :  { %v1136_v60 = vmul.f32 %v3416_v57, %v1128_v48 }
 0xbe8   :  { %v1141_v62 = vmul.f32 %v2770_v59, %v1136_v60  ;;  %v3347_v59 = vld [vmem:[%s4346_s12] sm:$0xff]   ;;  %v3348_v60 = vld [vmem:[%s4346_s12 + $0x8] sm:$0xff]  }
 0xbea   :  { %v1146_v63 = vadd.f32 %v2771_v61, %v1141_v62  ;;  %v3349_v61 = vld [vmem:[%s4347_s13] sm:$0xff]  }
 0xbec   :  { %v2772_v0 = vmul.f32 -1.442695, %v1146_v63 }
 0xbee   :  { %3417 = vpow2.f32 %v2772_v0 }
 0xbf8   :  { %v3418_v2 = vpop.eup %3417 }
 0xbf9   :  { %v1150_v3 = vadd.f32 1.0, %v3418_v2 }
 0xbfb   :  { %3419 = vrcp.f32 %v1150_v3  ;;  %v2791_v3 = vld [vmem:[%s4337_s3 + $0x28] ss:$0 sm:$0xff] }
 0xc05   :  { %v3420_v4 = vpop.eup %3419 }
 0xc06   :  { %v1153_v5 = vmul.f32 %v3420_v4, %v1146_v63 }
 0xc08   :  { %v1159_v6 = vpack.c.bf16 %v1153_v5, %v1153_v5  ;;  %v2792_v5 = vld [vmem:[%s4337_s3 + $0x29] ss:$0 sm:$0xff] }
 0xc0a   :  { %3093 = vmatmul.mubr.msk.bf16.vlgmr.msra.gmra.mrb[20].mxu0 %vm75_vm1, %v1159_v6 }
 0xc0b   :  { %3108 = vmatprep.mubr.msk.bf16.mxu0 %vm3511_vm0, %v3510_v1  ;;  %3105 = vmatpush3.bf16.msra.mxu0 %v3347_v59 }
 0xc0c   :  { %3106 = vmatprep.subr.bf16.mxu0 %v3510_v1 }
 0xc0f   :  { %3107 = vmatpush3.bf16.msra.mxu0 %v3348_v60 }
 0xc10   :  { %3120 = vmatprep.subr.bf16.mxu0 %v3510_v1 }
 0xcdd   :  { %v1209_v10 = vpop.f32.mrb[20].mxu0 }
 0xcde   :  { %v1210_v11 = vadd.f32 %v1209_v10, %v592_v9  ;;  %v3094_v12 = vpop.f32.mrb[21].mxu0  ;;  %v3350_v9 = vld [vmem:[%s4347_s13 + $0x8] sm:$0xff]  }
 0xcdf   :  { %v1212_v13 = vpop.f32.mrb[22].mxu0  ;;  %v2793_v10 = vld [vmem:[%s4337_s3 + $0x2a] ss:$0 sm:$0xff] }
 0xce0   :  { %v3095_v14 = vpop.f32.mrb[23].mxu0  ;;  %v1217_v18 = vsel %vm740_vm3, %v1210_v11, 0.0 }
 0xce1   :  { %1218 = vadd.xlane.f32.xlu0 %v1217_v18 }
 0xd6e   :  { %v1219_v16 = vpop.xlane.xlu0 %1218 }
 0xd6f   :  { %v1220_v19 = vmul.f32 0.03125, %v1219_v16 }
 0xd71   :  { %v1221_v20 = vsub.f32 %v1210_v11, %v1220_v19  ;;  %v2797_v19 = vld [vmem:[%s4337_s3 + $0x2b] ss:$0 sm:$0xff] }
 0xd73   :  { %v1222_v21 = vmul.f32 %v1221_v20, %v1221_v20 }
 0xd75   :  { %v1223_v24 = vsel %vm740_vm3, %v1222_v21, 0.0 }
 0xd76   :  { %1224 = vadd.xlane.f32.xlu1 %v1223_v24 }
 0xe03   :  { %v1225_v26 = vpop.xlane.xlu1 %1224 }
 0xe04   :  { %v1226_v27 = vmul.f32 0.03125, %v1225_v26 }
 0xe06   :  { %v1227_v29 = vadd.f32 1e-05, %v1226_v27 }
 0xe08   :  { %3421 = vrsqrt.f32 %v1227_v29 }
 0xe12   :  { %v3422_v30 = vpop.eup %3421 }
 0xe13   :  { %v1229_v32 = vmul.f32 %v3422_v30, %v1221_v20 }
 0xe15   :  { %v1234_v34 = vmul.f32 %v2780_v31, %v1229_v32 }
 0xe17   :  { %v1239_v35 = vadd.f32 %v2781_v33, %v1234_v34  ;;  %v3351_v34 = vld [vmem:[%s4342_s8 + $0x30] sm:$0xff]  }
 0xe19   :  { %v2782_v36 = vmul.f32 -1.442695, %v1239_v35 }
 0xe1b   :  { %3423 = vpow2.f32 %v2782_v36 }
 0xe25   :  { %v3424_v38 = vpop.eup %3423 }
 0xe26   :  { %v1243_v39 = vadd.f32 1.0, %v3424_v38 }
 0xe28   :  { %3425 = vrcp.f32 %v1243_v39 }
 0xe32   :  { %v3426_v40 = vpop.eup %3425 }
 0xe33   :  { %v1246_v41 = vmul.f32 %v3426_v40, %v1239_v35  ;;  %v3352_v35 = vld [vmem:[%s4342_s8 + $0x38] sm:$0xff]   ;;  %s3513_s8 = smov 32  }
 0xe35   :  { %v1252_v42 = vpack.c.bf16 %v1246_v41, %v1246_v41  ;;  %v2801_v41 = vld [vmem:[%s4337_s3 + $0x11] ss:$0 sm:$0xff] }
 0xe37   :  { %3101 = vmatmul.mubr.msk.bf16.vlgmr.msra.gmra.mrb[20].mxu1 %vm75_vm1, %v1252_v42 }
 0xe38   :  { %3116 = vmatprep.mubr.msk.bf16.mxu1 %vm3511_vm0, %v3510_v1  ;;  %3113 = vmatpush3.bf16.msra.mxu1 %v3349_v61 }
 0xe39   :  { %3114 = vmatprep.subr.bf16.mxu1 %v3510_v1 }
 0xe3c   :  { %3115 = vmatpush3.bf16.msra.mxu1 %v3350_v9 }
 0xe3d   :  { %3128 = vmatprep.subr.bf16.mxu1 %v3510_v1 }
 0xf0a   :  { %v1307_v45 = vpop.f32.mrb[20].mxu1 }
 0xf0b   :  { %v1308_v46 = vadd.f32 %v2787_v44, %v1307_v45  ;;  %v3102_v47 = vpop.f32.mrb[21].mxu1  ;;  %v2802_v44 = vld [vmem:[%s4337_s3 + $0x12] ss:$0 sm:$0xff] }
 0xf0c   :  { %v1310_v48 = vpop.f32.mrb[22].mxu1 }
 0xf0d   :  { %v1313_v49 = vadd.f32 %v1308_v46, %v3922_v43  ;;  %v3103_v50 = vpop.f32.mrb[23].mxu1 }
 0xf0f   :  { %v1316_v51 = vsel %vm740_vm3, %v1313_v49, 0.0 }
 0xf10   :  { %1317 = vadd.xlane.f32.xlu0 %v1316_v51 }
 0xf9d   :  { %v1318_v52 = vpop.xlane.xlu0 %1317 }
 0xf9e   :  { %v1319_v53 = vmul.f32 0.03125, %v1318_v52 }
 0xfa0   :  { %v1320_v54 = vsub.f32 %v1313_v49, %v1319_v53  ;;  %v207_v53 = vsub.s32 3, %v3841_v56 }
 0xfa2   :  { %v1321_v55 = vmul.f32 %v1320_v54, %v1320_v54 }
 0xfa4   :  { %v1322_v57 = vsel %vm740_vm3, %v1321_v55, 0.0 }
 0xfa5   :  { %1323 = vadd.xlane.f32.xlu1 %v1322_v57 }
0x1032   :  { %v1324_v62 = vpop.xlane.xlu1 %1323 }
0x1033   :  { %v1325_v63 = vmul.f32 0.03125, %v1324_v62 }
0x1035   :  { %v1326_v0 = vadd.f32 1e-05, %v1325_v63 }
0x1037   :  { %3427 = vrsqrt.f32 %v1326_v0 }
0x1041   :  { %v3428_v2 = vpop.eup %3427 }
0x1042   :  { %v1328_v4 = vmul.f32 %v3428_v2, %v1320_v54  ;;  %v208_v54 = vrot.slane %v3847_v58, %v207_v53 }
0x1044   :  { %v1333_v6 = vmul.f32 %v2791_v3, %v1328_v4  ;;  %v594_v55 = vadd.f32 %v3809_v17, %v208_v54  ;;  %v3353_v17 = vld [vmem:[%s4343_s9 + $0x30] sm:$0xff]  }
0x1046   :  { %v1338_v7 = vadd.f32 %v2792_v5, %v1333_v6  ;;  %v3354_v6 = vld [vmem:[%s4343_s9 + $0x38] sm:$0xff]  }
0x1048   :  { %v1343_v8 = vpack.c.bf16 %v1338_v7, %v1338_v7 }
0x104a   :  { %3109 = vmatmul.mubr.msk.bf16.vlgmr.msra.gmra.mrb[24].mxu0 %vm75_vm1, %v1343_v8 }
0x104b   :  { %3124 = vmatprep.mubr.msk.bf16.mxu0 %vm3511_vm0, %v3510_v1  ;;  %3121 = vmatpush3.bf16.msra.mxu0 %v3351_v34 }
0x104c   :  { %3122 = vmatprep.subr.bf16.mxu0 %v3510_v1 }
0x104f   :  { %3123 = vmatpush3.bf16.msra.mxu0 %v3352_v35 }
0x1050   :  { %3136 = vmatprep.subr.bf16.mxu0 %v3510_v1 }
0x111d   :  { %v1398_v11 = vpop.f32.mrb[24].mxu0 }
0x111e   :  { %v1399_v12 = vadd.f32 %v2793_v10, %v1398_v11  ;;  %v3110_v13 = vpop.f32.mrb[25].mxu0  ;;  %v2811_v10 = vld [vmem:[%s4337_s3 + $0x13] ss:$0 sm:$0xff] }
0x111f   :  { %v1401_v14 = vpop.f32.mrb[26].mxu0 }
0x1120   :  { %v1408_v18 = vpack.c.bf16 %v1399_v12, %v1399_v12  ;;  %v3111_v16 = vpop.f32.mrb[27].mxu0  ;;  %v2812_v12 = vld [vmem:[%s4337_s3 + $0x14] ss:$0 sm:$0xff] }
0x1122   :  { %3117 = vmatmul.mubr.msk.bf16.vlgmr.msra.gmra.mrb[24].mxu1 %vm75_vm1, %v1408_v18 }
0x1123   :  { %3132 = vmatprep.mubr.msk.bf16.mxu1 %vm3511_vm0, %v3510_v1  ;;  %3129 = vmatpush3.bf16.msra.mxu1 %v3353_v17 }
0x1124   :  { %3130 = vmatprep.subr.bf16.mxu1 %v3510_v1 }
0x1127   :  { %3131 = vmatpush3.bf16.msra.mxu1 %v3354_v6 }
0x1128   :  { %3148 = vmatprep.subr.bf16.mxu1 %v3510_v1 }
0x11f5   :  { %v1463_v20 = vpop.f32.mrb[24].mxu1 }
0x11f6   :  { %v1464_v21 = vadd.f32 %v2797_v19, %v1463_v20  ;;  %v3118_v24 = vpop.f32.mrb[25].mxu1 }
0x11f7   :  { %v1466_v25 = vpop.f32.mrb[26].mxu1 }
0x11f8   :  { %v4007_v15 = vadd.f32 %v1464_v21, %v1313_v49  ;;  %v3119_v26 = vpop.f32.mrb[27].mxu1  ;;  %v2818_v25 = vld [vmem:[%s4337_s3 + $0x15] ss:$0 sm:$0xff] }
0x11fa   :  { %v1472_v27 = vsel %vm740_vm3, %v4007_v15, 0.0 }
0x11fb   :  { %1473 = vadd.xlane.f32.xlu0 %v1472_v27 }
0x1288   :  { %v1474_v29 = vpop.xlane.xlu0 %1473 }
0x1289   :  { %v1475_v30 = vmul.f32 0.03125, %v1474_v29 }
0x128b   :  { %v1476_v31 = vsub.f32 %v4007_v15, %v1475_v30 }
0x128d   :  { %v1477_v32 = vmul.f32 %v1476_v31, %v1476_v31 }
0x128f   :  { %v1478_v33 = vsel %vm740_vm3, %v1477_v32, 0.0 }
0x1290   :  { %1479 = vadd.xlane.f32.xlu1 %v1478_v33 }
0x131d   :  { %v1480_v36 = vpop.xlane.xlu1 %1479 }
0x131e   :  { %v1481_v38 = vmul.f32 0.03125, %v1480_v36 }
0x1320   :  { %v1482_v39 = vadd.f32 1e-05, %v1481_v38 }
0x1322   :  { %3429 = vrsqrt.f32 %v1482_v39 }
0x132c   :  { %v3430_v40 = vpop.eup %3429 }
0x132d   :  { %v1484_v42 = vmul.f32 %v3430_v40, %v1476_v31 }
0x132f   :  { %v1489_v45 = vmul.f32 %v2801_v41, %v1484_v42  ;;  %v3356_v42 = vld [vmem:[%s4344_s10 + $0x8] sm:$0xff]  }
0x1331   :  { %v1494_v46 = vadd.f32 %v2802_v44, %v1489_v45  ;;  %v3357_v44 = vld [vmem:[%s4344_s10 + $0x10] sm:$0xff]   ;;  %v3358_v45 = vld [vmem:[%s4344_s10 + $0x18] sm:$0xff]  }
0x1333   :  { %v2803_v47 = vmul.f32 -1.442695, %v1494_v46 }
0x1335   :  { %3431 = vpow2.f32 %v2803_v47 }
0x133f   :  { %v3432_v48 = vpop.eup %3431 }
0x1340   :  { %v1498_v49 = vadd.f32 1.0, %v3432_v48 }
0x1342   :  { %3433 = vrcp.f32 %v1498_v49 }
0x134c   :  { %v3434_v50 = vpop.eup %3433 }
0x134d   :  { %v1501_v51 = vmul.f32 %v3434_v50, %v1494_v46  ;;  %v2822_v50 = vld [vmem:[%s4337_s3 + $0x16] ss:$0 sm:$0xff] }
0x134f   :  { %v1507_v52 = vpack.c.bf16 %v1501_v51, %v1501_v51 }
0x1351   :  { %3125 = vmatmul.mubr.msk.bf16.vlgmr.msra.gmra.mrb[28].mxu0 %vm75_vm1, %v1507_v52  ;;  %v2823_v52 = vld [vmem:[%s4337_s3 + $0x17] ss:$0 sm:$0xff] }
0x1352   :  { %3144 = vmatprep.mubr.msk.bf16.mxu0 %vm3511_vm0, %v3510_v1 }
0x1424   :  { %v1557_v57 = vpop.f32.mrb[28].mxu0 }
0x1425   :  { %v1558_v59 = vadd.f32 %v1557_v57, %v594_v55  ;;  %v3126_v60 = vpop.f32.mrb[29].mxu0 }
0x1426   :  { %v1560_v61 = vpop.f32.mrb[30].mxu0 }
0x1427   :  { %v3127_v62 = vpop.f32.mrb[31].mxu0  ;;  %v1565_v63 = vsel %vm740_vm3, %v1558_v59, 0.0 }
0x1428   :  { %1566 = vadd.xlane.f32.xlu0 %v1565_v63  ;;  %v211_v63 = vsub.s32 4, %v3841_v56 }
0x143e   :  { %1663 = vrot.lane.b32.xlu0 %v3922_v43, %s3513_s8 }
0x14b5   :  { %v1567_v0 = vpop.xlane.xlu0 %1566 }
0x14b6   :  { %v1568_v2 = vmul.f32 0.03125, %v1567_v0  ;;  %v212_v0 = vrot.slane %v3847_v58, %v211_v63  ;;  %v3360_v58 = vld [vmem:[%s4343_s9 + $0x48] sm:$0xff]   ;;  %v3368_v63 = vld [vmem:[%s4344_s10 + $0x38] sm:$0xff]  }
0x14b8   :  { %v1569_v3 = vsub.f32 %v1558_v59, %v1568_v2  ;;  %v633_v2 = vadd.f32 %v3811_v22, %v212_v0  ;;  %v3359_v22 = vld [vmem:[%s4343_s9 + $0x40] sm:$0xff]  }
0x14b9   :  { %v1664_v33 = vpop.permute.xlu0 %1663 }
0x14ba   :  { %v1570_v4 = vmul.f32 %v1569_v3, %v1569_v3 }
0x14bc   :  { %v1571_v5 = vsel %vm740_vm3, %v1570_v4, 0.0 }
0x14bd   :  { %1572 = vadd.xlane.f32.xlu1 %v1571_v5 }
0x154a   :  { %v1573_v43 = vpop.xlane.xlu1 %1572 }
0x154b   :  { %v1574_v7 = vmul.f32 0.03125, %v1573_v43 }
0x154d   :  { %v1575_v8 = vadd.f32 1e-05, %v1574_v7 }
0x154f   :  { %3435 = vrsqrt.f32 %v1575_v8 }
0x1559   :  { %v3436_v9 = vpop.eup %3435 }
0x155a   :  { %v1577_v11 = vmul.f32 %v3436_v9, %v1569_v3 }
0x155c   :  { %v1582_v13 = vmul.f32 %v2811_v10, %v1577_v11 }
0x155e   :  { %v1587_v14 = vadd.f32 %v2812_v12, %v1582_v13 }
0x1560   :  { %v2813_v18 = vmul.f32 -1.442695, %v1587_v14 }
0x1562   :  { %3437 = vpow2.f32 %v2813_v18 }
0x156c   :  { %v3438_v16 = vpop.eup %3437 }
0x156d   :  { %v1591_v19 = vadd.f32 1.0, %v3438_v16 }
0x156f   :  { %3439 = vrcp.f32 %v1591_v19  ;;  %v2831_v19 = vld [vmem:[%s4337_s3 + $0x19] ss:$0 sm:$0xff] }
0x1579   :  { %v3440_v20 = vpop.eup %3439 }
0x157a   :  { %v1594_v21 = vmul.f32 %v3440_v20, %v1587_v14 }
0x157c   :  { %v1600_v24 = vpack.c.bf16 %v1594_v21, %v1594_v21 }
0x157e   :  { %3133 = vmatmul.mubr.msk.bf16.vlgmr.msra.gmra.mrb[28].mxu1 %vm75_vm1, %v1600_v24 }
0x157f   :  { %3152 = vmatprep.mubr.msk.bf16.mxu1 %vm3511_vm0, %v3510_v1  ;;  %3149 = vmatpush3.bf16.msra.mxu1 %v3359_v22 }
0x1580   :  { %3150 = vmatprep.subr.bf16.mxu1 %v3510_v1 }
0x1583   :  { %3151 = vmatpush3.bf16.msra.mxu1 %v3360_v58  ;;  %v3369_v58 = vld [vmem:[%s4345_s11 + $0x20] sm:$0xff]  }
0x1584   :  { %3156 = vmatprep.subr.bf16.mxu1 %v3510_v1 }
0x1651   :  { %v1655_v26 = vpop.f32.mrb[28].mxu1 }
0x1652   :  { %v1656_v27 = vadd.f32 %v2818_v25, %v1655_v26  ;;  %v3134_v29 = vpop.f32.mrb[29].mxu1 }
0x1653   :  { %v1658_v30 = vpop.f32.mrb[30].mxu1 }
0x1654   :  { %v1661_v31 = vadd.f32 %v1656_v27, %v4007_v15  ;;  %v3135_v32 = vpop.f32.mrb[31].mxu1  ;;  %v3355_v15 = vld [vmem:[%s4344_s10] sm:$0xff]  }
0x1655   :  { %3137 = vmatpush3.bf16.msra.mxu0 %v3355_v15  ;;  %v3361_v30 = vld [vmem:[%s4345_s11] sm:$0xff]   ;;  %v3362_v32 = vld [vmem:[%s4345_s11 + $0x8] sm:$0xff]   ;;  %v2837_v15 = vld [vmem:[%s4337_s3 + $0x1a] ss:$0 sm:$0xff] }
0x1656   :  { %v4059_v34 = vsel %vm75_vm1, %v1661_v31, %v1664_v33  ;;  %3138 = vmatprep.subr.bf16.mxu0 %v3510_v1  ;;  %v3363_v33 = vld [vmem:[%s4345_s11 + $0x10] sm:$0xff]  }
0x1657   :  { %v1670_v35 = vsel %vm1669_vm4, %v4059_v34, 0.0 }
0x1658   :  { %1671 = vadd.xlane.f32.xlu1 %v1670_v35  ;;  %v3364_v35 = vld [vmem:[%s4345_s11 + $0x18] sm:$0xff]  }
0x1659   :  { %3139 = vmatpush3.bf16.msra.mxu0 %v3356_v42 }
0x165a   :  { %3140 = vmatprep.subr.bf16.mxu0 %v3510_v1 }
0x165d   :  { %3141 = vmatpush3.bf16.msra.mxu0 %v3357_v44 }
0x165e   :  { %3142 = vmatprep.subr.bf16.mxu0 %v3510_v1 }
0x1661   :  { %3143 = vmatpush3.bf16.msra.mxu0 %v3358_v45 }
0x1662   :  { %3168 = vmatprep.subr.bf16.mxu0 %v3510_v1 }
0x16e5   :  { %v1672_v36 = vpop.xlane.xlu1 %1671 }
0x16e6   :  { %v1674_v38 = vmul.f32 0.015625, %v1672_v36  ;;  %v1884_v36 = vpack.c.bf16 %v4059_v34, %v4059_v34 }
0x16e8   :  { %v1675_v39 = vsub.f32 %v4059_v34, %v1674_v38  ;;  %v2846_v34 = vld [vmem:[%s4337_s3 + $0x1b] ss:$0 sm:$0xff] }
0x16ea   :  { %v1676_v40 = vmul.f32 %v1675_v39, %v1675_v39 }
0x16ec   :  { %v1677_v41 = vsel %vm1669_vm4, %v1676_v40, 0.0 }
0x16ed   :  { %1678 = vadd.xlane.f32.xlu1 %v1677_v41 }
0x177a   :  { %v1679_v46 = vpop.xlane.xlu1 %1678 }
0x177b   :  { %v1680_v47 = vmul.f32 0.015625, %v1679_v46 }
0x177d   :  { %v1681_v48 = vadd.f32 1e-05, %v1680_v47 }
0x177f   :  { %3441 = vrsqrt.f32 %v1681_v48 }
0x1789   :  { %v3442_v49 = vpop.eup %3441 }
0x178a   :  { %v1683_v51 = vmul.f32 %v3442_v49, %v1675_v39 }
0x178c   :  { %v1688_v53 = vmul.f32 %v2822_v50, %v1683_v51 }
0x178e   :  { %v1693_v54 = vadd.f32 %v2823_v52, %v1688_v53 }
0x1790   :  { %v2824_v55 = vmul.f32 -1.442695, %v1693_v54 }
0x1792   :  { %3443 = vpow2.f32 %v2824_v55 }
0x179c   :  { %v3444_v57 = vpop.eup %3443 }
0x179d   :  { %v1697_v59 = vadd.f32 1.0, %v3444_v57 }
0x179f   :  { %3445 = vrcp.f32 %v1697_v59 }
0x17a9   :  { %v3446_v60 = vpop.eup %3445 }
0x17aa   :  { %v1700_v61 = vmul.f32 %v3446_v60, %v1693_v54  ;;  %v3365_v60 = vld [vmem:[%s4344_s10 + $0x20] sm:$0xff]  }
0x17ac   :  { %v1709_v62 = vpack.c.bf16 %v1700_v61, %v1700_v61  ;;  %v3366_v61 = vld [vmem:[%s4344_s10 + $0x28] sm:$0xff]  }
0x17ae   :  { %3145 = vmatmul.mubr.msk.bf16.vlgmr.msra.gmra.mrb[32].mxu0 %vm1734_vm5, %v1709_v62  ;;  %v3367_v62 = vld [vmem:[%s4344_s10 + $0x30] sm:$0xff]  }
0x17af   :  { %3176 = vmatprep.mubr.msk.bf16.mxu0 %vm3511_vm0, %v3510_v1  ;;  %3169 = vmatpush3.bf16.msra.mxu0 %v3365_v60 }
0x17b0   :  { %3170 = vmatprep.subr.bf16.mxu0 %v3510_v1 }
0x17b3   :  { %3171 = vmatpush3.bf16.msra.mxu0 %v3366_v61 }
0x17b4   :  { %3172 = vmatprep.subr.bf16.mxu0 %v3510_v1 }
0x17b7   :  { %3173 = vmatpush3.bf16.msra.mxu0 %v3367_v62  ;;  %v2887_v62 = vld [vmem:[%s4337_s3 + $0x21] ss:$0 sm:$0xff] }
0x17b8   :  { %3174 = vmatprep.subr.bf16.mxu0 %v3510_v1 }
0x17bb   :  { %3175 = vmatpush3.bf16.msra.mxu0 %v3368_v63 }
0x17bc   :  { %3188 = vmatprep.subr.bf16.mxu0 %v3510_v1 }
0x1881   :  { %v1772_v3 = vpop.f32.mrb[32].mxu0 }
0x1882   :  { %v1773_v4 = vadd.f32 %v1772_v3, %v633_v2  ;;  %v3146_v5 = vpop.f32.mrb[33].mxu0 }
0x1883   :  { %v1775_v17 = vpop.f32.mrb[34].mxu0  ;;  %v2847_v5 = vld [vmem:[%s4337_s3 + $0x1c] ss:$0 sm:$0xff] }
0x1884   :  { %v3147_v6 = vpop.f32.mrb[35].mxu0  ;;  %v1780_v43 = vsel %vm740_vm3, %v1773_v4, 0.0 }
0x1885   :  { %1781 = vadd.xlane.f32.xlu1 %v1780_v43  ;;  %v2848_v6 = vld [vmem:[%s4337_s3 + $0x1d] ss:$0 sm:$0xff] }
0x1912   :  { %v1782_v7 = vpop.xlane.xlu1 %1781 }
0x1913   :  { %v1783_v8 = vmul.f32 0.03125, %v1782_v7 }
0x1915   :  { %v1784_v9 = vsub.f32 %v1773_v4, %v1783_v8 }
0x1917   :  { %v1785_v10 = vmul.f32 %v1784_v9, %v1784_v9 }
0x1919   :  { %v1786_v11 = vsel %vm740_vm3, %v1785_v10, 0.0 }
0x191a   :  { %1787 = vadd.xlane.f32.xlu1 %v1786_v11 }
0x192b   :  { %1960 = vrot.lane.b32.xlu1 %v3873_v37, %s3513_s8  ;;  %v2830_v37 = vld [vmem:[%s4337_s3 + $0x18] ss:$0 sm:$0xff] }
0x19a7   :  { %v1788_v12 = vpop.xlane.xlu1 %1787 }
0x19a8   :  { %v1789_v13 = vmul.f32 0.03125, %v1788_v12 }
0x19aa   :  { %v1790_v14 = vadd.f32 1e-05, %v1789_v13  ;;  %v3370_v13 = vld [vmem:[%s4345_s11 + $0x28] sm:$0xff]  }
0x19ab   :  { %v1961_v50 = vpop.permute.xlu1 %1960 }
0x19ac   :  { %3447 = vrsqrt.f32 %v1790_v14  ;;  %v3371_v14 = vld [vmem:[%s4345_s11 + $0x30] sm:$0xff]  }
0x19b6   :  { %v3448_v18 = vpop.eup %3447 }
0x19b7   :  { %v1792_v16 = vmul.f32 %v3448_v18, %v1784_v9  ;;  %v3372_v18 = vld [vmem:[%s4345_s11 + $0x38] sm:$0xff]  }
0x19b9   :  { %v1797_v20 = vmul.f32 %v2830_v37, %v1792_v16  ;;  %v215_v16 = vsub.s32 5, %v3841_v56 }
0x19bb   :  { %v1802_v21 = vadd.f32 %v2831_v19, %v1797_v20  ;;  %v4192_v19 = vld [vmem:[%s4338_s4] sm:$0xff] }
0x19bc   :  { %v216_v20 = vrot.slane %v4192_v19, %v215_v16 }
0x19bd   :  { %v2832_v24 = vmul.f32 -1.442695, %v1802_v21 }
0x19bf   :  { %3449 = vpow2.f32 %v2832_v24 }
0x19c9   :  { %v3450_v25 = vpop.eup %3449 }
0x19ca   :  { %v1806_v26 = vadd.f32 1.0, %v3450_v25 }
0x19cc   :  { %3451 = vrcp.f32 %v1806_v26 }
0x19d6   :  { %v3452_v27 = vpop.eup %3451 }
0x19d7   :  { %v1809_v29 = vmul.f32 %v3452_v27, %v1802_v21  ;;  %v635_v21 = vadd.f32 %v3813_v23, %v216_v20  ;;  %v3373_v23 = vld [vmem:[%s4343_s9 + $0x50] sm:$0xff]   ;;  %v2889_v20 = vld [vmem:[%s4337_s3 + $0x23] ss:$0 sm:$0xff] }
0x19d9   :  { %v1815_v31 = vpack.c.bf16 %v1809_v29, %v1809_v29 }
0x19db   :  { %3153 = vmatmul.mubr.msk.bf16.vlgmr.msra.gmra.mrb[32].mxu1 %vm75_vm1, %v1815_v31 }
0x19dc   :  { %3157 = vmatpush3.bf16.msra.mxu1 %v3361_v30  ;;  %3164 = vmatprep.mubr.msk.bf16.mxu1 %vm3511_vm0, %v3510_v1 }
0x19dd   :  { %3158 = vmatprep.subr.bf16.mxu1 %v3510_v1 }
0x19e0   :  { %3159 = vmatpush3.bf16.msra.mxu1 %v3362_v32 }
0x19e1   :  { %3160 = vmatprep.subr.bf16.mxu1 %v3510_v1 }
0x19e4   :  { %3161 = vmatpush3.bf16.msra.mxu1 %v3363_v33 }
0x19e5   :  { %3162 = vmatprep.subr.bf16.mxu1 %v3510_v1 }
0x19e8   :  { %3163 = vmatpush3.bf16.msra.mxu1 %v3364_v35 }
0x19e9   :  { %3180 = vmatprep.subr.bf16.mxu1 %v3510_v1 }
0x19eb   :  { %3165 = vmatmul.mubr.msk.bf16.vlgmr.msra.gmra.mrb[36].mxu1 %vm1734_vm5, %v1884_v36 }
0x19ec   :  { %3184 = vmatprep.mubr.msk.bf16.mxu1 %vm3511_vm0, %v3510_v1  ;;  %3181 = vmatpush3.bf16.msra.mxu1 %v3373_v23 }
0x19ed   :  { %3182 = vmatprep.subr.bf16.mxu1 %v3510_v1 }
0x1aae   :  { %v1870_v38 = vpop.f32.mrb[32].mxu1 }
0x1aaf   :  { %v3154_v39 = vpop.f32.mrb[33].mxu1  ;;  %v1871_v42 = vadd.f32 %v2837_v15, %v1870_v38  ;;  %v3374_v15 = vld [vmem:[%s4343_s9 + $0x58] sm:$0xff]  }
0x1ab0   :  { %v1873_v40 = vpop.f32.mrb[34].mxu1  ;;  %3183 = vmatpush3.bf16.msra.mxu1 %v3374_v15 }
0x1ab1   :  { %v3155_v41 = vpop.f32.mrb[35].mxu1  ;;  %3212 = vmatprep.subr.bf16.mxu1 %v3510_v1 }
0x1abe   :  { %v1946_v44 = vpop.f32.mrb[36].mxu1 }
0x1abf   :  { %v1952_v45 = vadd.f32 %v1946_v44, %v1871_v42  ;;  %v3166_v46 = vpop.f32.mrb[37].mxu1 }
0x1ac0   :  { %v1949_v47 = vpop.f32.mrb[38].mxu1 }
0x1ac1   :  { %v1958_v48 = vadd.f32 %v2846_v34, %v1952_v45  ;;  %v3167_v49 = vpop.f32.mrb[39].mxu1  ;;  %v2864_v47 = vld [vmem:[%s4337_s3 + $0x1f] ss:$0 sm:$0xff] }
0x1ac3   :  { %v1963_v51 = vsel %vm75_vm1, %v1958_v48, %v1961_v50 }
0x1ac4   :  { %v1966_v52 = vsel %vm1669_vm4, %v1963_v51, 0.0  ;;  %v2180_v37 = vpack.c.bf16 %v1963_v51, %v1963_v51 }
0x1ac5   :  { %1967 = vadd.xlane.f32.xlu0 %v1966_v52 }
0x1b52   :  { %v1968_v53 = vpop.xlane.xlu0 %1967 }
0x1b53   :  { %v1969_v54 = vmul.f32 0.015625, %v1968_v53 }
0x1b55   :  { %v1970_v55 = vsub.f32 %v1963_v51, %v1969_v54 }
0x1b57   :  { %v1971_v57 = vmul.f32 %v1970_v55, %v1970_v55 }
0x1b59   :  { %v1972_v59 = vsel %vm1669_vm4, %v1971_v57, 0.0  ;;  %v2870_v57 = vld [vmem:[%s4337_s3 + $0x20] ss:$0 sm:$0xff] }
0x1b5a   :  { %1973 = vadd.xlane.f32.xlu1 %v1972_v59 }
0x1be7   :  { %v1974_v0 = vpop.xlane.xlu1 %1973 }
0x1be8   :  { %v1975_v2 = vmul.f32 0.015625, %v1974_v0 }
0x1bea   :  { %v1976_v3 = vadd.f32 1e-05, %v1975_v2 }
0x1bec   :  { %3453 = vrsqrt.f32 %v1976_v3 }
0x1bf6   :  { %v3454_v4 = vpop.eup %3453 }
0x1bf7   :  { %v1978_v17 = vmul.f32 %v3454_v4, %v1970_v55 }
0x1bf9   :  { %v1983_v43 = vmul.f32 %v2847_v5, %v1978_v17 }
0x1bfb   :  { %v1988_v7 = vadd.f32 %v2848_v6, %v1983_v43 }
0x1bfd   :  { %v2849_v8 = vmul.f32 -1.442695, %v1988_v7 }
0x1bff   :  { %3455 = vpow2.f32 %v2849_v8 }
0x1c09   :  { %v3456_v9 = vpop.eup %3455 }
0x1c0a   :  { %v1992_v10 = vadd.f32 1.0, %v3456_v9 }
0x1c0c   :  { %3457 = vrcp.f32 %v1992_v10  ;;  %v3375_v10 = vld [vmem:[%s4344_s10 + $0x40] sm:$0xff]  }
0x1c16   :  { %v3458_v11 = vpop.eup %3457 }
0x1c17   :  { %v1995_v22 = vmul.f32 %v3458_v11, %v1988_v7  ;;  %v3376_v11 = vld [vmem:[%s4344_s10 + $0x48] sm:$0xff]  }
0x1c19   :  { %v2005_v12 = vpack.c.bf16 %v1995_v22, %v1995_v22  ;;  %v3377_v22 = vld [vmem:[%s4344_s10 + $0x50] sm:$0xff]  }
0x1c1b   :  { %3177 = vmatmul.mubr.msk.bf16.vlgmr.msra.gmra.mrb[36].mxu0 %vm1734_vm5, %v2005_v12 }
0x1c1c   :  { %3189 = vmatpush3.bf16.msra.mxu0 %v3369_v58  ;;  %3196 = vmatprep.mubr.msk.bf16.mxu0 %vm3511_vm0, %v3510_v1  ;;  %v3378_v58 = vld [vmem:[%s4344_s10 + $0x58] sm:$0xff]  }
0x1c1d   :  { %3190 = vmatprep.subr.bf16.mxu0 %v3510_v1 }
0x1c20   :  { %3191 = vmatpush3.bf16.msra.mxu0 %v3370_v13 }
0x1c21   :  { %3192 = vmatprep.subr.bf16.mxu0 %v3510_v1 }
0x1c24   :  { %3193 = vmatpush3.bf16.msra.mxu0 %v3371_v14 }
0x1c25   :  { %3194 = vmatprep.subr.bf16.mxu0 %v3510_v1 }
0x1c28   :  { %3195 = vmatpush3.bf16.msra.mxu0 %v3372_v18 }
0x1c29   :  { %3200 = vmatprep.subr.bf16.mxu0 %v3510_v1 }
0x1c2b   :  { %3197 = vmatmul.mubr.msk.bf16.vlgmr.msra.gmra.mrb[40].mxu0 %vm1734_vm5, %v2180_v37  ;;  %v2888_v37 = vld [vmem:[%s4337_s3 + $0x22] ss:$0 sm:$0xff] }
0x1c2c   :  { %3208 = vmatprep.mubr.msk.bf16.mxu0 %vm3511_vm0, %v3510_v1  ;;  %3201 = vmatpush3.bf16.msra.mxu0 %v3375_v10 }
0x1c2d   :  { %3202 = vmatprep.subr.bf16.mxu0 %v3510_v1 }
0x1c30   :  { %3203 = vmatpush3.bf16.msra.mxu0 %v3376_v11 }
0x1c31   :  { %3204 = vmatprep.subr.bf16.mxu0 %v3510_v1 }
0x1c34   :  { %3205 = vmatpush3.bf16.msra.mxu0 %v3377_v22 }
0x1c35   :  { %3206 = vmatprep.subr.bf16.mxu0 %v3510_v1 }
0x1c38   :  { %3207 = vmatpush3.bf16.msra.mxu0 %v3378_v58 }
0x1cee   :  { %v2067_v24 = vpop.f32.mrb[36].mxu0 }
0x1cef   :  { %v2068_v25 = vadd.f32 %v2067_v24, %v635_v21  ;;  %v3178_v26 = vpop.f32.mrb[37].mxu0 }
0x1cf0   :  { %v2070_v27 = vpop.f32.mrb[38].mxu0 }
0x1cf1   :  { %v3179_v29 = vpop.f32.mrb[39].mxu0  ;;  %v2075_v30 = vsel %vm740_vm3, %v2068_v25, 0.0 }
0x1cf2   :  { %2076 = vadd.xlane.f32.xlu0 %v2075_v30 }
0x1cfe   :  { %v2242_v31 = vpop.f32.mrb[40].mxu0 }
0x1cff   :  { %v3198_v32 = vpop.f32.mrb[41].mxu0 }
0x1d00   :  { %v2245_v33 = vpop.f32.mrb[42].mxu0  ;;  %v219_v32 = vsub.s32 6, %v3841_v56  ;;  %v3379_v56 = vld [vmem:[%s4343_s9 + $0x60] sm:$0xff]  }
0x1d01   :  { %v3199_v35 = vpop.f32.mrb[43].mxu0 }
0x1d02   :  { %v220_v33 = vrot.slane %v4192_v19, %v219_v32  ;;  %v3380_v19 = vld [vmem:[%s4343_s9 + $0x68] sm:$0xff]  }
0x1d7f   :  { %v2077_v36 = vpop.xlane.xlu0 %2076 }
0x1d80   :  { %v2078_v38 = vmul.f32 0.03125, %v2077_v36 }
0x1d82   :  { %v2079_v39 = vsub.f32 %v2068_v25, %v2078_v38 }
0x1d84   :  { %v2080_v40 = vmul.f32 %v2079_v39, %v2079_v39 }
0x1d86   :  { %v2081_v41 = vsel %vm740_vm3, %v2080_v40, 0.0 }
0x1d87   :  { %2082 = vadd.xlane.f32.xlu0 %v2081_v41 }
0x1d9d   :  { %2256 = vrot.lane.b32.xlu0 %v3818_v28, %s3513_s8  ;;  %v2863_v28 = vld [vmem:[%s4337_s3 + $0x1e] ss:$0 sm:$0xff]  ;;  %s3486_s8 = scalar_lea.vmem %s2665_s0, 64 }
0x1d9e   :  { %p3487_p0 = scmp.ne.s32.totalorder %s2665_s0, %s3486_s8  ;;  %p3492_p2 = scmp.lt.s32.totalorder %s3486_s8, %s3486_s8 }
0x1da0   :  { %p3493_p3 = por %p3492_p2, %p3491_p1 }
0x1da2   :  { %p3494_p4 = pnand %p3493_p3, %p3487_p0 }
0x1e14   :  { %v2083_v42 = vpop.xlane.xlu0 %2082 }
0x1e15   :  { %v2084_v44 = vmul.f32 0.03125, %v2083_v42 }
0x1e17   :  { %v2085_v34 = vadd.f32 1e-05, %v2084_v44 }
0x1e18   :  { %v2257_v4 = vpop.permute.xlu0 %2256 }
0x1e19   :  { %3459 = vrsqrt.f32 %v2085_v34 }
0x1e23   :  { %v3460_v45 = vpop.eup %3459 }
0x1e24   :  { %v2087_v46 = vmul.f32 %v3460_v45, %v2079_v39 }
0x1e26   :  { %v2092_v48 = vmul.f32 %v2863_v28, %v2087_v46 }
0x1e28   :  { %v2097_v49 = vadd.f32 %v2864_v47, %v2092_v48  ;;  %v2904_v48 = vld [vmem:[%s4337_s3 + $0x24] ss:$0 sm:$0xff] }
0x1e2a   :  { %v2865_v50 = vmul.f32 -1.442695, %v2097_v49 }
0x1e2c   :  { %3461 = vpow2.f32 %v2865_v50  ;;  %v2905_v50 = vld [vmem:[%s4337_s3 + $0x25] ss:$0 sm:$0xff] }
0x1e36   :  { %v3462_v51 = vpop.eup %3461 }
0x1e37   :  { %v2101_v52 = vadd.f32 1.0, %v3462_v51 }
0x1e39   :  { %3463 = vrcp.f32 %v2101_v52 }
0x1e43   :  { %v3464_v53 = vpop.eup %3463 }
0x1e44   :  { %v2104_v54 = vmul.f32 %v3464_v53, %v2097_v49 }
0x1e46   :  { %v2110_v55 = vpack.c.bf16 %v2104_v54, %v2104_v54 }
0x1e48   :  { %3185 = vmatmul.mubr.msk.bf16.vlgmr.msra.gmra.mrb[40].mxu1 %vm75_vm1, %v2110_v55 }
0x1e49   :  { %3216 = vmatprep.mubr.msk.bf16.mxu1 %vm3511_vm0, %v3510_v1  ;;  %3213 = vmatpush3.bf16.msra.mxu1 %v3379_v56 }
0x1e4a   :  { %3214 = vmatprep.subr.bf16.mxu1 %v3510_v1 }
0x1e4d   :  { %3215 = vmatpush3.bf16.msra.mxu1 %v3380_v19 }
0x1e4e   :  { %3220 = vmatprep.subr.bf16.mxu1 %v3510_v1 }
0x1f1b   :  { %v2165_v59 = vpop.f32.mrb[40].mxu1 }
0x1f1c   :  { %v2166_v60 = vadd.f32 %v2870_v57, %v2165_v59  ;;  %v3186_v61 = vpop.f32.mrb[41].mxu1 }
0x1f1d   :  { %v2168_v63 = vpop.f32.mrb[42].mxu1 }
0x1f1e   :  { %v2248_v0 = vadd.f32 %v2242_v31, %v2166_v60  ;;  %v3187_v2 = vpop.f32.mrb[43].mxu1  ;;  %v3381_v60 = vld [vmem:[%s4345_s11 + $0x40] sm:$0xff]   ;;  %v3383_v63 = vld [vmem:[%s4345_s11 + $0x50] sm:$0xff]  }
0x1f20   :  { %v2254_v3 = vadd.f32 %v2887_v62, %v2248_v0  ;;  %v3382_v62 = vld [vmem:[%s4345_s11 + $0x48] sm:$0xff]   ;;  %v3384_v0 = vld [vmem:[%s4345_s11 + $0x58] sm:$0xff]  }
0x1f22   :  { %v4224_v5 = vsel %vm75_vm1, %v2254_v3, %v2257_v4 }
0x1f23   :  { %v2262_v17 = vsel %vm1669_vm4, %v4224_v5, 0.0  ;;  %v2476_v2 = vpack.c.bf16 %v4224_v5, %v4224_v5 }
0x1f24   :  { %2263 = vadd.xlane.f32.xlu1 %v2262_v17 }
0x1fb1   :  { %v2264_v6 = vpop.xlane.xlu1 %2263 }
0x1fb2   :  { %v2265_v43 = vmul.f32 0.015625, %v2264_v6 }
0x1fb4   :  { %v2266_v7 = vsub.f32 %v4224_v5, %v2265_v43  ;;  %v2911_v43 = vld [vmem:[%s4337_s3 + $0x26] ss:$0 sm:$0xff]  ;;  %v2928_v5 = vld [vmem:[%s4337_s3 + $0x27] ss:$0 sm:$0xff] }
0x1fb6   :  { %v2267_v8 = vmul.f32 %v2266_v7, %v2266_v7 }
0x1fb8   :  { %v2268_v9 = vsel %vm1669_vm4, %v2267_v8, 0.0 }
0x1fb9   :  { %2269 = vadd.xlane.f32.xlu1 %v2268_v9 }
0x2046   :  { %v2270_v12 = vpop.xlane.xlu1 %2269 }
0x2047   :  { %v2271_v13 = vmul.f32 0.015625, %v2270_v12 }
0x2049   :  { %v2272_v14 = vadd.f32 1e-05, %v2271_v13 }
0x204b   :  { %3465 = vrsqrt.f32 %v2272_v14 }
0x2055   :  { %v3466_v18 = vpop.eup %3465 }
0x2056   :  { %v2274_v16 = vmul.f32 %v3466_v18, %v2266_v7 }
0x2058   :  { %v2279_v21 = vmul.f32 %v2888_v37, %v2274_v16 }
0x205a   :  { %v2284_v24 = vadd.f32 %v2889_v20, %v2279_v21  ;;  %v3385_v20 = vld [vmem:[%s4348_s14] sm:$0xff]   ;;  %v3386_v21 = vld [vmem:[%s4348_s14 + $0x8] sm:$0xff]  }
0x205c   :  { %v2890_v25 = vmul.f32 -1.442695, %v2284_v24 }
0x205e   :  { %3467 = vpow2.f32 %v2890_v25 }
0x2068   :  { %v3468_v26 = vpop.eup %3467 }
0x2069   :  { %v2288_v27 = vadd.f32 1.0, %v3468_v26 }
0x206b   :  { %3469 = vrcp.f32 %v2288_v27 }
0x2075   :  { %v3470_v29 = vpop.eup %3469 }
0x2076   :  { %v2291_v30 = vmul.f32 %v3470_v29, %v2284_v24  ;;  %v2648_v24 = vld [vmem:[%s4336_s2] sm:$0xf] }
0x2078   :  { %v2301_v31 = vpack.c.bf16 %v2291_v30, %v2291_v30  ;;  %v2929_v30 = vld [vmem:[%s4337_s3 + $0x2c] ss:$0 sm:$0xff] }
0x207a   :  { %3209 = vmatmul.mubr.msk.bf16.vlgmr.msra.gmra.mrb[8].mxu0 %vm1734_vm5, %v2301_v31 }
0x214d   :  { %v2363_v35 = vpop.f32.mrb[8].mxu0 }
0x214e   :  { %v3240_v36 = vadd.f32 %v2363_v35, %v220_v33  ;;  %v3210_v38 = vpop.f32.mrb[9].mxu0 }
0x214f   :  { %v2366_v39 = vpop.f32.mrb[10].mxu0 }
0x2150   :  { %v3211_v40 = vpop.f32.mrb[11].mxu0  ;;  %v2371_v41 = vsel %vm740_vm3, %v3240_v36, 0.0 }
0x2151   :  { %2372 = vadd.xlane.f32.xlu1 %v2371_v41 }
0x21de   :  { %v2373_v23 = vpop.xlane.xlu1 %2372 }
0x21df   :  { %v2374_v15 = vmul.f32 0.03125, %v2373_v23 }
0x21e1   :  { %v2375_v42 = vsub.f32 %v3240_v36, %v2374_v15  ;;  %v2932_v15 = vld [vmem:[%s4337_s3 + $0x2e] ss:$0 sm:$0xff] }
0x21e3   :  { %v2376_v44 = vmul.f32 %v2375_v42, %v2375_v42 }
0x21e5   :  { %v2377_v34 = vsel %vm740_vm3, %v2376_v44, 0.0 }
0x21e6   :  { %2378 = vadd.xlane.f32.xlu1 %v2377_v34 }
0x2273   :  { %v2379_v45 = vpop.xlane.xlu1 %2378 }
0x2274   :  { %v2380_v28 = vmul.f32 0.03125, %v2379_v45 }
0x2276   :  { %v2381_v46 = vadd.f32 1e-05, %v2380_v28 }
0x2278   :  { %3471 = vrsqrt.f32 %v2381_v46 }
0x2282   :  { %v3472_v47 = vpop.eup %3471 }
0x2283   :  { %v2383_v49 = vmul.f32 %v3472_v47, %v2375_v42 }
0x2285   :  { %v2388_v51 = vmul.f32 %v2904_v48, %v2383_v49 }
0x2287   :  { %v2393_v52 = vadd.f32 %v2905_v50, %v2388_v51 }
0x2289   :  { %v2906_v53 = vmul.f32 -1.442695, %v2393_v52 }
0x228b   :  { %3473 = vpow2.f32 %v2906_v53 }
0x2295   :  { %v3474_v54 = vpop.eup %3473 }
0x2296   :  { %v2397_v55 = vadd.f32 1.0, %v3474_v54 }
0x2298   :  { %3475 = vrcp.f32 %v2397_v55 }
0x22a2   :  { %v3476_v57 = vpop.eup %3475 }
0x22a3   :  { %v2400_v59 = vmul.f32 %v3476_v57, %v2393_v52 }
0x22a5   :  { %v2406_v61 = vpack.c.bf16 %v2400_v59, %v2400_v59 }
0x22a7   :  { %3217 = vmatmul.mubr.msk.bf16.vlgmr.msra.gmra.mrb[44].mxu1 %vm75_vm1, %v2406_v61 }
0x22a8   :  { %3221 = vmatpush3.bf16.msra.mxu1 %v3381_v60  ;;  %3228 = vmatprep.mubr.msk.bf16.mxu1 %vm3511_vm0, %v3510_v1 }
0x22a9   :  { %3222 = vmatprep.subr.bf16.mxu1 %v3510_v1 }
0x22ac   :  { %3223 = vmatpush3.bf16.msra.mxu1 %v3382_v62 }
0x22ad   :  { %3224 = vmatprep.subr.bf16.mxu1 %v3510_v1 }
0x22b0   :  { %3225 = vmatpush3.bf16.msra.mxu1 %v3383_v63 }
0x22b1   :  { %3226 = vmatprep.subr.bf16.mxu1 %v3510_v1 }
0x22b4   :  { %3227 = vmatpush3.bf16.msra.mxu1 %v3384_v0 }
0x22b5   :  { %3232 = vmatprep.subr.bf16.mxu1 %v3510_v1 }
0x22b7   :  { %3229 = vmatmul.mubr.msk.bf16.vlgmr.msra.gmra.mrb[48].mxu1 %vm1734_vm5, %v2476_v2 }
0x22b8   :  { %3236 = vmatprep.mubr.msk.bf16.mxu1 %vm3511_vm0, %v3510_v1  ;;  %3233 = vmatpush3.bf16.msra.mxu1 %v3385_v20 }
0x22b9   :  { %3234 = vmatprep.subr.bf16.mxu1 %v3510_v1  ;;  %v2930_v1 = vld [vmem:[%s4337_s3 + $0x2d] ss:$0 sm:$0xff] }
0x22bc   :  { %3235 = vmatpush3.bf16.msra.mxu1 %v3386_v21 }
0x237a   :  { %v2461_v3 = vpop.f32.mrb[44].mxu1 }
0x237b   :  { %v3218_v4 = vpop.f32.mrb[45].mxu1  ;;  %v2462_v7 = vadd.f32 %v2911_v43, %v2461_v3 }
0x237c   :  { %v2464_v17 = vpop.f32.mrb[46].mxu1 }
0x237d   :  { %v3219_v6 = vpop.f32.mrb[47].mxu1 }
0x238a   :  { %v2538_v8 = vpop.f32.mrb[48].mxu1 }
0x238b   :  { %v2544_v9 = vadd.f32 %v2538_v8, %v2462_v7  ;;  %v3230_v10 = vpop.f32.mrb[49].mxu1 }
0x238c   :  { %v2541_v11 = vpop.f32.mrb[50].mxu1 }
0x238d   :  { %v3231_v22 = vpop.f32.mrb[51].mxu1  ;;  %v2550_v58 = vadd.f32 %v2928_v5, %v2544_v9 }
0x238f   :  { %v2553_v12 = vsel %vm740_vm3, %v2550_v58, 0.0 }
0x2390   :  { %2554 = vadd.xlane.f32.xlu0 %v2553_v12 }
0x241d   :  { %v2555_v13 = vpop.xlane.xlu0 %2554 }
0x241e   :  { %v2556_v14 = vmul.f32 0.03125, %v2555_v13 }
0x2420   :  { %v2557_v18 = vsub.f32 %v2550_v58, %v2556_v14 }
0x2422   :  { %v2558_v37 = vmul.f32 %v2557_v18, %v2557_v18 }
0x2424   :  { %v2559_v16 = vsel %vm740_vm3, %v2558_v37, 0.0 }
0x2425   :  { %2560 = vadd.xlane.f32.xlu1 %v2559_v16 }
0x2436   :  { %2651 = vperm.xlu1 %3250, %v2648_v24  }
0x24b2   :  { %v2561_v25 = vpop.xlane.xlu1 %2560 }
0x24b3   :  { %v2562_v26 = vmul.f32 0.03125, %v2561_v25 }
0x24b5   :  { %v2563_v27 = vadd.f32 1e-05, %v2562_v26 }
0x24b6   :  { %v2652_v23 = vpop.permute.xlu1 %2651 }
0x24b7   :  { %3477 = vrsqrt.f32 %v2563_v27 }
0x24c1   :  { %v3478_v29 = vpop.eup %3477 }
0x24c2   :  { %v2565_v31 = vmul.f32 %v3478_v29, %v2557_v18 }
0x24c4   :  { %v2570_v32 = vmul.f32 %v2929_v30, %v2565_v31 }
0x24c6   :  { %v2575_v33 = vadd.f32 %v2930_v1, %v2570_v32 }
0x24c8   :  { %v2931_v35 = vmul.f32 -1.442695, %v2575_v33 }
0x24ca   :  { %3479 = vpow2.f32 %v2931_v35 }
0x24d4   :  { %v3480_v36 = vpop.eup %3479 }
0x24d5   :  { %v2579_v38 = vadd.f32 1.0, %v3480_v36 }
0x24d7   :  { %3481 = vrcp.f32 %v2579_v38 }
0x24d8   :  { %3483 = vrcp.f32 %v2652_v23 }
0x24e1   :  { %v3482_v39 = vpop.eup %3481 }
0x24e2   :  { %v2582_v40 = vmul.f32 %v3482_v39, %v2575_v33  ;;  %v3484_v42 = vpop.eup %3483 }
0x24e4   :  { %v2587_v41 = vpack.c.bf16 %v2582_v40, %v2582_v40 }
0x24e6   :  { %3237 = vmatmul.mubr.msk.bf16.vlgmr.msra.gmra.mrb[52].mxu1 %vm75_vm1, %v2587_v41 }
0x25b9   :  { %v2642_v44 = vpop.f32.mrb[52].mxu1 }
0x25ba   :  { %v2643_v34 = vadd.f32 %v2932_v15, %v2642_v44  ;;  %v3238_v56 = vpop.f32.mrb[53].mxu1 }
0x25bb   :  { %v2645_v19 = vpop.f32.mrb[54].mxu1 }
0x25bc   :  { %v2655_v45 = vmul.f32 %v3484_v42, %v2643_v34  ;;  %v3239_v28 = vpop.f32.mrb[55].mxu1 }
0x25be   :  { %2657 = vst.msk [vmem:[#allocation2] sm:$0xf] %vm2656_vm6, %v2655_v45 }
0x25bf   :  { %3497 = shalt.err (!%p3494_p4)
}
0x25c0   :  { %s3498_s22 = scalar_lea.hbm %s4349_s15, 64 }
0x25c1   :  { %p3499_p5 = scmp.ne.s32.totalorder %s4349_s15, %s3498_s22  ;;  %p3502_p6 = scmp.lt.u32.totalorder %s3498_s22, %s4349_s15 }
0x25c3   :  { %p3504_p7 = pnand %p3502_p6, %p3499_p5 }
0x25c5   :  { %3507 = shalt.err (!%p3504_p7)
}
0x25c6   :  { %2667 = dma.vmem_to_hbm [thread:$0]  %s2665_s0, 64, %s4349_s15, [#allocation3]  }
0x25c7   :  { %3508 = dma.done.wait [#allocation3], 64  }
0x25c8   :  { %3509 = vsyncadd [#allocation3], 4294967232 }
0x25c9   :  { %2671 = vsyncpa [#allocation3], 1 }

</bundles_post_ra>
